<compile_context>
chip_gen: v7x
topology: tpu7x:2x2x1
jax: 0.10.0
libtpu: 0.0.40
codegen_flags: <defaults>
</compile_context>

<pallas_src>
import functools

import jax
import jax.numpy as jnp
from jax import lax
from jax.experimental import pallas as pl
from jax.experimental.pallas import tpu as pltpu


def _stochastic_pool_kernel(x_ref, idx_ref, o_ref, *, w, wo, group):
    """One grid step: pick one element of every 2x2 window for a row tile.

    x_ref  : VMEM (TB, group*2*w)  -- G fused segments; segment g holds image
                                      rows (2r, 2r+1) of window-row r,
                                      concatenated along lanes.
    idx_ref: VMEM (TB, group*wo)   -- int32 in [0, 4): which window element.
    o_ref  : VMEM (TB, group*wo)   -- pooled output tile.
    """
    # Constant de-interleave matrix E (w, 2*wo):
    #   column j      picks lane 2j   (left element of the horizontal pair)
    #   column wo + j picks lane 2j+1 (right element)
    # Applying it on the MXU is exact (0/1 weights, HIGHEST precision) and the
    # MXU is otherwise idle in this memory-bound kernel.
    row_i = lax.broadcasted_iota(jnp.int32, (w, 2 * wo), 0)
    col_i = lax.broadcasted_iota(jnp.int32, (w, 2 * wo), 1)
    is_right = col_i >= wo
    tap = jnp.where(is_right, 2 * (col_i - wo) + 1, 2 * col_i)
    e_mat = (row_i == tap).astype(jnp.float32)

    v = x_ref[...].astype(jnp.float32)       # (TB, group*2*w)
    s = idx_ref[...]                         # (TB, group*wo) int32

    outs = []
    for g in range(group):                   # static unroll over fused segments
        seg = v[:, g * 2 * w:(g + 1) * 2 * w]    # (TB, 2*w): one image row pair
        top = seg[:, :w]                         # image row 2r
        bot = seg[:, w:]                         # image row 2r + 1
        t_cand = jnp.dot(top, e_mat, precision=lax.Precision.HIGHEST,
                         preferred_element_type=jnp.float32)   # [TL | TR]
        b_cand = jnp.dot(bot, e_mat, precision=lax.Precision.HIGHEST,
                         preferred_element_type=jnp.float32)   # [BL | BR]
        tl, tr = t_cand[:, :wo], t_cand[:, wo:]
        bl, br = b_cand[:, :wo], b_cand[:, wo:]

        sg = s[:, g * wo:(g + 1) * wo]
        pick_right = (sg & 1) == 1           # bit 0: left/right column
        pick_bottom = sg >= 2                # bit 1: top/bottom row
        top_sel = jnp.where(pick_right, tr, tl)
        bot_sel = jnp.where(pick_right, br, bl)
        outs.append(jnp.where(pick_bottom, bot_sel, top_sel))

    o_ref[...] = jnp.concatenate(outs, axis=1).astype(o_ref.dtype)


def _pick_group(n_rows, w, wo, *, max_lanes=2048, max_group=32):
    """Largest divisor of n_rows (<= max_group) whose fused input row fits in
    max_lanes lanes; stop growing once the output row is >= 128 lanes."""
    best = 1
    for g in range(1, min(n_rows, max_group) + 1):
        if n_rows % g:
            continue
        if g * 2 * w > max_lanes:
            break
        best = g
        if g * wo >= 128:
            break
    return best


def stochastic_pool2d(x, key, *, group=None, block_rows=None):
    """Stochastic 2x2 / stride-2 pooling: (N, C, H, W) -> (N, C, H//2, W//2)."""
    n, c, h, w = x.shape
    assert h % 2 == 0 and w % 2 == 0, "spatial dims must be divisible by 2"
    assert jnp.issubdtype(x.dtype, jnp.floating), "expects float activations"
    ho, wo = h // 2, w // 2
    r = n * c * ho                        # number of 2x2 window rows

    if group is None:
        group = _pick_group(r, w, wo)
    assert r % group == 0, "group must divide N*C*(H//2)"
    rg = r // group
    lane_in = group * 2 * w               # fused input row width  (lanes)
    lane_out = group * wo                 # fused output row width (lanes)

    # Metadata-only reshape (no transpose, no HBM copy): each fused row holds
    # G contiguous image row-pairs straight out of NCHW memory.
    xg = x.reshape(rg, lane_in)

    # One uniform draw in [0, 4) per window, drawn with the XLA PRNG (the
    # in-kernel hardware PRNG has no interpret-mode lowering -- see header).
    idx = jax.random.randint(key, (rg, lane_out), 0, 4, dtype=jnp.int32)

    # Row tile: target ~4 MiB of input per grid step (mem-bound sweet spot),
    # multiple of 32 sublanes.  Ragged tail handled by pl.cdiv + masked stores.
    if block_rows is None:
        target_bytes = 4 * 1024 * 1024
        tb = max(8, (target_bytes // (lane_in * x.dtype.itemsize)) // 32 * 32)
    else:
        tb = block_rows
    tb = min(tb, rg)
    if tb < rg:
        tb = max(8, (tb // 8) * 8)
    grid = (pl.cdiv(rg, tb),)

    kernel = functools.partial(_stochastic_pool_kernel, w=w, wo=wo, group=group)

    out = pl.pallas_call(
        kernel,
        out_shape=jax.ShapeDtypeStruct((rg, lane_out), x.dtype),
        grid=grid,
        in_specs=[
            pl.BlockSpec((tb, lane_in), lambda i: (i, 0)),
            pl.BlockSpec((tb, lane_out), lambda i: (i, 0)),
        ],
        out_specs=pl.BlockSpec((tb, lane_out), lambda i: (i, 0)),
        compiler_params=pltpu.CompilerParams(
            # Every grid step is independent -> shard across v7x's 2 TCs.
            dimension_semantics=("parallel",),
            # Double-buffered blocks use ~6-12 MiB; 32 MiB leaves headroom on
            # all generations (incl. v7x's 64 MiB physical VMEM).
            vmem_limit_bytes=32 * 1024 * 1024,
        ),
    )(xg, idx)

    return out.reshape(n, c, ho, wo)


if __name__ == "__main__":
    root = jax.random.PRNGKey(0)
    k_x, k_p, k_x2, k_p2 = jax.random.split(root, 4)

    # Small NCHW feature map consistent with the MSCNN pools.
    x = jax.random.normal(k_x, (2, 4, 16, 16), dtype=jnp.float32)
    y = jax.block_until_ready(stochastic_pool2d(x, k_p))
    assert y.shape == (2, 4, 8, 8), y.shape
    assert y.dtype == x.dtype

    # Every output element must be one of the 4 values of its 2x2 window.
    win = (x.reshape(2, 4, 8, 2, 8, 2)
             .transpose(0, 1, 2, 4, 3, 5)
             .reshape(2, 4, 8, 8, 4))
    member = jnp.any(jnp.isclose(y[..., None], win, rtol=5e-3, atol=1e-6), axis=-1)
    assert bool(jnp.all(member)), "output element not drawn from its window"
    # Randomness sanity: not every window degenerates to its top-left element.
    assert not bool(jnp.all(jnp.isclose(y, win[..., 0], rtol=5e-3, atol=1e-6)))

    # Odd-sized map with forced small tile / group=1: exercises the ragged
    # (pl.cdiv) last block and the narrow-lane fallback path.
    x2 = jax.random.normal(k_x2, (1, 3, 10, 12), dtype=jnp.float32)
    y2 = jax.block_until_ready(
        stochastic_pool2d(x2, k_p2, group=1, block_rows=8))
    assert y2.shape == (1, 3, 5, 6), y2.shape
    win2 = (x2.reshape(1, 3, 5, 2, 6, 2)
              .transpose(0, 1, 2, 4, 3, 5)
              .reshape(1, 3, 5, 6, 4))
    member2 = jnp.any(jnp.isclose(y2[..., None], win2, rtol=5e-3, atol=1e-6),
                      axis=-1)
    assert bool(jnp.all(member2)), "output element not drawn from its window"

    print("KERNEL_OK")
</pallas_src>

<mosaic_0001>
module attributes {stable_mosaic.version = 11 : i64} {
  func.func @_stochastic_pool_kernel(%arg0: i32, %arg1: memref<4x512xf32, #tpu.memory_space<vmem>>, %arg2: memref<4x128xi32, #tpu.memory_space<vmem>>, %arg3: memref<4x128xf32, #tpu.memory_space<vmem>>) attributes {dimension_semantics = [#tpu.dimension_semantics<parallel>], iteration_bounds = array<i64: 1>, scalar_prefetch = 0 : i64, scratch_operands = 0 : i64, tpu.core_type = #tpu.core_type<tc>, window_params = [{transform_indices = @transform_0, window_bounds = array<i64: 4, 512>}, {transform_indices = @transform_1, window_bounds = array<i64: 4, 128>}, {transform_indices = @transform_2, window_bounds = array<i64: 4, 128>}]} {
    %0 = tpu.iota {dimensions = array<i32: 0>} : vector<16x16xi32>
    %1 = tpu.iota {dimensions = array<i32: 1>} : vector<16x16xi32>
    %c8_i32 = arith.constant 8 : i32
    %2 = vector.broadcast %c8_i32 : i32 to vector<16x16xi32>
    %3 = arith.cmpi sge, %1, %2 : vector<16x16xi32>
    %c8_i32_0 = arith.constant 8 : i32
    %4 = vector.broadcast %c8_i32_0 : i32 to vector<16x16xi32>
    %5 = arith.subi %1, %4 : vector<16x16xi32>
    %c2_i32 = arith.constant 2 : i32
    %6 = vector.broadcast %c2_i32 : i32 to vector<16x16xi32>
    %7 = arith.muli %6, %5 : vector<16x16xi32>
    %c1_i32 = arith.constant 1 : i32
    %8 = vector.broadcast %c1_i32 : i32 to vector<16x16xi32>
    %9 = arith.addi %7, %8 : vector<16x16xi32>
    %c2_i32_1 = arith.constant 2 : i32
    %10 = vector.broadcast %c2_i32_1 : i32 to vector<16x16xi32>
    %11 = arith.muli %10, %1 : vector<16x16xi32>
    %12 = arith.select %3, %9, %11 : vector<16x16xi1>, vector<16x16xi32>
    %13 = arith.cmpi eq, %0, %12 : vector<16x16xi32>
    %14 = arith.extui %13 : vector<16x16xi1> to vector<16x16xi32>
    %15 = arith.sitofp %14 : vector<16x16xi32> to vector<16x16xf32>
    %c0 = arith.constant 0 : index
    %c0_2 = arith.constant 0 : index
    %16 = vector.load %arg1[%c0, %c0_2] : memref<4x512xf32, #tpu.memory_space<vmem>>, vector<4x512xf32>
    %c0_3 = arith.constant 0 : index
    %c0_4 = arith.constant 0 : index
    %17 = vector.load %arg2[%c0_3, %c0_4] : memref<4x128xi32, #tpu.memory_space<vmem>>, vector<4x128xi32>
    %18 = vector.extract_strided_slice %16 {offsets = [0, 0], sizes = [4, 32], strides = [1, 1]} : vector<4x512xf32> to vector<4x32xf32>
    %19 = vector.extract_strided_slice %18 {offsets = [0, 0], sizes = [4, 16], strides = [1, 1]} : vector<4x32xf32> to vector<4x16xf32>
    %20 = vector.extract_strided_slice %18 {offsets = [0, 16], sizes = [4, 16], strides = [1, 1]} : vector<4x32xf32> to vector<4x16xf32>
    %cst = arith.constant dense<0.000000e+00> : vector<4x16xf32>
    %21 = tpu.matmul %19, %15, %cst {dimension_numbers = #tpu.dot_dimension_numbers<[1], [0], [0], [1], [0, 0, 1, 1], [], []>, precision = #tpu.contract_precision<fp32>} : vector<4x16xf32>, vector<16x16xf32>, vector<4x16xf32> -> vector<4x16xf32>
    %cst_5 = arith.constant dense<0.000000e+00> : vector<4x16xf32>
    %22 = tpu.matmul %20, %15, %cst_5 {dimension_numbers = #tpu.dot_dimension_numbers<[1], [0], [0], [1], [0, 0, 1, 1], [], []>, precision = #tpu.contract_precision<fp32>} : vector<4x16xf32>, vector<16x16xf32>, vector<4x16xf32> -> vector<4x16xf32>
    %23 = vector.extract_strided_slice %21 {offsets = [0, 0], sizes = [4, 8], strides = [1, 1]} : vector<4x16xf32> to vector<4x8xf32>
    %24 = vector.extract_strided_slice %21 {offsets = [0, 8], sizes = [4, 8], strides = [1, 1]} : vector<4x16xf32> to vector<4x8xf32>
    %25 = vector.extract_strided_slice %22 {offsets = [0, 0], sizes = [4, 8], strides = [1, 1]} : vector<4x16xf32> to vector<4x8xf32>
    %26 = vector.extract_strided_slice %22 {offsets = [0, 8], sizes = [4, 8], strides = [1, 1]} : vector<4x16xf32> to vector<4x8xf32>
    %27 = vector.extract_strided_slice %17 {offsets = [0, 0], sizes = [4, 8], strides = [1, 1]} : vector<4x128xi32> to vector<4x8xi32>
    %c1_i32_6 = arith.constant 1 : i32
    %28 = vector.broadcast %c1_i32_6 : i32 to vector<4x8xi32>
    %29 = arith.andi %27, %28 : vector<4x8xi32>
    %c1_i32_7 = arith.constant 1 : i32
    %30 = vector.broadcast %c1_i32_7 : i32 to vector<4x8xi32>
    %31 = arith.cmpi eq, %29, %30 : vector<4x8xi32>
    %c2_i32_8 = arith.constant 2 : i32
    %32 = vector.broadcast %c2_i32_8 : i32 to vector<4x8xi32>
    %33 = arith.cmpi sge, %27, %32 : vector<4x8xi32>
    %34 = arith.select %31, %24, %23 : vector<4x8xi1>, vector<4x8xf32>
    %35 = arith.select %31, %26, %25 : vector<4x8xi1>, vector<4x8xf32>
    %36 = arith.select %33, %35, %34 : vector<4x8xi1>, vector<4x8xf32>
    %37 = vector.extract_strided_slice %16 {offsets = [0, 32], sizes = [4, 32], strides = [1, 1]} : vector<4x512xf32> to vector<4x32xf32>
    %38 = vector.extract_strided_slice %37 {offsets = [0, 0], sizes = [4, 16], strides = [1, 1]} : vector<4x32xf32> to vector<4x16xf32>
    %39 = vector.extract_strided_slice %37 {offsets = [0, 16], sizes = [4, 16], strides = [1, 1]} : vector<4x32xf32> to vector<4x16xf32>
    %cst_9 = arith.constant dense<0.000000e+00> : vector<4x16xf32>
    %40 = tpu.matmul %38, %15, %cst_9 {dimension_numbers = #tpu.dot_dimension_numbers<[1], [0], [0], [1], [0, 0, 1, 1], [], []>, precision = #tpu.contract_precision<fp32>} : vector<4x16xf32>, vector<16x16xf32>, vector<4x16xf32> -> vector<4x16xf32>
    %cst_10 = arith.constant dense<0.000000e+00> : vector<4x16xf32>
    %41 = tpu.matmul %39, %15, %cst_10 {dimension_numbers = #tpu.dot_dimension_numbers<[1], [0], [0], [1], [0, 0, 1, 1], [], []>, precision = #tpu.contract_precision<fp32>} : vector<4x16xf32>, vector<16x16xf32>, vector<4x16xf32> -> vector<4x16xf32>
    %42 = vector.extract_strided_slice %40 {offsets = [0, 0], sizes = [4, 8], strides = [1, 1]} : vector<4x16xf32> to vector<4x8xf32>
    %43 = vector.extract_strided_slice %40 {offsets = [0, 8], sizes = [4, 8], strides = [1, 1]} : vector<4x16xf32> to vector<4x8xf32>
    %44 = vector.extract_strided_slice %41 {offsets = [0, 0], sizes = [4, 8], strides = [1, 1]} : vector<4x16xf32> to vector<4x8xf32>
    %45 = vector.extract_strided_slice %41 {offsets = [0, 8], sizes = [4, 8], strides = [1, 1]} : vector<4x16xf32> to vector<4x8xf32>
    %46 = vector.extract_strided_slice %17 {offsets = [0, 8], sizes = [4, 8], strides = [1, 1]} : vector<4x128xi32> to vector<4x8xi32>
    %c1_i32_11 = arith.constant 1 : i32
    %47 = vector.broadcast %c1_i32_11 : i32 to vector<4x8xi32>
    %48 = arith.andi %46, %47 : vector<4x8xi32>
    %c1_i32_12 = arith.constant 1 : i32
    %49 = vector.broadcast %c1_i32_12 : i32 to vector<4x8xi32>
    %50 = arith.cmpi eq, %48, %49 : vector<4x8xi32>
    %c2_i32_13 = arith.constant 2 : i32
    %51 = vector.broadcast %c2_i32_13 : i32 to vector<4x8xi32>
    %52 = arith.cmpi sge, %46, %51 : vector<4x8xi32>
    %53 = arith.select %50, %43, %42 : vector<4x8xi1>, vector<4x8xf32>
    %54 = arith.select %50, %45, %44 : vector<4x8xi1>, vector<4x8xf32>
    %55 = arith.select %52, %54, %53 : vector<4x8xi1>, vector<4x8xf32>
    %56 = vector.extract_strided_slice %16 {offsets = [0, 64], sizes = [4, 32], strides = [1, 1]} : vector<4x512xf32> to vector<4x32xf32>
    %57 = vector.extract_strided_slice %56 {offsets = [0, 0], sizes = [4, 16], strides = [1, 1]} : vector<4x32xf32> to vector<4x16xf32>
    %58 = vector.extract_strided_slice %56 {offsets = [0, 16], sizes = [4, 16], strides = [1, 1]} : vector<4x32xf32> to vector<4x16xf32>
    %cst_14 = arith.constant dense<0.000000e+00> : vector<4x16xf32>
    %59 = tpu.matmul %57, %15, %cst_14 {dimension_numbers = #tpu.dot_dimension_numbers<[1], [0], [0], [1], [0, 0, 1, 1], [], []>, precision = #tpu.contract_precision<fp32>} : vector<4x16xf32>, vector<16x16xf32>, vector<4x16xf32> -> vector<4x16xf32>
    %cst_15 = arith.constant dense<0.000000e+00> : vector<4x16xf32>
    %60 = tpu.matmul %58, %15, %cst_15 {dimension_numbers = #tpu.dot_dimension_numbers<[1], [0], [0], [1], [0, 0, 1, 1], [], []>, precision = #tpu.contract_precision<fp32>} : vector<4x16xf32>, vector<16x16xf32>, vector<4x16xf32> -> vector<4x16xf32>
    %61 = vector.extract_strided_slice %59 {offsets = [0, 0], sizes = [4, 8], strides = [1, 1]} : vector<4x16xf32> to vector<4x8xf32>
    %62 = vector.extract_strided_slice %59 {offsets = [0, 8], sizes = [4, 8], strides = [1, 1]} : vector<4x16xf32> to vector<4x8xf32>
    %63 = vector.extract_strided_slice %60 {offsets = [0, 0], sizes = [4, 8], strides = [1, 1]} : vector<4x16xf32> to vector<4x8xf32>
    %64 = vector.extract_strided_slice %60 {offsets = [0, 8], sizes = [4, 8], strides = [1, 1]} : vector<4x16xf32> to vector<4x8xf32>
    %65 = vector.extract_strided_slice %17 {offsets = [0, 16], sizes = [4, 8], strides = [1, 1]} : vector<4x128xi32> to vector<4x8xi32>
    %c1_i32_16 = arith.constant 1 : i32
    %66 = vector.broadcast %c1_i32_16 : i32 to vector<4x8xi32>
    %67 = arith.andi %65, %66 : vector<4x8xi32>
    %c1_i32_17 = arith.constant 1 : i32
    %68 = vector.broadcast %c1_i32_17 : i32 to vector<4x8xi32>
    %69 = arith.cmpi eq, %67, %68 : vector<4x8xi32>
    %c2_i32_18 = arith.constant 2 : i32
    %70 = vector.broadcast %c2_i32_18 : i32 to vector<4x8xi32>
    %71 = arith.cmpi sge, %65, %70 : vector<4x8xi32>
    %72 = arith.select %69, %62, %61 : vector<4x8xi1>, vector<4x8xf32>
    %73 = arith.select %69, %64, %63 : vector<4x8xi1>, vector<4x8xf32>
    %74 = arith.select %71, %73, %72 : vector<4x8xi1>, vector<4x8xf32>
    %75 = vector.extract_strided_slice %16 {offsets = [0, 96], sizes = [4, 32], strides = [1, 1]} : vector<4x512xf32> to vector<4x32xf32>
    %76 = vector.extract_strided_slice %75 {offsets = [0, 0], sizes = [4, 16], strides = [1, 1]} : vector<4x32xf32> to vector<4x16xf32>
    %77 = vector.extract_strided_slice %75 {offsets = [0, 16], sizes = [4, 16], strides = [1, 1]} : vector<4x32xf32> to vector<4x16xf32>
    %cst_19 = arith.constant dense<0.000000e+00> : vector<4x16xf32>
    %78 = tpu.matmul %76, %15, %cst_19 {dimension_numbers = #tpu.dot_dimension_numbers<[1], [0], [0], [1], [0, 0, 1, 1], [], []>, precision = #tpu.contract_precision<fp32>} : vector<4x16xf32>, vector<16x16xf32>, vector<4x16xf32> -> vector<4x16xf32>
    %cst_20 = arith.constant dense<0.000000e+00> : vector<4x16xf32>
    %79 = tpu.matmul %77, %15, %cst_20 {dimension_numbers = #tpu.dot_dimension_numbers<[1], [0], [0], [1], [0, 0, 1, 1], [], []>, precision = #tpu.contract_precision<fp32>} : vector<4x16xf32>, vector<16x16xf32>, vector<4x16xf32> -> vector<4x16xf32>
    %80 = vector.extract_strided_slice %78 {offsets = [0, 0], sizes = [4, 8], strides = [1, 1]} : vector<4x16xf32> to vector<4x8xf32>
    %81 = vector.extract_strided_slice %78 {offsets = [0, 8], sizes = [4, 8], strides = [1, 1]} : vector<4x16xf32> to vector<4x8xf32>
    %82 = vector.extract_strided_slice %79 {offsets = [0, 0], sizes = [4, 8], strides = [1, 1]} : vector<4x16xf32> to vector<4x8xf32>
    %83 = vector.extract_strided_slice %79 {offsets = [0, 8], sizes = [4, 8], strides = [1, 1]} : vector<4x16xf32> to vector<4x8xf32>
    %84 = vector.extract_strided_slice %17 {offsets = [0, 24], sizes = [4, 8], strides = [1, 1]} : vector<4x128xi32> to vector<4x8xi32>
    %c1_i32_21 = arith.constant 1 : i32
    %85 = vector.broadcast %c1_i32_21 : i32 to vector<4x8xi32>
    %86 = arith.andi %84, %85 : vector<4x8xi32>
    %c1_i32_22 = arith.constant 1 : i32
    %87 = vector.broadcast %c1_i32_22 : i32 to vector<4x8xi32>
    %88 = arith.cmpi eq, %86, %87 : vector<4x8xi32>
    %c2_i32_23 = arith.constant 2 : i32
    %89 = vector.broadcast %c2_i32_23 : i32 to vector<4x8xi32>
    %90 = arith.cmpi sge, %84, %89 : vector<4x8xi32>
    %91 = arith.select %88, %81, %80 : vector<4x8xi1>, vector<4x8xf32>
    %92 = arith.select %88, %83, %82 : vector<4x8xi1>, vector<4x8xf32>
    %93 = arith.select %90, %92, %91 : vector<4x8xi1>, vector<4x8xf32>
    %94 = vector.extract_strided_slice %16 {offsets = [0, 128], sizes = [4, 32], strides = [1, 1]} : vector<4x512xf32> to vector<4x32xf32>
    %95 = vector.extract_strided_slice %94 {offsets = [0, 0], sizes = [4, 16], strides = [1, 1]} : vector<4x32xf32> to vector<4x16xf32>
    %96 = vector.extract_strided_slice %94 {offsets = [0, 16], sizes = [4, 16], strides = [1, 1]} : vector<4x32xf32> to vector<4x16xf32>
    %cst_24 = arith.constant dense<0.000000e+00> : vector<4x16xf32>
    %97 = tpu.matmul %95, %15, %cst_24 {dimension_numbers = #tpu.dot_dimension_numbers<[1], [0], [0], [1], [0, 0, 1, 1], [], []>, precision = #tpu.contract_precision<fp32>} : vector<4x16xf32>, vector<16x16xf32>, vector<4x16xf32> -> vector<4x16xf32>
    %cst_25 = arith.constant dense<0.000000e+00> : vector<4x16xf32>
    %98 = tpu.matmul %96, %15, %cst_25 {dimension_numbers = #tpu.dot_dimension_numbers<[1], [0], [0], [1], [0, 0, 1, 1], [], []>, precision = #tpu.contract_precision<fp32>} : vector<4x16xf32>, vector<16x16xf32>, vector<4x16xf32> -> vector<4x16xf32>
    %99 = vector.extract_strided_slice %97 {offsets = [0, 0], sizes = [4, 8], strides = [1, 1]} : vector<4x16xf32> to vector<4x8xf32>
    %100 = vector.extract_strided_slice %97 {offsets = [0, 8], sizes = [4, 8], strides = [1, 1]} : vector<4x16xf32> to vector<4x8xf32>
    %101 = vector.extract_strided_slice %98 {offsets = [0, 0], sizes = [4, 8], strides = [1, 1]} : vector<4x16xf32> to vector<4x8xf32>
    %102 = vector.extract_strided_slice %98 {offsets = [0, 8], sizes = [4, 8], strides = [1, 1]} : vector<4x16xf32> to vector<4x8xf32>
    %103 = vector.extract_strided_slice %17 {offsets = [0, 32], sizes = [4, 8], strides = [1, 1]} : vector<4x128xi32> to vector<4x8xi32>
    %c1_i32_26 = arith.constant 1 : i32
    %104 = vector.broadcast %c1_i32_26 : i32 to vector<4x8xi32>
    %105 = arith.andi %103, %104 : vector<4x8xi32>
    %c1_i32_27 = arith.constant 1 : i32
    %106 = vector.broadcast %c1_i32_27 : i32 to vector<4x8xi32>
    %107 = arith.cmpi eq, %105, %106 : vector<4x8xi32>
    %c2_i32_28 = arith.constant 2 : i32
    %108 = vector.broadcast %c2_i32_28 : i32 to vector<4x8xi32>
    %109 = arith.cmpi sge, %103, %108 : vector<4x8xi32>
    %110 = arith.select %107, %100, %99 : vector<4x8xi1>, vector<4x8xf32>
    %111 = arith.select %107, %102, %101 : vector<4x8xi1>, vector<4x8xf32>
    %112 = arith.select %109, %111, %110 : vector<4x8xi1>, vector<4x8xf32>
    %113 = vector.extract_strided_slice %16 {offsets = [0, 160], sizes = [4, 32], strides = [1, 1]} : vector<4x512xf32> to vector<4x32xf32>
    %114 = vector.extract_strided_slice %113 {offsets = [0, 0], sizes = [4, 16], strides = [1, 1]} : vector<4x32xf32> to vector<4x16xf32>
    %115 = vector.extract_strided_slice %113 {offsets = [0, 16], sizes = [4, 16], strides = [1, 1]} : vector<4x32xf32> to vector<4x16xf32>
    %cst_29 = arith.constant dense<0.000000e+00> : vector<4x16xf32>
    %116 = tpu.matmul %114, %15, %cst_29 {dimension_numbers = #tpu.dot_dimension_numbers<[1], [0], [0], [1], [0, 0, 1, 1], [], []>, precision = #tpu.contract_precision<fp32>} : vector<4x16xf32>, vector<16x16xf32>, vector<4x16xf32> -> vector<4x16xf32>
    %cst_30 = arith.constant dense<0.000000e+00> : vector<4x16xf32>
    %117 = tpu.matmul %115, %15, %cst_30 {dimension_numbers = #tpu.dot_dimension_numbers<[1], [0], [0], [1], [0, 0, 1, 1], [], []>, precision = #tpu.contract_precision<fp32>} : vector<4x16xf32>, vector<16x16xf32>, vector<4x16xf32> -> vector<4x16xf32>
    %118 = vector.extract_strided_slice %116 {offsets = [0, 0], sizes = [4, 8], strides = [1, 1]} : vector<4x16xf32> to vector<4x8xf32>
    %119 = vector.extract_strided_slice %116 {offsets = [0, 8], sizes = [4, 8], strides = [1, 1]} : vector<4x16xf32> to vector<4x8xf32>
    %120 = vector.extract_strided_slice %117 {offsets = [0, 0], sizes = [4, 8], strides = [1, 1]} : vector<4x16xf32> to vector<4x8xf32>
    %121 = vector.extract_strided_slice %117 {offsets = [0, 8], sizes = [4, 8], strides = [1, 1]} : vector<4x16xf32> to vector<4x8xf32>
    %122 = vector.extract_strided_slice %17 {offsets = [0, 40], sizes = [4, 8], strides = [1, 1]} : vector<4x128xi32> to vector<4x8xi32>
    %c1_i32_31 = arith.constant 1 : i32
    %123 = vector.broadcast %c1_i32_31 : i32 to vector<4x8xi32>
    %124 = arith.andi %122, %123 : vector<4x8xi32>
    %c1_i32_32 = arith.constant 1 : i32
    %125 = vector.broadcast %c1_i32_32 : i32 to vector<4x8xi32>
    %126 = arith.cmpi eq, %124, %125 : vector<4x8xi32>
    %c2_i32_33 = arith.constant 2 : i32
    %127 = vector.broadcast %c2_i32_33 : i32 to vector<4x8xi32>
    %128 = arith.cmpi sge, %122, %127 : vector<4x8xi32>
    %129 = arith.select %126, %119, %118 : vector<4x8xi1>, vector<4x8xf32>
    %130 = arith.select %126, %121, %120 : vector<4x8xi1>, vector<4x8xf32>
    %131 = arith.select %128, %130, %129 : vector<4x8xi1>, vector<4x8xf32>
    %132 = vector.extract_strided_slice %16 {offsets = [0, 192], sizes = [4, 32], strides = [1, 1]} : vector<4x512xf32> to vector<4x32xf32>
    %133 = vector.extract_strided_slice %132 {offsets = [0, 0], sizes = [4, 16], strides = [1, 1]} : vector<4x32xf32> to vector<4x16xf32>
    %134 = vector.extract_strided_slice %132 {offsets = [0, 16], sizes = [4, 16], strides = [1, 1]} : vector<4x32xf32> to vector<4x16xf32>
    %cst_34 = arith.constant dense<0.000000e+00> : vector<4x16xf32>
    %135 = tpu.matmul %133, %15, %cst_34 {dimension_numbers = #tpu.dot_dimension_numbers<[1], [0], [0], [1], [0, 0, 1, 1], [], []>, precision = #tpu.contract_precision<fp32>} : vector<4x16xf32>, vector<16x16xf32>, vector<4x16xf32> -> vector<4x16xf32>
    %cst_35 = arith.constant dense<0.000000e+00> : vector<4x16xf32>
    %136 = tpu.matmul %134, %15, %cst_35 {dimension_numbers = #tpu.dot_dimension_numbers<[1], [0], [0], [1], [0, 0, 1, 1], [], []>, precision = #tpu.contract_precision<fp32>} : vector<4x16xf32>, vector<16x16xf32>, vector<4x16xf32> -> vector<4x16xf32>
    %137 = vector.extract_strided_slice %135 {offsets = [0, 0], sizes = [4, 8], strides = [1, 1]} : vector<4x16xf32> to vector<4x8xf32>
    %138 = vector.extract_strided_slice %135 {offsets = [0, 8], sizes = [4, 8], strides = [1, 1]} : vector<4x16xf32> to vector<4x8xf32>
    %139 = vector.extract_strided_slice %136 {offsets = [0, 0], sizes = [4, 8], strides = [1, 1]} : vector<4x16xf32> to vector<4x8xf32>
    %140 = vector.extract_strided_slice %136 {offsets = [0, 8], sizes = [4, 8], strides = [1, 1]} : vector<4x16xf32> to vector<4x8xf32>
    %141 = vector.extract_strided_slice %17 {offsets = [0, 48], sizes = [4, 8], strides = [1, 1]} : vector<4x128xi32> to vector<4x8xi32>
    %c1_i32_36 = arith.constant 1 : i32
    %142 = vector.broadcast %c1_i32_36 : i32 to vector<4x8xi32>
    %143 = arith.andi %141, %142 : vector<4x8xi32>
    %c1_i32_37 = arith.constant 1 : i32
    %144 = vector.broadcast %c1_i32_37 : i32 to vector<4x8xi32>
    %145 = arith.cmpi eq, %143, %144 : vector<4x8xi32>
    %c2_i32_38 = arith.constant 2 : i32
    %146 = vector.broadcast %c2_i32_38 : i32 to vector<4x8xi32>
    %147 = arith.cmpi sge, %141, %146 : vector<4x8xi32>
    %148 = arith.select %145, %138, %137 : vector<4x8xi1>, vector<4x8xf32>
    %149 = arith.select %145, %140, %139 : vector<4x8xi1>, vector<4x8xf32>
    %150 = arith.select %147, %149, %148 : vector<4x8xi1>, vector<4x8xf32>
    %151 = vector.extract_strided_slice %16 {offsets = [0, 224], sizes = [4, 32], strides = [1, 1]} : vector<4x512xf32> to vector<4x32xf32>
    %152 = vector.extract_strided_slice %151 {offsets = [0, 0], sizes = [4, 16], strides = [1, 1]} : vector<4x32xf32> to vector<4x16xf32>
    %153 = vector.extract_strided_slice %151 {offsets = [0, 16], sizes = [4, 16], strides = [1, 1]} : vector<4x32xf32> to vector<4x16xf32>
    %cst_39 = arith.constant dense<0.000000e+00> : vector<4x16xf32>
    %154 = tpu.matmul %152, %15, %cst_39 {dimension_numbers = #tpu.dot_dimension_numbers<[1], [0], [0], [1], [0, 0, 1, 1], [], []>, precision = #tpu.contract_precision<fp32>} : vector<4x16xf32>, vector<16x16xf32>, vector<4x16xf32> -> vector<4x16xf32>
    %cst_40 = arith.constant dense<0.000000e+00> : vector<4x16xf32>
    %155 = tpu.matmul %153, %15, %cst_40 {dimension_numbers = #tpu.dot_dimension_numbers<[1], [0], [0], [1], [0, 0, 1, 1], [], []>, precision = #tpu.contract_precision<fp32>} : vector<4x16xf32>, vector<16x16xf32>, vector<4x16xf32> -> vector<4x16xf32>
    %156 = vector.extract_strided_slice %154 {offsets = [0, 0], sizes = [4, 8], strides = [1, 1]} : vector<4x16xf32> to vector<4x8xf32>
    %157 = vector.extract_strided_slice %154 {offsets = [0, 8], sizes = [4, 8], strides = [1, 1]} : vector<4x16xf32> to vector<4x8xf32>
    %158 = vector.extract_strided_slice %155 {offsets = [0, 0], sizes = [4, 8], strides = [1, 1]} : vector<4x16xf32> to vector<4x8xf32>
    %159 = vector.extract_strided_slice %155 {offsets = [0, 8], sizes = [4, 8], strides = [1, 1]} : vector<4x16xf32> to vector<4x8xf32>
    %160 = vector.extract_strided_slice %17 {offsets = [0, 56], sizes = [4, 8], strides = [1, 1]} : vector<4x128xi32> to vector<4x8xi32>
    %c1_i32_41 = arith.constant 1 : i32
    %161 = vector.broadcast %c1_i32_41 : i32 to vector<4x8xi32>
    %162 = arith.andi %160, %161 : vector<4x8xi32>
    %c1_i32_42 = arith.constant 1 : i32
    %163 = vector.broadcast %c1_i32_42 : i32 to vector<4x8xi32>
    %164 = arith.cmpi eq, %162, %163 : vector<4x8xi32>
    %c2_i32_43 = arith.constant 2 : i32
    %165 = vector.broadcast %c2_i32_43 : i32 to vector<4x8xi32>
    %166 = arith.cmpi sge, %160, %165 : vector<4x8xi32>
    %167 = arith.select %164, %157, %156 : vector<4x8xi1>, vector<4x8xf32>
    %168 = arith.select %164, %159, %158 : vector<4x8xi1>, vector<4x8xf32>
    %169 = arith.select %166, %168, %167 : vector<4x8xi1>, vector<4x8xf32>
    %170 = vector.extract_strided_slice %16 {offsets = [0, 256], sizes = [4, 32], strides = [1, 1]} : vector<4x512xf32> to vector<4x32xf32>
    %171 = vector.extract_strided_slice %170 {offsets = [0, 0], sizes = [4, 16], strides = [1, 1]} : vector<4x32xf32> to vector<4x16xf32>
    %172 = vector.extract_strided_slice %170 {offsets = [0, 16], sizes = [4, 16], strides = [1, 1]} : vector<4x32xf32> to vector<4x16xf32>
    %cst_44 = arith.constant dense<0.000000e+00> : vector<4x16xf32>
    %173 = tpu.matmul %171, %15, %cst_44 {dimension_numbers = #tpu.dot_dimension_numbers<[1], [0], [0], [1], [0, 0, 1, 1], [], []>, precision = #tpu.contract_precision<fp32>} : vector<4x16xf32>, vector<16x16xf32>, vector<4x16xf32> -> vector<4x16xf32>
    %cst_45 = arith.constant dense<0.000000e+00> : vector<4x16xf32>
    %174 = tpu.matmul %172, %15, %cst_45 {dimension_numbers = #tpu.dot_dimension_numbers<[1], [0], [0], [1], [0, 0, 1, 1], [], []>, precision = #tpu.contract_precision<fp32>} : vector<4x16xf32>, vector<16x16xf32>, vector<4x16xf32> -> vector<4x16xf32>
    %175 = vector.extract_strided_slice %173 {offsets = [0, 0], sizes = [4, 8], strides = [1, 1]} : vector<4x16xf32> to vector<4x8xf32>
    %176 = vector.extract_strided_slice %173 {offsets = [0, 8], sizes = [4, 8], strides = [1, 1]} : vector<4x16xf32> to vector<4x8xf32>
    %177 = vector.extract_strided_slice %174 {offsets = [0, 0], sizes = [4, 8], strides = [1, 1]} : vector<4x16xf32> to vector<4x8xf32>
    %178 = vector.extract_strided_slice %174 {offsets = [0, 8], sizes = [4, 8], strides = [1, 1]} : vector<4x16xf32> to vector<4x8xf32>
    %179 = vector.extract_strided_slice %17 {offsets = [0, 64], sizes = [4, 8], strides = [1, 1]} : vector<4x128xi32> to vector<4x8xi32>
    %c1_i32_46 = arith.constant 1 : i32
    %180 = vector.broadcast %c1_i32_46 : i32 to vector<4x8xi32>
    %181 = arith.andi %179, %180 : vector<4x8xi32>
    %c1_i32_47 = arith.constant 1 : i32
    %182 = vector.broadcast %c1_i32_47 : i32 to vector<4x8xi32>
    %183 = arith.cmpi eq, %181, %182 : vector<4x8xi32>
    %c2_i32_48 = arith.constant 2 : i32
    %184 = vector.broadcast %c2_i32_48 : i32 to vector<4x8xi32>
    %185 = arith.cmpi sge, %179, %184 : vector<4x8xi32>
    %186 = arith.select %183, %176, %175 : vector<4x8xi1>, vector<4x8xf32>
    %187 = arith.select %183, %178, %177 : vector<4x8xi1>, vector<4x8xf32>
    %188 = arith.select %185, %187, %186 : vector<4x8xi1>, vector<4x8xf32>
    %189 = vector.extract_strided_slice %16 {offsets = [0, 288], sizes = [4, 32], strides = [1, 1]} : vector<4x512xf32> to vector<4x32xf32>
    %190 = vector.extract_strided_slice %189 {offsets = [0, 0], sizes = [4, 16], strides = [1, 1]} : vector<4x32xf32> to vector<4x16xf32>
    %191 = vector.extract_strided_slice %189 {offsets = [0, 16], sizes = [4, 16], strides = [1, 1]} : vector<4x32xf32> to vector<4x16xf32>
    %cst_49 = arith.constant dense<0.000000e+00> : vector<4x16xf32>
    %192 = tpu.matmul %190, %15, %cst_49 {dimension_numbers = #tpu.dot_dimension_numbers<[1], [0], [0], [1], [0, 0, 1, 1], [], []>, precision = #tpu.contract_precision<fp32>} : vector<4x16xf32>, vector<16x16xf32>, vector<4x16xf32> -> vector<4x16xf32>
    %cst_50 = arith.constant dense<0.000000e+00> : vector<4x16xf32>
    %193 = tpu.matmul %191, %15, %cst_50 {dimension_numbers = #tpu.dot_dimension_numbers<[1], [0], [0], [1], [0, 0, 1, 1], [], []>, precision = #tpu.contract_precision<fp32>} : vector<4x16xf32>, vector<16x16xf32>, vector<4x16xf32> -> vector<4x16xf32>
    %194 = vector.extract_strided_slice %192 {offsets = [0, 0], sizes = [4, 8], strides = [1, 1]} : vector<4x16xf32> to vector<4x8xf32>
    %195 = vector.extract_strided_slice %192 {offsets = [0, 8], sizes = [4, 8], strides = [1, 1]} : vector<4x16xf32> to vector<4x8xf32>
    %196 = vector.extract_strided_slice %193 {offsets = [0, 0], sizes = [4, 8], strides = [1, 1]} : vector<4x16xf32> to vector<4x8xf32>
    %197 = vector.extract_strided_slice %193 {offsets = [0, 8], sizes = [4, 8], strides = [1, 1]} : vector<4x16xf32> to vector<4x8xf32>
    %198 = vector.extract_strided_slice %17 {offsets = [0, 72], sizes = [4, 8], strides = [1, 1]} : vector<4x128xi32> to vector<4x8xi32>
    %c1_i32_51 = arith.constant 1 : i32
    %199 = vector.broadcast %c1_i32_51 : i32 to vector<4x8xi32>
    %200 = arith.andi %198, %199 : vector<4x8xi32>
    %c1_i32_52 = arith.constant 1 : i32
    %201 = vector.broadcast %c1_i32_52 : i32 to vector<4x8xi32>
    %202 = arith.cmpi eq, %200, %201 : vector<4x8xi32>
    %c2_i32_53 = arith.constant 2 : i32
    %203 = vector.broadcast %c2_i32_53 : i32 to vector<4x8xi32>
    %204 = arith.cmpi sge, %198, %203 : vector<4x8xi32>
    %205 = arith.select %202, %195, %194 : vector<4x8xi1>, vector<4x8xf32>
    %206 = arith.select %202, %197, %196 : vector<4x8xi1>, vector<4x8xf32>
    %207 = arith.select %204, %206, %205 : vector<4x8xi1>, vector<4x8xf32>
    %208 = vector.extract_strided_slice %16 {offsets = [0, 320], sizes = [4, 32], strides = [1, 1]} : vector<4x512xf32> to vector<4x32xf32>
    %209 = vector.extract_strided_slice %208 {offsets = [0, 0], sizes = [4, 16], strides = [1, 1]} : vector<4x32xf32> to vector<4x16xf32>
    %210 = vector.extract_strided_slice %208 {offsets = [0, 16], sizes = [4, 16], strides = [1, 1]} : vector<4x32xf32> to vector<4x16xf32>
    %cst_54 = arith.constant dense<0.000000e+00> : vector<4x16xf32>
    %211 = tpu.matmul %209, %15, %cst_54 {dimension_numbers = #tpu.dot_dimension_numbers<[1], [0], [0], [1], [0, 0, 1, 1], [], []>, precision = #tpu.contract_precision<fp32>} : vector<4x16xf32>, vector<16x16xf32>, vector<4x16xf32> -> vector<4x16xf32>
    %cst_55 = arith.constant dense<0.000000e+00> : vector<4x16xf32>
    %212 = tpu.matmul %210, %15, %cst_55 {dimension_numbers = #tpu.dot_dimension_numbers<[1], [0], [0], [1], [0, 0, 1, 1], [], []>, precision = #tpu.contract_precision<fp32>} : vector<4x16xf32>, vector<16x16xf32>, vector<4x16xf32> -> vector<4x16xf32>
    %213 = vector.extract_strided_slice %211 {offsets = [0, 0], sizes = [4, 8], strides = [1, 1]} : vector<4x16xf32> to vector<4x8xf32>
    %214 = vector.extract_strided_slice %211 {offsets = [0, 8], sizes = [4, 8], strides = [1, 1]} : vector<4x16xf32> to vector<4x8xf32>
    %215 = vector.extract_strided_slice %212 {offsets = [0, 0], sizes = [4, 8], strides = [1, 1]} : vector<4x16xf32> to vector<4x8xf32>
    %216 = vector.extract_strided_slice %212 {offsets = [0, 8], sizes = [4, 8], strides = [1, 1]} : vector<4x16xf32> to vector<4x8xf32>
    %217 = vector.extract_strided_slice %17 {offsets = [0, 80], sizes = [4, 8], strides = [1, 1]} : vector<4x128xi32> to vector<4x8xi32>
    %c1_i32_56 = arith.constant 1 : i32
    %218 = vector.broadcast %c1_i32_56 : i32 to vector<4x8xi32>
    %219 = arith.andi %217, %218 : vector<4x8xi32>
    %c1_i32_57 = arith.constant 1 : i32
    %220 = vector.broadcast %c1_i32_57 : i32 to vector<4x8xi32>
    %221 = arith.cmpi eq, %219, %220 : vector<4x8xi32>
    %c2_i32_58 = arith.constant 2 : i32
    %222 = vector.broadcast %c2_i32_58 : i32 to vector<4x8xi32>
    %223 = arith.cmpi sge, %217, %222 : vector<4x8xi32>
    %224 = arith.select %221, %214, %213 : vector<4x8xi1>, vector<4x8xf32>
    %225 = arith.select %221, %216, %215 : vector<4x8xi1>, vector<4x8xf32>
    %226 = arith.select %223, %225, %224 : vector<4x8xi1>, vector<4x8xf32>
    %227 = vector.extract_strided_slice %16 {offsets = [0, 352], sizes = [4, 32], strides = [1, 1]} : vector<4x512xf32> to vector<4x32xf32>
    %228 = vector.extract_strided_slice %227 {offsets = [0, 0], sizes = [4, 16], strides = [1, 1]} : vector<4x32xf32> to vector<4x16xf32>
    %229 = vector.extract_strided_slice %227 {offsets = [0, 16], sizes = [4, 16], strides = [1, 1]} : vector<4x32xf32> to vector<4x16xf32>
    %cst_59 = arith.constant dense<0.000000e+00> : vector<4x16xf32>
    %230 = tpu.matmul %228, %15, %cst_59 {dimension_numbers = #tpu.dot_dimension_numbers<[1], [0], [0], [1], [0, 0, 1, 1], [], []>, precision = #tpu.contract_precision<fp32>} : vector<4x16xf32>, vector<16x16xf32>, vector<4x16xf32> -> vector<4x16xf32>
    %cst_60 = arith.constant dense<0.000000e+00> : vector<4x16xf32>
    %231 = tpu.matmul %229, %15, %cst_60 {dimension_numbers = #tpu.dot_dimension_numbers<[1], [0], [0], [1], [0, 0, 1, 1], [], []>, precision = #tpu.contract_precision<fp32>} : vector<4x16xf32>, vector<16x16xf32>, vector<4x16xf32> -> vector<4x16xf32>
    %232 = vector.extract_strided_slice %230 {offsets = [0, 0], sizes = [4, 8], strides = [1, 1]} : vector<4x16xf32> to vector<4x8xf32>
    %233 = vector.extract_strided_slice %230 {offsets = [0, 8], sizes = [4, 8], strides = [1, 1]} : vector<4x16xf32> to vector<4x8xf32>
    %234 = vector.extract_strided_slice %231 {offsets = [0, 0], sizes = [4, 8], strides = [1, 1]} : vector<4x16xf32> to vector<4x8xf32>
    %235 = vector.extract_strided_slice %231 {offsets = [0, 8], sizes = [4, 8], strides = [1, 1]} : vector<4x16xf32> to vector<4x8xf32>
    %236 = vector.extract_strided_slice %17 {offsets = [0, 88], sizes = [4, 8], strides = [1, 1]} : vector<4x128xi32> to vector<4x8xi32>
    %c1_i32_61 = arith.constant 1 : i32
    %237 = vector.broadcast %c1_i32_61 : i32 to vector<4x8xi32>
    %238 = arith.andi %236, %237 : vector<4x8xi32>
    %c1_i32_62 = arith.constant 1 : i32
    %239 = vector.broadcast %c1_i32_62 : i32 to vector<4x8xi32>
    %240 = arith.cmpi eq, %238, %239 : vector<4x8xi32>
    %c2_i32_63 = arith.constant 2 : i32
    %241 = vector.broadcast %c2_i32_63 : i32 to vector<4x8xi32>
    %242 = arith.cmpi sge, %236, %241 : vector<4x8xi32>
    %243 = arith.select %240, %233, %232 : vector<4x8xi1>, vector<4x8xf32>
    %244 = arith.select %240, %235, %234 : vector<4x8xi1>, vector<4x8xf32>
    %245 = arith.select %242, %244, %243 : vector<4x8xi1>, vector<4x8xf32>
    %246 = vector.extract_strided_slice %16 {offsets = [0, 384], sizes = [4, 32], strides = [1, 1]} : vector<4x512xf32> to vector<4x32xf32>
    %247 = vector.extract_strided_slice %246 {offsets = [0, 0], sizes = [4, 16], strides = [1, 1]} : vector<4x32xf32> to vector<4x16xf32>
    %248 = vector.extract_strided_slice %246 {offsets = [0, 16], sizes = [4, 16], strides = [1, 1]} : vector<4x32xf32> to vector<4x16xf32>
    %cst_64 = arith.constant dense<0.000000e+00> : vector<4x16xf32>
    %249 = tpu.matmul %247, %15, %cst_64 {dimension_numbers = #tpu.dot_dimension_numbers<[1], [0], [0], [1], [0, 0, 1, 1], [], []>, precision = #tpu.contract_precision<fp32>} : vector<4x16xf32>, vector<16x16xf32>, vector<4x16xf32> -> vector<4x16xf32>
    %cst_65 = arith.constant dense<0.000000e+00> : vector<4x16xf32>
    %250 = tpu.matmul %248, %15, %cst_65 {dimension_numbers = #tpu.dot_dimension_numbers<[1], [0], [0], [1], [0, 0, 1, 1], [], []>, precision = #tpu.contract_precision<fp32>} : vector<4x16xf32>, vector<16x16xf32>, vector<4x16xf32> -> vector<4x16xf32>
    %251 = vector.extract_strided_slice %249 {offsets = [0, 0], sizes = [4, 8], strides = [1, 1]} : vector<4x16xf32> to vector<4x8xf32>
    %252 = vector.extract_strided_slice %249 {offsets = [0, 8], sizes = [4, 8], strides = [1, 1]} : vector<4x16xf32> to vector<4x8xf32>
    %253 = vector.extract_strided_slice %250 {offsets = [0, 0], sizes = [4, 8], strides = [1, 1]} : vector<4x16xf32> to vector<4x8xf32>
    %254 = vector.extract_strided_slice %250 {offsets = [0, 8], sizes = [4, 8], strides = [1, 1]} : vector<4x16xf32> to vector<4x8xf32>
    %255 = vector.extract_strided_slice %17 {offsets = [0, 96], sizes = [4, 8], strides = [1, 1]} : vector<4x128xi32> to vector<4x8xi32>
    %c1_i32_66 = arith.constant 1 : i32
    %256 = vector.broadcast %c1_i32_66 : i32 to vector<4x8xi32>
    %257 = arith.andi %255, %256 : vector<4x8xi32>
    %c1_i32_67 = arith.constant 1 : i32
    %258 = vector.broadcast %c1_i32_67 : i32 to vector<4x8xi32>
    %259 = arith.cmpi eq, %257, %258 : vector<4x8xi32>
    %c2_i32_68 = arith.constant 2 : i32
    %260 = vector.broadcast %c2_i32_68 : i32 to vector<4x8xi32>
    %261 = arith.cmpi sge, %255, %260 : vector<4x8xi32>
    %262 = arith.select %259, %252, %251 : vector<4x8xi1>, vector<4x8xf32>
    %263 = arith.select %259, %254, %253 : vector<4x8xi1>, vector<4x8xf32>
    %264 = arith.select %261, %263, %262 : vector<4x8xi1>, vector<4x8xf32>
    %265 = vector.extract_strided_slice %16 {offsets = [0, 416], sizes = [4, 32], strides = [1, 1]} : vector<4x512xf32> to vector<4x32xf32>
    %266 = vector.extract_strided_slice %265 {offsets = [0, 0], sizes = [4, 16], strides = [1, 1]} : vector<4x32xf32> to vector<4x16xf32>
    %267 = vector.extract_strided_slice %265 {offsets = [0, 16], sizes = [4, 16], strides = [1, 1]} : vector<4x32xf32> to vector<4x16xf32>
    %cst_69 = arith.constant dense<0.000000e+00> : vector<4x16xf32>
    %268 = tpu.matmul %266, %15, %cst_69 {dimension_numbers = #tpu.dot_dimension_numbers<[1], [0], [0], [1], [0, 0, 1, 1], [], []>, precision = #tpu.contract_precision<fp32>} : vector<4x16xf32>, vector<16x16xf32>, vector<4x16xf32> -> vector<4x16xf32>
    %cst_70 = arith.constant dense<0.000000e+00> : vector<4x16xf32>
    %269 = tpu.matmul %267, %15, %cst_70 {dimension_numbers = #tpu.dot_dimension_numbers<[1], [0], [0], [1], [0, 0, 1, 1], [], []>, precision = #tpu.contract_precision<fp32>} : vector<4x16xf32>, vector<16x16xf32>, vector<4x16xf32> -> vector<4x16xf32>
    %270 = vector.extract_strided_slice %268 {offsets = [0, 0], sizes = [4, 8], strides = [1, 1]} : vector<4x16xf32> to vector<4x8xf32>
    %271 = vector.extract_strided_slice %268 {offsets = [0, 8], sizes = [4, 8], strides = [1, 1]} : vector<4x16xf32> to vector<4x8xf32>
    %272 = vector.extract_strided_slice %269 {offsets = [0, 0], sizes = [4, 8], strides = [1, 1]} : vector<4x16xf32> to vector<4x8xf32>
    %273 = vector.extract_strided_slice %269 {offsets = [0, 8], sizes = [4, 8], strides = [1, 1]} : vector<4x16xf32> to vector<4x8xf32>
    %274 = vector.extract_strided_slice %17 {offsets = [0, 104], sizes = [4, 8], strides = [1, 1]} : vector<4x128xi32> to vector<4x8xi32>
    %c1_i32_71 = arith.constant 1 : i32
    %275 = vector.broadcast %c1_i32_71 : i32 to vector<4x8xi32>
    %276 = arith.andi %274, %275 : vector<4x8xi32>
    %c1_i32_72 = arith.constant 1 : i32
    %277 = vector.broadcast %c1_i32_72 : i32 to vector<4x8xi32>
    %278 = arith.cmpi eq, %276, %277 : vector<4x8xi32>
    %c2_i32_73 = arith.constant 2 : i32
    %279 = vector.broadcast %c2_i32_73 : i32 to vector<4x8xi32>
    %280 = arith.cmpi sge, %274, %279 : vector<4x8xi32>
    %281 = arith.select %278, %271, %270 : vector<4x8xi1>, vector<4x8xf32>
    %282 = arith.select %278, %273, %272 : vector<4x8xi1>, vector<4x8xf32>
    %283 = arith.select %280, %282, %281 : vector<4x8xi1>, vector<4x8xf32>
    %284 = vector.extract_strided_slice %16 {offsets = [0, 448], sizes = [4, 32], strides = [1, 1]} : vector<4x512xf32> to vector<4x32xf32>
    %285 = vector.extract_strided_slice %284 {offsets = [0, 0], sizes = [4, 16], strides = [1, 1]} : vector<4x32xf32> to vector<4x16xf32>
    %286 = vector.extract_strided_slice %284 {offsets = [0, 16], sizes = [4, 16], strides = [1, 1]} : vector<4x32xf32> to vector<4x16xf32>
    %cst_74 = arith.constant dense<0.000000e+00> : vector<4x16xf32>
    %287 = tpu.matmul %285, %15, %cst_74 {dimension_numbers = #tpu.dot_dimension_numbers<[1], [0], [0], [1], [0, 0, 1, 1], [], []>, precision = #tpu.contract_precision<fp32>} : vector<4x16xf32>, vector<16x16xf32>, vector<4x16xf32> -> vector<4x16xf32>
    %cst_75 = arith.constant dense<0.000000e+00> : vector<4x16xf32>
    %288 = tpu.matmul %286, %15, %cst_75 {dimension_numbers = #tpu.dot_dimension_numbers<[1], [0], [0], [1], [0, 0, 1, 1], [], []>, precision = #tpu.contract_precision<fp32>} : vector<4x16xf32>, vector<16x16xf32>, vector<4x16xf32> -> vector<4x16xf32>
    %289 = vector.extract_strided_slice %287 {offsets = [0, 0], sizes = [4, 8], strides = [1, 1]} : vector<4x16xf32> to vector<4x8xf32>
    %290 = vector.extract_strided_slice %287 {offsets = [0, 8], sizes = [4, 8], strides = [1, 1]} : vector<4x16xf32> to vector<4x8xf32>
    %291 = vector.extract_strided_slice %288 {offsets = [0, 0], sizes = [4, 8], strides = [1, 1]} : vector<4x16xf32> to vector<4x8xf32>
    %292 = vector.extract_strided_slice %288 {offsets = [0, 8], sizes = [4, 8], strides = [1, 1]} : vector<4x16xf32> to vector<4x8xf32>
    %293 = vector.extract_strided_slice %17 {offsets = [0, 112], sizes = [4, 8], strides = [1, 1]} : vector<4x128xi32> to vector<4x8xi32>
    %c1_i32_76 = arith.constant 1 : i32
    %294 = vector.broadcast %c1_i32_76 : i32 to vector<4x8xi32>
    %295 = arith.andi %293, %294 : vector<4x8xi32>
    %c1_i32_77 = arith.constant 1 : i32
    %296 = vector.broadcast %c1_i32_77 : i32 to vector<4x8xi32>
    %297 = arith.cmpi eq, %295, %296 : vector<4x8xi32>
    %c2_i32_78 = arith.constant 2 : i32
    %298 = vector.broadcast %c2_i32_78 : i32 to vector<4x8xi32>
    %299 = arith.cmpi sge, %293, %298 : vector<4x8xi32>
    %300 = arith.select %297, %290, %289 : vector<4x8xi1>, vector<4x8xf32>
    %301 = arith.select %297, %292, %291 : vector<4x8xi1>, vector<4x8xf32>
    %302 = arith.select %299, %301, %300 : vector<4x8xi1>, vector<4x8xf32>
    %303 = vector.extract_strided_slice %16 {offsets = [0, 480], sizes = [4, 32], strides = [1, 1]} : vector<4x512xf32> to vector<4x32xf32>
    %304 = vector.extract_strided_slice %303 {offsets = [0, 0], sizes = [4, 16], strides = [1, 1]} : vector<4x32xf32> to vector<4x16xf32>
    %305 = vector.extract_strided_slice %303 {offsets = [0, 16], sizes = [4, 16], strides = [1, 1]} : vector<4x32xf32> to vector<4x16xf32>
    %cst_79 = arith.constant dense<0.000000e+00> : vector<4x16xf32>
    %306 = tpu.matmul %304, %15, %cst_79 {dimension_numbers = #tpu.dot_dimension_numbers<[1], [0], [0], [1], [0, 0, 1, 1], [], []>, precision = #tpu.contract_precision<fp32>} : vector<4x16xf32>, vector<16x16xf32>, vector<4x16xf32> -> vector<4x16xf32>
    %cst_80 = arith.constant dense<0.000000e+00> : vector<4x16xf32>
    %307 = tpu.matmul %305, %15, %cst_80 {dimension_numbers = #tpu.dot_dimension_numbers<[1], [0], [0], [1], [0, 0, 1, 1], [], []>, precision = #tpu.contract_precision<fp32>} : vector<4x16xf32>, vector<16x16xf32>, vector<4x16xf32> -> vector<4x16xf32>
    %308 = vector.extract_strided_slice %306 {offsets = [0, 0], sizes = [4, 8], strides = [1, 1]} : vector<4x16xf32> to vector<4x8xf32>
    %309 = vector.extract_strided_slice %306 {offsets = [0, 8], sizes = [4, 8], strides = [1, 1]} : vector<4x16xf32> to vector<4x8xf32>
    %310 = vector.extract_strided_slice %307 {offsets = [0, 0], sizes = [4, 8], strides = [1, 1]} : vector<4x16xf32> to vector<4x8xf32>
    %311 = vector.extract_strided_slice %307 {offsets = [0, 8], sizes = [4, 8], strides = [1, 1]} : vector<4x16xf32> to vector<4x8xf32>
    %312 = vector.extract_strided_slice %17 {offsets = [0, 120], sizes = [4, 8], strides = [1, 1]} : vector<4x128xi32> to vector<4x8xi32>
    %c1_i32_81 = arith.constant 1 : i32
    %313 = vector.broadcast %c1_i32_81 : i32 to vector<4x8xi32>
    %314 = arith.andi %312, %313 : vector<4x8xi32>
    %c1_i32_82 = arith.constant 1 : i32
    %315 = vector.broadcast %c1_i32_82 : i32 to vector<4x8xi32>
    %316 = arith.cmpi eq, %314, %315 : vector<4x8xi32>
    %c2_i32_83 = arith.constant 2 : i32
    %317 = vector.broadcast %c2_i32_83 : i32 to vector<4x8xi32>
    %318 = arith.cmpi sge, %312, %317 : vector<4x8xi32>
    %319 = arith.select %316, %309, %308 : vector<4x8xi1>, vector<4x8xf32>
    %320 = arith.select %316, %311, %310 : vector<4x8xi1>, vector<4x8xf32>
    %321 = arith.select %318, %320, %319 : vector<4x8xi1>, vector<4x8xf32>
    %322 = tpu.concatenate %36, %55, %74, %93, %112, %131, %150, %169, %188, %207, %226, %245, %264, %283, %302, %321 in 1 : vector<4x8xf32>, vector<4x8xf32>, vector<4x8xf32>, vector<4x8xf32>, vector<4x8xf32>, vector<4x8xf32>, vector<4x8xf32>, vector<4x8xf32>, vector<4x8xf32>, vector<4x8xf32>, vector<4x8xf32>, vector<4x8xf32>, vector<4x8xf32>, vector<4x8xf32>, vector<4x8xf32>, vector<4x8xf32> -> vector<4x128xf32>
    %c0_84 = arith.constant 0 : index
    %c0_85 = arith.constant 0 : index
    %323 = vector.load %arg3[%c0_84, %c0_85] : memref<4x128xf32, #tpu.memory_space<vmem>>, vector<4x128xf32>
    tpu.vector_store %arg3[%c0_84, %c0_85], %322 {strides = array<i32>} : memref<4x128xf32, #tpu.memory_space<vmem>>, vector<4x128xf32>,
    return
  }
  func.func @transform_0(%arg0: i32) -> (i32, i32) {
    %c0_i32 = arith.constant 0 : i32
    %c0_i32_0 = arith.constant 0 : i32
    return %arg0, %c0_i32 : i32, i32
  }
  func.func @transform_1(%arg0: i32) -> (i32, i32) {
    %c0_i32 = arith.constant 0 : i32
    %c0_i32_0 = arith.constant 0 : i32
    return %arg0, %c0_i32 : i32, i32
  }
  func.func @transform_2(%arg0: i32) -> (i32, i32) {
    %c0_i32 = arith.constant 0 : i32
    %c0_i32_0 = arith.constant 0 : i32
    return %arg0, %c0_i32 : i32, i32
  }
}

</mosaic_0001>

<bundles_post_ra>
// kernel: tpu_custom_call.1
= control target key start
LH: loop header
LB: loop body
LE: loop exit
PB: predicated region body
PF: predicated region fallthrough
CT: control target
= control target key end

     0   :  { %7 = vsyncpa [#allocation3], 0  ;;  %s19975_s0 = inlined_call_operand.hbm [shape: f32[4,512], index: 0, kind: input, shape index: {}]   ;;  %s19976_s1 = inlined_call_operand.hbm [shape: s32[4,128], index: 1, kind: input, shape index: {}]   ;;  %s19977_s2 = inlined_call_operand.hbm [shape: f32[4,128], index: 2, kind: output, shape index: {}]  }
   0x1   :  { %8 = vsyncpa [#allocation6], 0 }
   0x2   :  { %9 = vsyncpa [#allocation4], 0  ;;  %s18285_s9 = smov [#allocation2]   ;;  %s18286_s11 = smov [#allocation5]  }
   0x3   :  { %s16_s10 = sshll.u32 %s18285_s9, 4  ;;  %s26_s12 = sshll.u32 %s18286_s11, 4  ;;  %s17_s10 = int_to_ptr.vmem [resolvable:$true] %s16_s10  ;;  %s27_s12 = int_to_ptr.vmem [resolvable:$true] %s26_s12 }
   0x4   :  { %s18213_s15 = scalar_lea.hbm %s19975_s0, 256 }
   0x5   :  { %p18214_p0 = scmp.ne.s32.totalorder %s19975_s0, %s18213_s15  ;;  %p18217_p1 = scmp.lt.u32.totalorder %s18213_s15, %s19975_s0 }
   0x7   :  { %p18219_p2 = pnand %p18217_p1, %p18214_p0 }
   0x9   :  { %18222 = shalt.err (!%p18219_p2)
}
   0xa   :  { %s18223_s20 = scalar_lea.vmem %s17_s10, 256  ;;  %p18228_p4 = scmp.lt.s32.totalorder %s17_s10, %s17_s10 }
   0xb   :  { %p18224_p3 = scmp.ne.s32.totalorder %s17_s10, %s18223_s20  ;;  %p18229_p5 = scmp.lt.s32.totalorder %s18223_s20, %s18223_s20 }
   0xd   :  { %p18230_p6 = por %p18229_p5, %p18228_p4 }
   0xf   :  { %p18231_p7 = pnand %p18230_p6, %p18224_p3 }
  0x11   :  { %18234 = shalt.err (!%p18231_p7)
}
  0x12   :  { %19 = dma.hbm_to_vmem [thread:$0]  %s19975_s0, 256, %s17_s10, [#allocation3]  }
  0x13   :  { %s18235_s25 = scalar_lea.hbm %s19976_s1, 64 }
  0x14   :  { %p18236_p8 = scmp.ne.s32.totalorder %s19976_s1, %s18235_s25  ;;  %p18239_p9 = scmp.lt.u32.totalorder %s18235_s25, %s19976_s1 }
  0x16   :  { %p18241_p10 = pnand %p18239_p9, %p18236_p8 }
  0x18   :  { %18244 = shalt.err (!%p18241_p10)
}
  0x19   :  { %s18245_s30 = scalar_lea.vmem %s27_s12, 64  ;;  %p18250_p12 = scmp.lt.s32.totalorder %s27_s12, %s27_s12 }
  0x1a   :  { %p18246_p11 = scmp.ne.s32.totalorder %s27_s12, %s18245_s30  ;;  %p18251_p13 = scmp.lt.s32.totalorder %s18245_s30, %s18245_s30 }
  0x1c   :  { %p18252_p0 = por %p18251_p13, %p18250_p12 }
  0x1e   :  { %p18253_p1 = pnand %p18252_p0, %p18246_p11 }
  0x20   :  { %18256 = shalt.err (!%p18253_p1)
}
  0x21   :  { %29 = dma.hbm_to_vmem [thread:$0]  %s19976_s1, 64, %s27_s12, [#allocation6]  }
  0x22   :  { %18279 = dma.done.wait [#allocation3], 256  }
  0x23   :  { %18280 = vsyncadd [#allocation3], 4294967040 }
  0x24   :  { %18281 = dma.done.wait [#allocation6], 64  }
  0x25   :  { %18282 = vsyncadd [#allocation6], 4294967232  ;;  %v36_v0 = vlaneseq  ;;  %v18287_v1 = vmov 0.0|0.0   ;;  %vm18288_vm0 = vmmov 0   ;;  %v18289_v3 = vmov 0.0   ;;  %v53_v8 = vld [vmem:[#allocation2] sm:$0xff] }
  0x26   :  { %17293 = vmatprep.subr.bf16.mxu0 %v18287_v1  ;;  %17311 = vmatprep.subr.bf16.mxu1 %v18287_v1  ;;  %vm56_vm1 = vcmask 130048   ;;  %s18290_s1 = smov 112   ;;  %s18291_s4 = smov 80   ;;  %v18294_v18 = vmov 1.0|1.0   ;;  %v18398_v33 = vcombine.high %v53_v8, %v53_v8  ;;  %v18426_v34 = vld [vmem:[#allocation2 + $0x8] sm:$0xff] }
  0x27   :  { %v40_v2 = vand.u32 127, %v36_v0  ;;  %15953 = vmatprep.mubr.msk.f32.mxu0 %vm18288_vm0, %v18289_v3  ;;  %15995 = vmatprep.mubr.msk.f32.mxu1 %vm18288_vm0, %v18289_v3  ;;  %v37_v4 = vshrl.u32 %v36_v0, 7  ;;  %v58_v11 = vsel %vm56_vm1, %v53_v8, 0  ;;  %s18292_s5 = smov 96   ;;  %s18293_s6 = smov 64   ;;  %v18451_v43 = vcombine.high %v18426_v34, %v18426_v34 }
  0x28   :  { %519 = vrot.lane.b32.xlu0 %v53_v8, %s18290_s1  ;;  %1459 = vrot.lane.b32.xlu1 %v53_v8, %s18291_s4  ;;  %v127_v12 = vand.u32 4294901760, %v58_v11  ;;  %s18295_s7 = smov 48   ;;  %s18296_s8 = smov 32   ;;  %vm15132_vm8 = vcmask 64512   ;;  %vm15135_vm9 = vcmask 195584   ;;  %vm15137_vm10 = vcmask 261120  }
  0x29   :  { %v15178_v5 = vadd.s32 4294967288, %v40_v2  ;;  %v45_v7 = vmul.u32 2, %v40_v2  ;;  %v38_v9 = vadd.s32 8, %v37_v4  ;;  %vm41_vm2 = vcmp.ge.s32.totalorder %v40_v2, 8  ;;  %s18297_s9 = smov 16   ;;  %s18298_s10 = smov 120  }
  0x2a   :  { %v128_v14 = vsub.f32 %v58_v11, %v127_v12  ;;  %s18299_s11 = smov 8   ;;  %s18300_s12 = smov 24   ;;  %vm15139_vm11 = vcmask 326656   ;;  %vm15141_vm12 = vcmask 392192   ;;  %vm15143_vm13 = vcmask 457728  }
  0x2b   :  { %v43_v6 = vmul.u32 2, %v15178_v5  ;;  %s18301_s13 = smov 40   ;;  %s18302_s14 = smov 56   ;;  %vm15145_vm14 = vcmask 523264   ;;  %vm15147_vm15 = vcmask 588800  }
  0x2c   :  { %996 = vrot.lane.b32.xlu0 %v53_v8, %s18292_s5  ;;  %1933 = vrot.lane.b32.xlu1 %v53_v8, %s18293_s6  ;;  %v129_v19 = vand.u32 4294901760, %v128_v14  ;;  %s18303_s15 = smov 72   ;;  %s18304_s16 = smov 88  }
  0x2d   :  { %v44_v10 = vadd.s32 1, %v43_v6  ;;  %s18305_s17 = smov 104   ;;  %s18306_s18 = smov [#allocation7]  }
  0x2e   :  { %v130_v22 = vsub.f32 %v128_v14, %v129_v19  ;;  %s15168_s19 = sshll.u32 %s18306_s18, 4  ;;  %s15169_s19 = int_to_ptr.vmem [resolvable:$true] %s15168_s19 }
  0x2f   :  { %v46_v13 = vsel %vm41_vm2, %v44_v10, %v45_v7  ;;  %vm15153_vm2 = vcmask 785408   ;;  %s18257_s20 = scalar_lea.vmem %s15169_s19, 64  ;;  %p18262_p3 = scmp.lt.s32.totalorder %s15169_s19, %s15169_s19 }
  0x30   :  { %vm47_vm3 = vcmp.eq.s32.totalorder %v37_v4, %v46_v13  ;;  %vm48_vm4 = vcmp.eq.s32.totalorder %v38_v9, %v46_v13  ;;  %2396 = vrot.lane.b32.xlu0 %v53_v8, %s18295_s7  ;;  %2876 = vrot.lane.b32.xlu1 %v53_v8, %s18296_s8  ;;  %v131_v25 = vand.u32 4294901760, %v130_v22  ;;  %p18258_p2 = scmp.ne.s32.totalorder %s15169_s19, %s18257_s20  ;;  %p18263_p4 = scmp.lt.s32.totalorder %s18257_s20, %s18257_s20 }
  0x31   :  { %vm18356_vm5 = vmpackc.low %vm48_vm4, %vm47_vm3  ;;  %v15179_v16 = vsel %vm47_vm3, 1.0, %v18289_v3  ;;  %v15180_v17 = vsel %vm48_vm4, 1.0, %v18289_v3  ;;  %vm15155_vm3 = vcmask 850944   ;;  %vm15157_vm4 = vcmask 916480  }
  0x32   :  { %17295 = vmatpush3.bf16.msk.msra.mxu0 %vm18356_vm5, %v18294_v18  ;;  %v139_v20 = vsub.f32 %v15179_v16, %v15179_v16  ;;  %v146_v21 = vsub.f32 %v15180_v17, %v15180_v17  ;;  %17313 = vmatpush3.bf16.msk.msra.mxu1 %vm18356_vm5, %v18294_v18  ;;  %p18264_p5 = por %p18263_p4, %p18262_p3 }
  0x33   :  { %17296 = vmatprep.subr.bf16.mxu0 %v18287_v1  ;;  %17314 = vmatprep.subr.bf16.mxu1 %v18287_v1 }
  0x34   :  { %v140_v23 = vand.u32 4294901760, %v139_v20  ;;  %v147_v24 = vand.u32 4294901760, %v146_v21  ;;  %3339 = vrot.lane.b32.xlu0 %v53_v8, %s18297_s9  ;;  %v18380_v31 = vpack.c.bf16 %v146_v21, %v139_v20  ;;  %4281 = vrot.lane.b32.xlu1 %v18398_v33, %s18290_s1  ;;  %p18265_p6 = pnand %p18264_p5, %p18258_p2 }
  0x35   :  { %15954 = vmatmul.mubr.f32.vlgmr.msra.gmra.mrb[0].mxu0 %v131_v25 }
  0x36   :  { %v141_v26 = vsub.f32 %v139_v20, %v140_v23  ;;  %v148_v27 = vsub.f32 %v146_v21, %v147_v24  ;;  %15960 = vmatprep.mubr.msk.f32.mxu0 %vm18288_vm0, %v18289_v3  ;;  %v18392_v32 = vpack.c.bf16 %v147_v24, %v140_v23  ;;  %v3820_v20 = vsel %vm56_vm1, %v18398_v33, 0 }
  0x37   :  { %v18655_v22 = vand.u32 4294901760, %v3820_v20 }
  0x38   :  { %v142_v28 = vand.u32 4294901760, %v141_v26  ;;  %v149_v29 = vand.u32 4294901760, %v148_v27  ;;  %4761 = vrot.lane.b32.xlu0 %v18398_v33, %s18292_s5  ;;  %5224 = vrot.lane.b32.xlu1 %v18398_v33, %s18291_s4 }
  0x39   :  { %v3890_v24 = vsub.f32 %v3820_v20, %v18655_v22 }
  0x3a   :  { %v18376_v30 = vpack.c.bf16 %v149_v29, %v142_v28 }
  0x3b   :  { %v3891_v26 = vand.u32 4294901760, %v3890_v24 }
  0x3c   :  { %17298 = vmatpush3.bf16.msra.mxu0 %v18376_v30  ;;  %5704 = vrot.lane.b32.xlu0 %v18398_v33, %s18293_s6 }
  0x3d   :  { %17299 = vmatprep.subr.bf16.mxu0 %v18287_v1  ;;  %6167 = vrot.lane.b32.xlu1 %v18398_v33, %s18295_s7  ;;  %v3892_v28 = vsub.f32 %v3890_v24, %v3891_v26 }
  0x3f   :  { %15961 = vmatmul.mubr.f32.vlgmr.msra.gmra.mrb[0].mxu0 %v127_v12 }
  0x40   :  { %17301 = vmatpush3.bf16.msra.mxu0 %v18380_v31  ;;  %15967 = vmatprep.mubr.msk.f32.mxu0 %vm18288_vm0, %v18289_v3 }
  0x41   :  { %17302 = vmatprep.subr.bf16.mxu0 %v18287_v1  ;;  %6647 = vrot.lane.b32.xlu0 %v18398_v33, %s18296_s8 }
  0x42   :  { %7110 = vrot.lane.b32.xlu1 %v18398_v33, %s18297_s9  ;;  %v3893_v33 = vand.u32 4294901760, %v3892_v28 }
  0x45   :  { %8052 = vrot.lane.b32.xlu0 %v18426_v34, %s18290_s1 }
  0x46   :  { %8532 = vrot.lane.b32.xlu1 %v18426_v34, %s18292_s5 }
  0x47   :  { %15968 = vmatmul.mubr.f32.vlgmr.msra.gmra.mrb[0].mxu0 %v128_v14 }
  0x48   :  { %17304 = vmatpush3.bf16.msk.msra.mxu0 %vm18356_vm5, %v18294_v18  ;;  %15974 = vmatprep.mubr.msk.f32.mxu0 %vm18288_vm0, %v18289_v3 }
  0x49   :  { %17305 = vmatprep.subr.bf16.mxu0 %v18287_v1  ;;  %8995 = vrot.lane.b32.xlu0 %v18426_v34, %s18291_s4 }
  0x4a   :  { %9475 = vrot.lane.b32.xlu1 %v18426_v34, %s18293_s6 }
  0x4d   :  { %9938 = vrot.lane.b32.xlu0 %v18426_v34, %s18295_s7 }
  0x4e   :  { %10418 = vrot.lane.b32.xlu1 %v18426_v34, %s18296_s8 }
  0x4f   :  { %15975 = vmatmul.mubr.f32.vlgmr.msra.gmra.mrb[0].mxu0 %v129_v19 }
  0x50   :  { %17307 = vmatpush3.bf16.msra.mxu0 %v18392_v32  ;;  %15981 = vmatprep.mubr.msk.f32.mxu0 %vm18288_vm0, %v18289_v3 }
  0x51   :  { %17308 = vmatprep.subr.bf16.mxu0 %v18287_v1  ;;  %10881 = vrot.lane.b32.xlu0 %v18426_v34, %s18297_s9 }
  0x52   :  { %11823 = vrot.lane.b32.xlu1 %v18451_v43, %s18290_s1 }
  0x55   :  { %12303 = vrot.lane.b32.xlu0 %v18451_v43, %s18292_s5 }
  0x56   :  { %12766 = vrot.lane.b32.xlu1 %v18451_v43, %s18291_s4 }
  0x57   :  { %15982 = vmatmul.mubr.f32.vlgmr.msra.gmra.mrb[0].mxu0 %v127_v12 }
  0x58   :  { %17310 = vmatpush3.bf16.msk.msra.mxu0 %vm18356_vm5, %v18294_v18  ;;  %15988 = vmatprep.mubr.msk.f32.mxu0 %vm18288_vm0, %v18289_v3 }
  0x59   :  { %17329 = vmatprep.subr.bf16.mxu0 %v18287_v1  ;;  %13246 = vrot.lane.b32.xlu0 %v18451_v43, %s18293_s6 }
  0x5a   :  { %13709 = vrot.lane.b32.xlu1 %v18451_v43, %s18295_s7 }
  0x5d   :  { %14189 = vrot.lane.b32.xlu0 %v18451_v43, %s18296_s8 }
  0x5e   :  { %14652 = vrot.lane.b32.xlu1 %v18451_v43, %s18297_s9 }
  0x5f   :  { %15989 = vmatmul.mubr.f32.vlgmr.msra.gmra.mrb[0].mxu0 %v127_v12 }
  0x60   :  { %17331 = vmatpush3.bf16.msk.msra.mxu0 %vm18356_vm5, %v18294_v18  ;;  %16037 = vmatprep.mubr.msk.f32.mxu0 %vm18288_vm0, %v18289_v3 }
  0x61   :  { %17332 = vmatprep.subr.bf16.mxu0 %v18287_v1 }
  0x9a   :  { %v520_v35 = vpop.permute.xlu0 %519  ;;  %v1460_v50 = vpop.permute.xlu1 %1459 }
  0x9b   :  { %v521_v36 = vsel %vm56_vm1, %v520_v35, 0  ;;  %v1461_v52 = vsel %vm56_vm1, %v1460_v50, 0 }
  0x9c   :  { %v18441_v37 = vand.u32 4294901760, %v521_v36  ;;  %v18503_v54 = vand.u32 4294901760, %v1461_v52 }
  0x9e   :  { %v591_v38 = vsub.f32 %v521_v36, %v18441_v37  ;;  %v997_v39 = vpop.permute.xlu0 %996  ;;  %v1934_v51 = vpop.permute.xlu1 %1933  ;;  %v1531_v56 = vsub.f32 %v1461_v52, %v18503_v54 }
  0x9f   :  { %v998_v40 = vsel %vm56_vm1, %v997_v39, 0  ;;  %v1935_v53 = vsel %vm56_vm1, %v1934_v51, 0 }
  0xa0   :  { %v592_v41 = vand.u32 4294901760, %v591_v38  ;;  %v18447_v42 = vand.u32 4294901760, %v998_v40  ;;  %v18506_v55 = vand.u32 4294901760, %v1935_v53  ;;  %v1532_v58 = vand.u32 4294901760, %v1531_v56 }
  0xa2   :  { %v1068_v44 = vsub.f32 %v998_v40, %v18447_v42  ;;  %v593_v45 = vsub.f32 %v591_v38, %v592_v41  ;;  %v2005_v57 = vsub.f32 %v1935_v53, %v18506_v55  ;;  %v1533_v60 = vsub.f32 %v1531_v56, %v1532_v58  ;;  %v2397_v0 = vpop.permute.xlu0 %2396  ;;  %v2877_v2 = vpop.permute.xlu1 %2876 }
  0xa3   :  { %v2398_v4 = vsel %vm56_vm1, %v2397_v0, 0  ;;  %v2878_v5 = vsel %vm56_vm1, %v2877_v2, 0 }
  0xa4   :  { %v1069_v46 = vand.u32 4294901760, %v1068_v44  ;;  %v594_v47 = vand.u32 4294901760, %v593_v45  ;;  %v2006_v59 = vand.u32 4294901760, %v2005_v57  ;;  %v1534_v62 = vand.u32 4294901760, %v1533_v60 }
  0xa5   :  { %v18577_v6 = vand.u32 4294901760, %v2398_v4  ;;  %v18580_v7 = vand.u32 4294901760, %v2878_v5 }
  0xa6   :  { %v1070_v48 = vsub.f32 %v1068_v44, %v1069_v46  ;;  %15996 = vmatmul.mubr.f32.vlgmr.msra.gmra.mrb[0].mxu1 %v594_v47  ;;  %v2007_v61 = vsub.f32 %v2005_v57, %v2006_v59  ;;  %v3340_v17 = vpop.permute.xlu0 %3339 }
  0xa7   :  { %17316 = vmatpush3.bf16.msra.mxu1 %v18376_v30  ;;  %16002 = vmatprep.mubr.msk.f32.mxu1 %vm18288_vm0, %v18289_v3  ;;  %v2468_v8 = vsub.f32 %v2398_v4, %v18577_v6  ;;  %v2948_v9 = vsub.f32 %v2878_v5, %v18580_v7  ;;  %v3341_v19 = vsel %vm56_vm1, %v3340_v17, 0 }
  0xa8   :  { %v1071_v49 = vand.u32 4294901760, %v1070_v48  ;;  %17317 = vmatprep.subr.bf16.mxu1 %v18287_v1  ;;  %v2008_v63 = vand.u32 4294901760, %v2007_v61  ;;  %v18652_v21 = vand.u32 4294901760, %v3341_v19 }
  0xa9   :  { %v2469_v10 = vand.u32 4294901760, %v2468_v8  ;;  %v2949_v11 = vand.u32 4294901760, %v2948_v9 }
  0xaa   :  { %16038 = vmatmul.mubr.f32.vlgmr.msra.gmra.mrb[2].mxu0 %v1071_v49  ;;  %v3411_v23 = vsub.f32 %v3341_v19, %v18652_v21 }
  0xab   :  { %17334 = vmatpush3.bf16.msra.mxu0 %v18376_v30  ;;  %16044 = vmatprep.mubr.msk.f32.mxu0 %vm18288_vm0, %v18289_v3  ;;  %v2470_v12 = vsub.f32 %v2468_v8, %v2469_v10  ;;  %v2950_v13 = vsub.f32 %v2948_v9, %v2949_v11 }
  0xac   :  { %17335 = vmatprep.subr.bf16.mxu0 %v18287_v1  ;;  %v3412_v25 = vand.u32 4294901760, %v3411_v23 }
  0xad   :  { %v2471_v14 = vand.u32 4294901760, %v2470_v12  ;;  %v2951_v16 = vand.u32 4294901760, %v2950_v13 }
  0xae   :  { %16003 = vmatmul.mubr.f32.vlgmr.msra.gmra.mrb[0].mxu1 %v18441_v37  ;;  %v3413_v27 = vsub.f32 %v3411_v23, %v3412_v25 }
  0xaf   :  { %17319 = vmatpush3.bf16.msra.mxu1 %v18380_v31  ;;  %16009 = vmatprep.mubr.msk.f32.mxu1 %vm18288_vm0, %v18289_v3 }
  0xb0   :  { %17320 = vmatprep.subr.bf16.mxu1 %v18287_v1  ;;  %v3414_v29 = vand.u32 4294901760, %v3413_v27 }
  0xb2   :  { %16045 = vmatmul.mubr.f32.vlgmr.msra.gmra.mrb[2].mxu0 %v18447_v42 }
  0xb3   :  { %17337 = vmatpush3.bf16.msra.mxu0 %v18380_v31  ;;  %16051 = vmatprep.mubr.msk.f32.mxu0 %vm18288_vm0, %v18289_v3 }
  0xb4   :  { %17338 = vmatprep.subr.bf16.mxu0 %v18287_v1 }
  0xb6   :  { %16010 = vmatmul.mubr.f32.vlgmr.msra.gmra.mrb[0].mxu1 %v591_v38  ;;  %v4762_v38 = vpop.permute.xlu0 %4761 }
  0xb7   :  { %17322 = vmatpush3.bf16.msk.msra.mxu1 %vm18356_vm5, %v18294_v18  ;;  %16016 = vmatprep.mubr.msk.f32.mxu1 %vm18288_vm0, %v18289_v3  ;;  %v4763_v40 = vsel %vm56_vm1, %v4762_v38, 0 }
  0xb8   :  { %17323 = vmatprep.subr.bf16.mxu1 %v18287_v1 }
  0xba   :  { %16052 = vmatmul.mubr.f32.vlgmr.msra.gmra.mrb[2].mxu0 %v1068_v44  ;;  %v5705_v53 = vpop.permute.xlu0 %5704 }
  0xbb   :  { %17340 = vmatpush3.bf16.msk.msra.mxu0 %vm18356_vm5, %v18294_v18  ;;  %16058 = vmatprep.mubr.msk.f32.mxu0 %vm18288_vm0, %v18289_v3 }
  0xbc   :  { %17341 = vmatprep.subr.bf16.mxu0 %v18287_v1 }
  0xbe   :  { %16017 = vmatmul.mubr.f32.vlgmr.msra.gmra.mrb[0].mxu1 %v592_v41 }
  0xbf   :  { %17325 = vmatpush3.bf16.msra.mxu1 %v18392_v32  ;;  %16023 = vmatprep.mubr.msk.f32.mxu1 %vm18288_vm0, %v18289_v3 }
  0xc0   :  { %17326 = vmatprep.subr.bf16.mxu1 %v18287_v1 }
  0xc2   :  { %16059 = vmatmul.mubr.f32.vlgmr.msra.gmra.mrb[2].mxu0 %v1069_v46 }
  0xc3   :  { %17343 = vmatpush3.bf16.msra.mxu0 %v18392_v32  ;;  %16065 = vmatprep.mubr.msk.f32.mxu0 %vm18288_vm0, %v18289_v3 }
  0xc4   :  { %17344 = vmatprep.subr.bf16.mxu0 %v18287_v1 }
  0xc6   :  { %16024 = vmatmul.mubr.f32.vlgmr.msra.gmra.mrb[0].mxu1 %v18441_v37 }
  0xc7   :  { %17328 = vmatpush3.bf16.msk.msra.mxu1 %vm18356_vm5, %v18294_v18  ;;  %16030 = vmatprep.mubr.msk.f32.mxu1 %vm18288_vm0, %v18289_v3 }
  0xc8   :  { %17347 = vmatprep.subr.bf16.mxu1 %v18287_v1 }
  0xca   :  { %16066 = vmatmul.mubr.f32.vlgmr.msra.gmra.mrb[2].mxu0 %v18447_v42 }
  0xcb   :  { %17346 = vmatpush3.bf16.msk.msra.mxu0 %vm18356_vm5, %v18294_v18  ;;  %16072 = vmatprep.mubr.msk.f32.mxu0 %vm18288_vm0, %v18289_v3 }
  0xcc   :  { %17365 = vmatprep.subr.bf16.mxu0 %v18287_v1 }
  0xce   :  { %16031 = vmatmul.mubr.f32.vlgmr.msra.gmra.mrb[0].mxu1 %v18441_v37  ;;  %v4282_v37 = vpop.permute.xlu1 %4281 }
  0xcf   :  { %17349 = vmatpush3.bf16.msk.msra.mxu1 %vm18356_vm5, %v18294_v18  ;;  %16079 = vmatprep.mubr.msk.f32.mxu1 %vm18288_vm0, %v18289_v3  ;;  %v4283_v39 = vsel %vm56_vm1, %v4282_v37, 0 }
  0xd0   :  { %17350 = vmatprep.subr.bf16.mxu1 %v18287_v1  ;;  %v18730_v41 = vand.u32 4294901760, %v4283_v39 }
  0xd2   :  { %16073 = vmatmul.mubr.f32.vlgmr.msra.gmra.mrb[2].mxu0 %v18447_v42  ;;  %16080 = vmatmul.mubr.f32.vlgmr.msra.gmra.mrb[2].mxu1 %v1534_v62  ;;  %v18733_v42 = vand.u32 4294901760, %v4763_v40  ;;  %v4353_v44 = vsub.f32 %v4283_v39, %v18730_v41  ;;  %v5225_v52 = vpop.permute.xlu1 %5224 }
  0xd3   :  { %17352 = vmatpush3.bf16.msra.mxu1 %v18376_v30  ;;  %17367 = vmatpush3.bf16.msk.msra.mxu0 %vm18356_vm5, %v18294_v18 }
  0xd4   :  { %16121 = vmatprep.mubr.msk.f32.mxu0 %vm18288_vm0, %v18289_v3  ;;  %16086 = vmatprep.mubr.msk.f32.mxu1 %vm18288_vm0, %v18289_v3  ;;  %v4833_v45 = vsub.f32 %v4763_v40, %v18733_v42  ;;  %v4354_v46 = vand.u32 4294901760, %v4353_v44 }
  0xd5   :  { %17353 = vmatprep.subr.bf16.mxu1 %v18287_v1  ;;  %17368 = vmatprep.subr.bf16.mxu0 %v18287_v1 }
  0xd6   :  { %16122 = vmatmul.mubr.f32.vlgmr.msra.gmra.mrb[4].mxu0 %v2008_v63  ;;  %v4834_v47 = vand.u32 4294901760, %v4833_v45  ;;  %v4355_v48 = vsub.f32 %v4353_v44, %v4354_v46  ;;  %v6168_v4 = vpop.permute.xlu1 %6167 }
  0xd7   :  { %17370 = vmatpush3.bf16.msra.mxu0 %v18376_v30  ;;  %16128 = vmatprep.mubr.msk.f32.mxu0 %vm18288_vm0, %v18289_v3  ;;  %v6169_v5 = vsel %vm56_vm1, %v6168_v4, 0 }
  0xd8   :  { %17371 = vmatprep.subr.bf16.mxu0 %v18287_v1  ;;  %v4835_v49 = vsub.f32 %v4833_v45, %v4834_v47  ;;  %v4356_v50 = vand.u32 4294901760, %v4355_v48 }
  0xda   :  { %16087 = vmatmul.mubr.f32.vlgmr.msra.gmra.mrb[2].mxu1 %v18503_v54  ;;  %v4836_v51 = vand.u32 4294901760, %v4835_v49 }
  0xdb   :  { %17355 = vmatpush3.bf16.msra.mxu1 %v18380_v31  ;;  %16093 = vmatprep.mubr.msk.f32.mxu1 %vm18288_vm0, %v18289_v3 }
  0xdc   :  { %17356 = vmatprep.subr.bf16.mxu1 %v18287_v1 }
  0xde   :  { %16129 = vmatmul.mubr.f32.vlgmr.msra.gmra.mrb[4].mxu0 %v18506_v55 }
  0xdf   :  { %17373 = vmatpush3.bf16.msra.mxu0 %v18380_v31  ;;  %16135 = vmatprep.mubr.msk.f32.mxu0 %vm18288_vm0, %v18289_v3 }
  0xe0   :  { %17374 = vmatprep.subr.bf16.mxu0 %v18287_v1 }
  0xe2   :  { %16094 = vmatmul.mubr.f32.vlgmr.msra.gmra.mrb[2].mxu1 %v1531_v56 }
  0xe3   :  { %17358 = vmatpush3.bf16.msk.msra.mxu1 %vm18356_vm5, %v18294_v18  ;;  %16100 = vmatprep.mubr.msk.f32.mxu1 %vm18288_vm0, %v18289_v3 }
  0xe4   :  { %17359 = vmatprep.subr.bf16.mxu1 %v18287_v1 }
  0xe6   :  { %16136 = vmatmul.mubr.f32.vlgmr.msra.gmra.mrb[4].mxu0 %v2005_v57 }
  0xe7   :  { %17376 = vmatpush3.bf16.msk.msra.mxu0 %vm18356_vm5, %v18294_v18  ;;  %16142 = vmatprep.mubr.msk.f32.mxu0 %vm18288_vm0, %v18289_v3 }
  0xe8   :  { %17377 = vmatprep.subr.bf16.mxu0 %v18287_v1 }
  0xea   :  { %16101 = vmatmul.mubr.f32.vlgmr.msra.gmra.mrb[2].mxu1 %v1532_v58 }
  0xeb   :  { %17361 = vmatpush3.bf16.msra.mxu1 %v18392_v32  ;;  %16107 = vmatprep.mubr.msk.f32.mxu1 %vm18288_vm0, %v18289_v3 }
  0xec   :  { %17362 = vmatprep.subr.bf16.mxu1 %v18287_v1 }
  0xee   :  { %16143 = vmatmul.mubr.f32.vlgmr.msra.gmra.mrb[4].mxu0 %v2006_v59 }
  0xef   :  { %17379 = vmatpush3.bf16.msra.mxu0 %v18392_v32  ;;  %16149 = vmatprep.mubr.msk.f32.mxu0 %vm18288_vm0, %v18289_v3 }
  0xf0   :  { %17380 = vmatprep.subr.bf16.mxu0 %v18287_v1 }
  0xf2   :  { %16108 = vmatmul.mubr.f32.vlgmr.msra.gmra.mrb[2].mxu1 %v18503_v54 }
  0xf3   :  { %17364 = vmatpush3.bf16.msk.msra.mxu1 %vm18356_vm5, %v18294_v18  ;;  %16114 = vmatprep.mubr.msk.f32.mxu1 %vm18288_vm0, %v18289_v3 }
  0xf4   :  { %17383 = vmatprep.subr.bf16.mxu1 %v18287_v1 }
  0xf6   :  { %16150 = vmatmul.mubr.f32.vlgmr.msra.gmra.mrb[4].mxu0 %v18506_v55 }
  0xf7   :  { %17382 = vmatpush3.bf16.msk.msra.mxu0 %vm18356_vm5, %v18294_v18  ;;  %16156 = vmatprep.mubr.msk.f32.mxu0 %vm18288_vm0, %v18289_v3 }
  0xf8   :  { %17401 = vmatprep.subr.bf16.mxu0 %v18287_v1 }
  0xfa   :  { %16115 = vmatmul.mubr.f32.vlgmr.msra.gmra.mrb[2].mxu1 %v18503_v54  ;;  %v5226_v54 = vsel %vm56_vm1, %v5225_v52, 0 }
  0xfb   :  { %17385 = vmatpush3.bf16.msk.msra.mxu1 %vm18356_vm5, %v18294_v18  ;;  %16163 = vmatprep.mubr.msk.f32.mxu1 %vm18288_vm0, %v18289_v3  ;;  %v18804_v56 = vand.u32 4294901760, %v5226_v54 }
  0xfc   :  { %17386 = vmatprep.subr.bf16.mxu1 %v18287_v1 }
  0xfd   :  { %v5296_v58 = vsub.f32 %v5226_v54, %v18804_v56 }
  0xfe   :  { %16157 = vmatmul.mubr.f32.vlgmr.msra.gmra.mrb[4].mxu0 %v18506_v55  ;;  %16164 = vmatmul.mubr.f32.vlgmr.msra.gmra.mrb[4].mxu1 %v2471_v14  ;;  %v5706_v55 = vsel %vm56_vm1, %v5705_v53, 0 }
  0xff   :  { %17388 = vmatpush3.bf16.msra.mxu1 %v18376_v30  ;;  %17403 = vmatpush3.bf16.msk.msra.mxu0 %vm18356_vm5, %v18294_v18  ;;  %v18807_v57 = vand.u32 4294901760, %v5706_v55  ;;  %v5297_v60 = vand.u32 4294901760, %v5296_v58 }
 0x100   :  { %16205 = vmatprep.mubr.msk.f32.mxu0 %vm18288_vm0, %v18289_v3  ;;  %16170 = vmatprep.mubr.msk.f32.mxu1 %vm18288_vm0, %v18289_v3 }
 0x101   :  { %17389 = vmatprep.subr.bf16.mxu1 %v18287_v1  ;;  %17404 = vmatprep.subr.bf16.mxu0 %v18287_v1  ;;  %v5776_v59 = vsub.f32 %v5706_v55, %v18807_v57  ;;  %v5298_v62 = vsub.f32 %v5296_v58, %v5297_v60 }
 0x102   :  { %16206 = vmatmul.mubr.f32.vlgmr.msra.gmra.mrb[6].mxu0 %v2951_v16 }
 0x103   :  { %17406 = vmatpush3.bf16.msra.mxu0 %v18376_v30  ;;  %16212 = vmatprep.mubr.msk.f32.mxu0 %vm18288_vm0, %v18289_v3  ;;  %v5777_v61 = vand.u32 4294901760, %v5776_v59  ;;  %v5299_v0 = vand.u32 4294901760, %v5298_v62 }
 0x104   :  { %17407 = vmatprep.subr.bf16.mxu0 %v18287_v1 }
 0x105   :  { %v5778_v63 = vsub.f32 %v5776_v59, %v5777_v61 }
 0x106   :  { %16171 = vmatmul.mubr.f32.vlgmr.msra.gmra.mrb[4].mxu1 %v18577_v6 }
 0x107   :  { %17391 = vmatpush3.bf16.msra.mxu1 %v18380_v31  ;;  %16177 = vmatprep.mubr.msk.f32.mxu1 %vm18288_vm0, %v18289_v3  ;;  %v5779_v2 = vand.u32 4294901760, %v5778_v63 }
 0x108   :  { %17392 = vmatprep.subr.bf16.mxu1 %v18287_v1 }
 0x10a   :  { %16213 = vmatmul.mubr.f32.vlgmr.msra.gmra.mrb[6].mxu0 %v18580_v7 }
 0x10b   :  { %17409 = vmatpush3.bf16.msra.mxu0 %v18380_v31  ;;  %16219 = vmatprep.mubr.msk.f32.mxu0 %vm18288_vm0, %v18289_v3 }
 0x10c   :  { %17410 = vmatprep.subr.bf16.mxu0 %v18287_v1 }
 0x10e   :  { %16178 = vmatmul.mubr.f32.vlgmr.msra.gmra.mrb[4].mxu1 %v2468_v8  ;;  %v18878_v8 = vand.u32 4294901760, %v6169_v5 }
 0x10f   :  { %17394 = vmatpush3.bf16.msk.msra.mxu1 %vm18356_vm5, %v18294_v18  ;;  %16184 = vmatprep.mubr.msk.f32.mxu1 %vm18288_vm0, %v18289_v3 }
 0x110   :  { %17395 = vmatprep.subr.bf16.mxu1 %v18287_v1 }
 0x112   :  { %16220 = vmatmul.mubr.f32.vlgmr.msra.gmra.mrb[6].mxu0 %v2948_v9 }
 0x113   :  { %17412 = vmatpush3.bf16.msk.msra.mxu0 %vm18356_vm5, %v18294_v18  ;;  %16226 = vmatprep.mubr.msk.f32.mxu0 %vm18288_vm0, %v18289_v3 }
 0x114   :  { %17413 = vmatprep.subr.bf16.mxu0 %v18287_v1 }
 0x116   :  { %16185 = vmatmul.mubr.f32.vlgmr.msra.gmra.mrb[4].mxu1 %v2469_v10  ;;  %v6239_v10 = vsub.f32 %v6169_v5, %v18878_v8 }
 0x117   :  { %17397 = vmatpush3.bf16.msra.mxu1 %v18392_v32  ;;  %16191 = vmatprep.mubr.msk.f32.mxu1 %vm18288_vm0, %v18289_v3 }
 0x118   :  { %17398 = vmatprep.subr.bf16.mxu1 %v18287_v1  ;;  %v6240_v14 = vand.u32 4294901760, %v6239_v10 }
 0x11a   :  { %16227 = vmatmul.mubr.f32.vlgmr.msra.gmra.mrb[6].mxu0 %v2949_v11  ;;  %v6241_v20 = vsub.f32 %v6239_v10, %v6240_v14 }
 0x11b   :  { %17415 = vmatpush3.bf16.msra.mxu0 %v18392_v32  ;;  %16233 = vmatprep.mubr.msk.f32.mxu0 %vm18288_vm0, %v18289_v3 }
 0x11c   :  { %17416 = vmatprep.subr.bf16.mxu0 %v18287_v1 }
 0x11e   :  { %16192 = vmatmul.mubr.f32.vlgmr.msra.gmra.mrb[4].mxu1 %v18577_v6 }
 0x11f   :  { %17400 = vmatpush3.bf16.msk.msra.mxu1 %vm18356_vm5, %v18294_v18  ;;  %16198 = vmatprep.mubr.msk.f32.mxu1 %vm18288_vm0, %v18289_v3 }
 0x120   :  { %17419 = vmatprep.subr.bf16.mxu1 %v18287_v1 }
 0x122   :  { %16234 = vmatmul.mubr.f32.vlgmr.msra.gmra.mrb[6].mxu0 %v18580_v7 }
 0x123   :  { %17418 = vmatpush3.bf16.msk.msra.mxu0 %vm18356_vm5, %v18294_v18  ;;  %16240 = vmatprep.mubr.msk.f32.mxu0 %vm18288_vm0, %v18289_v3 }
 0x124   :  { %17437 = vmatprep.subr.bf16.mxu0 %v18287_v1 }
 0x126   :  { %16199 = vmatmul.mubr.f32.vlgmr.msra.gmra.mrb[4].mxu1 %v18577_v6  ;;  %v6648_v6 = vpop.permute.xlu0 %6647 }
 0x127   :  { %17421 = vmatpush3.bf16.msk.msra.mxu1 %vm18356_vm5, %v18294_v18  ;;  %16247 = vmatprep.mubr.msk.f32.mxu1 %vm18288_vm0, %v18289_v3 }
 0x128   :  { %17422 = vmatprep.subr.bf16.mxu1 %v18287_v1 }
 0x12a   :  { %16241 = vmatmul.mubr.f32.vlgmr.msra.gmra.mrb[6].mxu0 %v18580_v7  ;;  %16248 = vmatmul.mubr.f32.vlgmr.msra.gmra.mrb[6].mxu1 %v3414_v29  ;;  %v6649_v7 = vsel %vm56_vm1, %v6648_v6, 0 }
 0x12b   :  { %17424 = vmatpush3.bf16.msra.mxu1 %v18376_v30  ;;  %17439 = vmatpush3.bf16.msk.msra.mxu0 %vm18356_vm5, %v18294_v18  ;;  %v18881_v9 = vand.u32 4294901760, %v6649_v7 }
 0x12c   :  { %16289 = vmatprep.mubr.msk.f32.mxu0 %vm18288_vm0, %v18289_v3  ;;  %16254 = vmatprep.mubr.msk.f32.mxu1 %vm18288_vm0, %v18289_v3 }
 0x12d   :  { %17425 = vmatprep.subr.bf16.mxu1 %v18287_v1  ;;  %17440 = vmatprep.subr.bf16.mxu0 %v18287_v1  ;;  %v6719_v12 = vsub.f32 %v6649_v7, %v18881_v9 }
 0x12e   :  { %16290 = vmatmul.mubr.f32.vlgmr.msra.gmra.mrb[8].mxu0 %v3893_v33 }
 0x12f   :  { %17442 = vmatpush3.bf16.msra.mxu0 %v18376_v30  ;;  %16296 = vmatprep.mubr.msk.f32.mxu0 %vm18288_vm0, %v18289_v3  ;;  %v6720_v17 = vand.u32 4294901760, %v6719_v12 }
 0x130   :  { %17443 = vmatprep.subr.bf16.mxu0 %v18287_v1 }
 0x132   :  { %v18695_v35 = vpop.f32.mrb[0].mxu0  ;;  %16255 = vmatmul.mubr.f32.vlgmr.msra.gmra.mrb[6].mxu1 %v18652_v21 }
 0x133   :  { %986 = vrot.lane.b32.xlu0 %v18695_v35, %s18298_s10  ;;  %v15990_v36 = vpop.f32.mrb[1].mxu0  ;;  %17427 = vmatpush3.bf16.msra.mxu1 %v18380_v31 }
 0x134   :  { %16261 = vmatprep.mubr.msk.f32.mxu1 %vm18288_vm0, %v18289_v3  ;;  %17428 = vmatprep.subr.bf16.mxu1 %v18287_v1 }
 0x136   :  { %16297 = vmatmul.mubr.f32.vlgmr.msra.gmra.mrb[8].mxu0 %v18655_v22 }
 0x137   :  { %17445 = vmatpush3.bf16.msra.mxu0 %v18380_v31  ;;  %16303 = vmatprep.mubr.msk.f32.mxu0 %vm18288_vm0, %v18289_v3 }
 0x138   :  { %17446 = vmatprep.subr.bf16.mxu0 %v18287_v1 }
 0x13a   :  { %16262 = vmatmul.mubr.f32.vlgmr.msra.gmra.mrb[6].mxu1 %v3411_v23 }
 0x13b   :  { %17430 = vmatpush3.bf16.msk.msra.mxu1 %vm18356_vm5, %v18294_v18  ;;  %16268 = vmatprep.mubr.msk.f32.mxu1 %vm18288_vm0, %v18289_v3 }
 0x13c   :  { %17431 = vmatprep.subr.bf16.mxu1 %v18287_v1 }
 0x13e   :  { %16304 = vmatmul.mubr.f32.vlgmr.msra.gmra.mrb[8].mxu0 %v3890_v24  ;;  %v7111_v24 = vpop.permute.xlu1 %7110 }
 0x13f   :  { %17448 = vmatpush3.bf16.msk.msra.mxu0 %vm18356_vm5, %v18294_v18  ;;  %16310 = vmatprep.mubr.msk.f32.mxu0 %vm18288_vm0, %v18289_v3 }
 0x140   :  { %17449 = vmatprep.subr.bf16.mxu0 %v18287_v1 }
 0x142   :  { %16269 = vmatmul.mubr.f32.vlgmr.msra.gmra.mrb[6].mxu1 %v3412_v25  ;;  %v7112_v25 = vsel %vm56_vm1, %v7111_v24, 0 }
 0x143   :  { %17433 = vmatpush3.bf16.msra.mxu1 %v18392_v32  ;;  %16275 = vmatprep.mubr.msk.f32.mxu1 %vm18288_vm0, %v18289_v3  ;;  %v18961_v27 = vand.u32 4294901760, %v7112_v25 }
 0x144   :  { %17434 = vmatprep.subr.bf16.mxu1 %v18287_v1 }
 0x145   :  { %v7182_v29 = vsub.f32 %v7112_v25, %v18961_v27 }
 0x146   :  { %16311 = vmatmul.mubr.f32.vlgmr.msra.gmra.mrb[8].mxu0 %v3891_v26  ;;  %v7591_v26 = vsel %vm56_vm1, %v18426_v34, 0 }
 0x147   :  { %17451 = vmatpush3.bf16.msra.mxu0 %v18392_v32  ;;  %16317 = vmatprep.mubr.msk.f32.mxu0 %vm18288_vm0, %v18289_v3  ;;  %v18964_v28 = vand.u32 4294901760, %v7591_v26  ;;  %v7183_v37 = vand.u32 4294901760, %v7182_v29 }
 0x148   :  { %17452 = vmatprep.subr.bf16.mxu0 %v18287_v1 }
 0x149   :  { %v7661_v34 = vsub.f32 %v7591_v26, %v18964_v28 }
 0x14a   :  { %16276 = vmatmul.mubr.f32.vlgmr.msra.gmra.mrb[6].mxu1 %v18652_v21 }
 0x14b   :  { %17436 = vmatpush3.bf16.msk.msra.mxu1 %vm18356_vm5, %v18294_v18  ;;  %16282 = vmatprep.mubr.msk.f32.mxu1 %vm18288_vm0, %v18289_v3  ;;  %v7662_v40 = vand.u32 4294901760, %v7661_v34 }
 0x14c   :  { %17455 = vmatprep.subr.bf16.mxu1 %v18287_v1 }
 0x14e   :  { %16318 = vmatmul.mubr.f32.vlgmr.msra.gmra.mrb[8].mxu0 %v18655_v22 }
 0x14f   :  { %17454 = vmatpush3.bf16.msk.msra.mxu0 %vm18356_vm5, %v18294_v18  ;;  %16324 = vmatprep.mubr.msk.f32.mxu0 %vm18288_vm0, %v18289_v3 }
 0x150   :  { %17473 = vmatprep.subr.bf16.mxu0 %v18287_v1 }
 0x152   :  { %16283 = vmatmul.mubr.f32.vlgmr.msra.gmra.mrb[6].mxu1 %v18652_v21  ;;  %v6721_v21 = vsub.f32 %v6719_v12, %v6720_v17 }
 0x153   :  { %17457 = vmatpush3.bf16.msk.msra.mxu1 %vm18356_vm5, %v18294_v18  ;;  %16331 = vmatprep.mubr.msk.f32.mxu1 %vm18288_vm0, %v18289_v3 }
 0x154   :  { %17458 = vmatprep.subr.bf16.mxu1 %v18287_v1  ;;  %v6722_v23 = vand.u32 4294901760, %v6721_v21 }
 0x156   :  { %16325 = vmatmul.mubr.f32.vlgmr.msra.gmra.mrb[8].mxu0 %v18655_v22  ;;  %16332 = vmatmul.mubr.f32.vlgmr.msra.gmra.mrb[8].mxu1 %v4356_v50  ;;  %v6242_v22 = vand.u32 4294901760, %v6241_v20 }
 0x157   :  { %17460 = vmatpush3.bf16.msra.mxu1 %v18376_v30  ;;  %17475 = vmatpush3.bf16.msk.msra.mxu0 %vm18356_vm5, %v18294_v18 }
 0x158   :  { %16373 = vmatprep.mubr.msk.f32.mxu0 %vm18288_vm0, %v18289_v3  ;;  %16338 = vmatprep.mubr.msk.f32.mxu1 %vm18288_vm0, %v18289_v3 }
 0x159   :  { %17461 = vmatprep.subr.bf16.mxu1 %v18287_v1  ;;  %17476 = vmatprep.subr.bf16.mxu0 %v18287_v1 }
 0x15a   :  { %16374 = vmatmul.mubr.f32.vlgmr.msra.gmra.mrb[10].mxu0 %v4836_v51 }
 0x15b   :  { %17478 = vmatpush3.bf16.msra.mxu0 %v18376_v30  ;;  %16380 = vmatprep.mubr.msk.f32.mxu0 %vm18288_vm0, %v18289_v3 }
 0x15c   :  { %17479 = vmatprep.subr.bf16.mxu0 %v18287_v1 }
 0x15e   :  { %16339 = vmatmul.mubr.f32.vlgmr.msra.gmra.mrb[8].mxu1 %v18730_v41 }
 0x15f   :  { %17463 = vmatpush3.bf16.msra.mxu1 %v18380_v31  ;;  %16345 = vmatprep.mubr.msk.f32.mxu1 %vm18288_vm0, %v18289_v3 }
 0x160   :  { %17464 = vmatprep.subr.bf16.mxu1 %v18287_v1 }
 0x162   :  { %16381 = vmatmul.mubr.f32.vlgmr.msra.gmra.mrb[10].mxu0 %v18733_v42 }
 0x163   :  { %17481 = vmatpush3.bf16.msra.mxu0 %v18380_v31  ;;  %16387 = vmatprep.mubr.msk.f32.mxu0 %vm18288_vm0, %v18289_v3 }
 0x164   :  { %17482 = vmatprep.subr.bf16.mxu0 %v18287_v1 }
 0x166   :  { %16346 = vmatmul.mubr.f32.vlgmr.msra.gmra.mrb[8].mxu1 %v4353_v44 }
 0x167   :  { %17466 = vmatpush3.bf16.msk.msra.mxu1 %vm18356_vm5, %v18294_v18  ;;  %16352 = vmatprep.mubr.msk.f32.mxu1 %vm18288_vm0, %v18289_v3 }
 0x168   :  { %17467 = vmatprep.subr.bf16.mxu1 %v18287_v1 }
 0x16a   :  { %16388 = vmatmul.mubr.f32.vlgmr.msra.gmra.mrb[10].mxu0 %v4833_v45 }
 0x16b   :  { %17484 = vmatpush3.bf16.msk.msra.mxu0 %vm18356_vm5, %v18294_v18  ;;  %16394 = vmatprep.mubr.msk.f32.mxu0 %vm18288_vm0, %v18289_v3 }
 0x16c   :  { %17485 = vmatprep.subr.bf16.mxu0 %v18287_v1 }
 0x16e   :  { %16353 = vmatmul.mubr.f32.vlgmr.msra.gmra.mrb[8].mxu1 %v4354_v46  ;;  %v8053_v46 = vpop.permute.xlu0 %8052 }
 0x16f   :  { %17469 = vmatpush3.bf16.msra.mxu1 %v18392_v32  ;;  %16359 = vmatprep.mubr.msk.f32.mxu1 %vm18288_vm0, %v18289_v3  ;;  %v8054_v50 = vsel %vm56_vm1, %v8053_v46, 0 }
 0x170   :  { %17470 = vmatprep.subr.bf16.mxu1 %v18287_v1  ;;  %v19045_v52 = vand.u32 4294901760, %v8054_v50 }
 0x172   :  { %16395 = vmatmul.mubr.f32.vlgmr.msra.gmra.mrb[10].mxu0 %v4834_v47  ;;  %v8533_v47 = vpop.permute.xlu1 %8532  ;;  %v19030_v48 = vpop.permute.xlu0 %8995 }
 0x173   :  { %17487 = vmatpush3.bf16.msra.mxu0 %v18392_v32  ;;  %16401 = vmatprep.mubr.msk.f32.mxu0 %vm18288_vm0, %v18289_v3  ;;  %v8534_v51 = vsel %vm56_vm1, %v8533_v47, 0 }
 0x174   :  { %17488 = vmatprep.subr.bf16.mxu0 %v18287_v1  ;;  %v19050_v54 = vand.u32 4294901760, %v8534_v51 }
 0x176   :  { %16360 = vmatmul.mubr.f32.vlgmr.msra.gmra.mrb[8].mxu1 %v18730_v41  ;;  %v19038_v49 = vpop.permute.xlu1 %9475  ;;  %v19047_v53 = vpop.permute.xlu0 %9938 }
 0x177   :  { %17472 = vmatpush3.bf16.msk.msra.mxu1 %vm18356_vm5, %v18294_v18  ;;  %16366 = vmatprep.mubr.msk.f32.mxu1 %vm18288_vm0, %v18289_v3 }
 0x178   :  { %17491 = vmatprep.subr.bf16.mxu1 %v18287_v1 }
 0x17a   :  { %16402 = vmatmul.mubr.f32.vlgmr.msra.gmra.mrb[10].mxu0 %v18733_v42  ;;  %v19052_v55 = vpop.permute.xlu1 %10418 }
 0x17b   :  { %17490 = vmatpush3.bf16.msk.msra.mxu0 %vm18356_vm5, %v18294_v18  ;;  %16408 = vmatprep.mubr.msk.f32.mxu0 %vm18288_vm0, %v18289_v3 }
 0x17c   :  { %17509 = vmatprep.subr.bf16.mxu0 %v18287_v1 }
 0x17e   :  { %16367 = vmatmul.mubr.f32.vlgmr.msra.gmra.mrb[8].mxu1 %v18730_v41  ;;  %v7184_v41 = vsub.f32 %v7182_v29, %v7183_v37  ;;  %v19076_v62 = vpop.permute.xlu1 %11823 }
 0x17f   :  { %17493 = vmatpush3.bf16.msk.msra.mxu1 %vm18356_vm5, %v18294_v18  ;;  %16415 = vmatprep.mubr.msk.f32.mxu1 %vm18288_vm0, %v18289_v3 }
 0x180   :  { %17494 = vmatprep.subr.bf16.mxu1 %v18287_v1  ;;  %v7185_v44 = vand.u32 4294901760, %v7184_v41 }
 0x182   :  { %16409 = vmatmul.mubr.f32.vlgmr.msra.gmra.mrb[10].mxu0 %v18733_v42  ;;  %16416 = vmatmul.mubr.f32.vlgmr.msra.gmra.mrb[10].mxu1 %v5299_v0  ;;  %v7663_v42 = vsub.f32 %v7661_v34, %v7662_v40  ;;  %v19097_v7 = vpop.permute.xlu1 %12766 }
 0x183   :  { %17496 = vmatpush3.bf16.msra.mxu1 %v18376_v30  ;;  %17511 = vmatpush3.bf16.msk.msra.mxu0 %vm18356_vm5, %v18294_v18 }
 0x184   :  { %16457 = vmatprep.mubr.msk.f32.mxu0 %vm18288_vm0, %v18289_v3  ;;  %16422 = vmatprep.mubr.msk.f32.mxu1 %vm18288_vm0, %v18289_v3  ;;  %v7664_v45 = vand.u32 4294901760, %v7663_v42 }
 0x185   :  { %17497 = vmatprep.subr.bf16.mxu1 %v18287_v1  ;;  %17512 = vmatprep.subr.bf16.mxu0 %v18287_v1 }
 0x186   :  { %16458 = vmatmul.mubr.f32.vlgmr.msra.gmra.mrb[12].mxu0 %v5779_v2 }
 0x187   :  { %17514 = vmatpush3.bf16.msra.mxu0 %v18376_v30  ;;  %16464 = vmatprep.mubr.msk.f32.mxu0 %vm18288_vm0, %v18289_v3 }
 0x188   :  { %17515 = vmatprep.subr.bf16.mxu0 %v18287_v1 }
 0x18a   :  { %16423 = vmatmul.mubr.f32.vlgmr.msra.gmra.mrb[10].mxu1 %v18804_v56 }
 0x18b   :  { %17499 = vmatpush3.bf16.msra.mxu1 %v18380_v31  ;;  %16429 = vmatprep.mubr.msk.f32.mxu1 %vm18288_vm0, %v18289_v3 }
 0x18c   :  { %17500 = vmatprep.subr.bf16.mxu1 %v18287_v1 }
 0x18e   :  { %16465 = vmatmul.mubr.f32.vlgmr.msra.gmra.mrb[12].mxu0 %v18807_v57 }
 0x18f   :  { %17517 = vmatpush3.bf16.msra.mxu0 %v18380_v31  ;;  %16471 = vmatprep.mubr.msk.f32.mxu0 %vm18288_vm0, %v18289_v3 }
 0x190   :  { %17518 = vmatprep.subr.bf16.mxu0 %v18287_v1 }
 0x192   :  { %16430 = vmatmul.mubr.f32.vlgmr.msra.gmra.mrb[10].mxu1 %v5296_v58  ;;  %v19061_v58 = vpop.permute.xlu0 %10881 }
 0x193   :  { %17502 = vmatpush3.bf16.msk.msra.mxu1 %vm18356_vm5, %v18294_v18  ;;  %16436 = vmatprep.mubr.msk.f32.mxu1 %vm18288_vm0, %v18289_v3 }
 0x194   :  { %17503 = vmatprep.subr.bf16.mxu1 %v18287_v1 }
 0x196   :  { %16472 = vmatmul.mubr.f32.vlgmr.msra.gmra.mrb[12].mxu0 %v5776_v59  ;;  %v19064_v59 = vsub.f32 %v8534_v51, %v19050_v54  ;;  %v19088_v5 = vpop.permute.xlu0 %12303 }
 0x197   :  { %17520 = vmatpush3.bf16.msk.msra.mxu0 %vm18356_vm5, %v18294_v18  ;;  %16478 = vmatprep.mubr.msk.f32.mxu0 %vm18288_vm0, %v18289_v3 }
 0x198   :  { %17521 = vmatprep.subr.bf16.mxu0 %v18287_v1  ;;  %v8605_v0 = vand.u32 4294901760, %v19064_v59 }
 0x19a   :  { %16437 = vmatmul.mubr.f32.vlgmr.msra.gmra.mrb[10].mxu1 %v5297_v60  ;;  %v8606_v6 = vsub.f32 %v19064_v59, %v8605_v0 }
 0x19b   :  { %17505 = vmatpush3.bf16.msra.mxu1 %v18392_v32  ;;  %16443 = vmatprep.mubr.msk.f32.mxu1 %vm18288_vm0, %v18289_v3 }
 0x19c   :  { %17506 = vmatprep.subr.bf16.mxu1 %v18287_v1 }
 0x19e   :  { %16479 = vmatmul.mubr.f32.vlgmr.msra.gmra.mrb[12].mxu0 %v5777_v61 }
 0x19f   :  { %17523 = vmatpush3.bf16.msra.mxu0 %v18392_v32  ;;  %16485 = vmatprep.mubr.msk.f32.mxu0 %vm18288_vm0, %v18289_v3 }
 0x1a0   :  { %17524 = vmatprep.subr.bf16.mxu0 %v18287_v1 }
 0x1a1   :  { %v18888_v11 = vpop.f32.mrb[0].mxu1 }
 0x1a2   :  { %v16032_v13 = vpop.f32.mrb[1].mxu1  ;;  %991 = vrot.lane.b32.xlu1 %v18888_v11, %s18298_s10  ;;  %16444 = vmatmul.mubr.f32.vlgmr.msra.gmra.mrb[10].mxu1 %v18804_v56 }
 0x1a3   :  { %17508 = vmatpush3.bf16.msk.msra.mxu1 %vm18356_vm5, %v18294_v18  ;;  %16450 = vmatprep.mubr.msk.f32.mxu1 %vm18288_vm0, %v18289_v3  ;;  %v19120_v13 = vld [vmem:[#allocation5] sm:$0xf] }
 0x1a4   :  { %17527 = vmatprep.subr.bf16.mxu1 %v18287_v1  ;;  %vm984_vm7 = vcmp.ge.s32.totalorder %v19120_v13, 2 }
 0x1a5   :  { %v18900_v16 = vpop.f32.mrb[2].mxu0 }
 0x1a6   :  { %16486 = vmatmul.mubr.f32.vlgmr.msra.gmra.mrb[12].mxu0 %v18807_v57  ;;  %1923 = vrot.lane.b32.xlu0 %v18900_v16, %s18299_s11  ;;  %v16074_v19 = vpop.f32.mrb[3].mxu0 }
 0x1a7   :  { %17526 = vmatpush3.bf16.msk.msra.mxu0 %vm18356_vm5, %v18294_v18  ;;  %16492 = vmatprep.mubr.msk.f32.mxu0 %vm18288_vm0, %v18289_v3 }
 0x1a8   :  { %17545 = vmatprep.subr.bf16.mxu0 %v18287_v1 }
 0x1aa   :  { %16451 = vmatmul.mubr.f32.vlgmr.msra.gmra.mrb[10].mxu1 %v18804_v56  ;;  %v19058_v56 = vsub.f32 %v8054_v50, %v19045_v52 }
 0x1ab   :  { %17529 = vmatpush3.bf16.msk.msra.mxu1 %vm18356_vm5, %v18294_v18  ;;  %16499 = vmatprep.mubr.msk.f32.mxu1 %vm18288_vm0, %v18289_v3 }
 0x1ac   :  { %17530 = vmatprep.subr.bf16.mxu1 %v18287_v1  ;;  %v8125_v61 = vand.u32 4294901760, %v19058_v56 }
 0x1ae   :  { %16493 = vmatmul.mubr.f32.vlgmr.msra.gmra.mrb[12].mxu0 %v18807_v57  ;;  %16500 = vmatmul.mubr.f32.vlgmr.msra.gmra.mrb[12].mxu1 %v6242_v22  ;;  %v8126_v4 = vsub.f32 %v19058_v56, %v8125_v61 }
 0x1af   :  { %17532 = vmatpush3.bf16.msra.mxu1 %v18376_v30  ;;  %17547 = vmatpush3.bf16.msk.msra.mxu0 %vm18356_vm5, %v18294_v18 }
 0x1b0   :  { %16541 = vmatprep.mubr.msk.f32.mxu0 %vm18288_vm0, %v18289_v3  ;;  %16506 = vmatprep.mubr.msk.f32.mxu1 %vm18288_vm0, %v18289_v3 }
 0x1b1   :  { %17533 = vmatprep.subr.bf16.mxu1 %v18287_v1  ;;  %17548 = vmatprep.subr.bf16.mxu0 %v18287_v1 }
 0x1b2   :  { %16542 = vmatmul.mubr.f32.vlgmr.msra.gmra.mrb[14].mxu0 %v6722_v23 }
 0x1b3   :  { %17550 = vmatpush3.bf16.msra.mxu0 %v18376_v30  ;;  %16548 = vmatprep.mubr.msk.f32.mxu0 %vm18288_vm0, %v18289_v3 }
 0x1b4   :  { %17551 = vmatprep.subr.bf16.mxu0 %v18287_v1 }
 0x1b6   :  { %16507 = vmatmul.mubr.f32.vlgmr.msra.gmra.mrb[12].mxu1 %v18878_v8 }
 0x1b7   :  { %17535 = vmatpush3.bf16.msra.mxu1 %v18380_v31  ;;  %16513 = vmatprep.mubr.msk.f32.mxu1 %vm18288_vm0, %v18289_v3 }
 0x1b8   :  { %17536 = vmatprep.subr.bf16.mxu1 %v18287_v1 }
 0x1ba   :  { %16549 = vmatmul.mubr.f32.vlgmr.msra.gmra.mrb[14].mxu0 %v18881_v9 }
 0x1bb   :  { %17553 = vmatpush3.bf16.msra.mxu0 %v18380_v31  ;;  %16555 = vmatprep.mubr.msk.f32.mxu0 %vm18288_vm0, %v18289_v3 }
 0x1bc   :  { %17554 = vmatprep.subr.bf16.mxu0 %v18287_v1 }
 0x1be   :  { %16514 = vmatmul.mubr.f32.vlgmr.msra.gmra.mrb[12].mxu1 %v6239_v10  ;;  %v8607_v10 = vand.u32 4294901760, %v8606_v6 }
 0x1bf   :  { %17538 = vmatpush3.bf16.msk.msra.mxu1 %vm18356_vm5, %v18294_v18  ;;  %16520 = vmatprep.mubr.msk.f32.mxu1 %vm18288_vm0, %v18289_v3 }
 0x1c0   :  { %17539 = vmatprep.subr.bf16.mxu1 %v18287_v1 }
 0x1c2   :  { %16556 = vmatmul.mubr.f32.vlgmr.msra.gmra.mrb[14].mxu0 %v6719_v12  ;;  %v19114_v12 = vpop.permute.xlu1 %13709 }
 0x1c3   :  { %17556 = vmatpush3.bf16.msk.msra.mxu0 %vm18356_vm5, %v18294_v18  ;;  %16562 = vmatprep.mubr.msk.f32.mxu0 %vm18288_vm0, %v18289_v3 }
 0x1c4   :  { %17557 = vmatprep.subr.bf16.mxu0 %v18287_v1 }
 0x1c6   :  { %16521 = vmatmul.mubr.f32.vlgmr.msra.gmra.mrb[12].mxu1 %v6240_v14  ;;  %v19130_v19 = vpop.permute.xlu1 %14652 }
 0x1c7   :  { %17541 = vmatpush3.bf16.msra.mxu1 %v18392_v32  ;;  %16527 = vmatprep.mubr.msk.f32.mxu1 %vm18288_vm0, %v18289_v3 }
 0x1c8   :  { %17542 = vmatprep.subr.bf16.mxu1 %v18287_v1 }
 0x1ca   :  { %16563 = vmatmul.mubr.f32.vlgmr.msra.gmra.mrb[14].mxu0 %v6720_v17  ;;  %v982_v17 = vand.u32 1, %v19120_v13 }
 0x1cb   :  { %17559 = vmatpush3.bf16.msra.mxu0 %v18392_v32  ;;  %16569 = vmatprep.mubr.msk.f32.mxu0 %vm18288_vm0, %v18289_v3 }
 0x1cc   :  { %17560 = vmatprep.subr.bf16.mxu0 %v18287_v1  ;;  %vm19136_vm6 = vcmp.eq.s32.totalorder %v982_v17, 1 }
 0x1cd   :  { %v18971_v33 = vpop.f32.mrb[2].mxu1 }
 0x1ce   :  { %v16116_v36 = vpop.f32.mrb[3].mxu1  ;;  %1928 = vrot.lane.b32.xlu1 %v18971_v33, %s18299_s11  ;;  %16528 = vmatmul.mubr.f32.vlgmr.msra.gmra.mrb[12].mxu1 %v18878_v8 }
 0x1cf   :  { %17544 = vmatpush3.bf16.msk.msra.mxu1 %vm18356_vm5, %v18294_v18  ;;  %16534 = vmatprep.mubr.msk.f32.mxu1 %vm18288_vm0, %v18289_v3 }
 0x1d0   :  { %17563 = vmatprep.subr.bf16.mxu1 %v18287_v1 }
 0x1d1   :  { %v2392_v38 = vpop.f32.mrb[4].mxu0 }
 0x1d2   :  { %16570 = vmatmul.mubr.f32.vlgmr.msra.gmra.mrb[14].mxu0 %v18881_v9  ;;  %2863 = vrot.lane.b32.xlu1 %v2392_v38, %s18297_s9  ;;  %v16158_v39 = vpop.f32.mrb[5].mxu0 }
 0x1d3   :  { %2860 = vrot.lane.b32.xlu0 %v2392_v38, %s18299_s11  ;;  %17562 = vmatpush3.bf16.msk.msra.mxu0 %vm18356_vm5, %v18294_v18 }
 0x1d4   :  { %16576 = vmatprep.mubr.msk.f32.mxu0 %vm18288_vm0, %v18289_v3  ;;  %17581 = vmatprep.subr.bf16.mxu0 %v18287_v1 }
 0x1d6   :  { %16535 = vmatmul.mubr.f32.vlgmr.msra.gmra.mrb[12].mxu1 %v18878_v8  ;;  %v8127_v8 = vand.u32 4294901760, %v8126_v4 }
 0x1d7   :  { %17565 = vmatpush3.bf16.msk.msra.mxu1 %vm18356_vm5, %v18294_v18  ;;  %16583 = vmatprep.mubr.msk.f32.mxu1 %vm18288_vm0, %v18289_v3 }
 0x1d8   :  { %17566 = vmatprep.subr.bf16.mxu1 %v18287_v1 }
 0x1da   :  { %16577 = vmatmul.mubr.f32.vlgmr.msra.gmra.mrb[14].mxu0 %v18881_v9  ;;  %16584 = vmatmul.mubr.f32.vlgmr.msra.gmra.mrb[14].mxu1 %v7185_v44  ;;  %v19105_v9 = vpop.permute.xlu0 %13246 }
 0x1db   :  { %17568 = vmatpush3.bf16.msra.mxu1 %v18376_v30  ;;  %17583 = vmatpush3.bf16.msk.msra.mxu0 %vm18356_vm5, %v18294_v18 }
 0x1dc   :  { %16625 = vmatprep.mubr.msk.f32.mxu0 %vm18288_vm0, %v18289_v3  ;;  %16590 = vmatprep.mubr.msk.f32.mxu1 %vm18288_vm0, %v18289_v3 }
 0x1dd   :  { %17569 = vmatprep.subr.bf16.mxu1 %v18287_v1  ;;  %17584 = vmatprep.subr.bf16.mxu0 %v18287_v1 }
 0x1de   :  { %16626 = vmatmul.mubr.f32.vlgmr.msra.gmra.mrb[16].mxu0 %v7664_v45  ;;  %v19125_v14 = vpop.permute.xlu0 %14189 }
 0x1df   :  { %17586 = vmatpush3.bf16.msra.mxu0 %v18376_v30  ;;  %16632 = vmatprep.mubr.msk.f32.mxu0 %vm18288_vm0, %v18289_v3 }
 0x1e0   :  { %17587 = vmatprep.subr.bf16.mxu0 %v18287_v1 }
 0x1e2   :  { %16591 = vmatmul.mubr.f32.vlgmr.msra.gmra.mrb[14].mxu1 %v18961_v27  ;;  %v987_v21 = vpop.permute.xlu0 %986 }
 0x1e3   :  { %17571 = vmatpush3.bf16.msra.mxu1 %v18380_v31  ;;  %16597 = vmatprep.mubr.msk.f32.mxu1 %vm18288_vm0, %v18289_v3  ;;  %v989_v23 = vsel %vm19136_vm6, %v987_v21, %v18695_v35 }
 0x1e4   :  { %17572 = vmatprep.subr.bf16.mxu1 %v18287_v1 }
 0x1e6   :  { %16633 = vmatmul.mubr.f32.vlgmr.msra.gmra.mrb[16].mxu0 %v18964_v28 }
 0x1e7   :  { %17589 = vmatpush3.bf16.msra.mxu0 %v18380_v31  ;;  %16639 = vmatprep.mubr.msk.f32.mxu0 %vm18288_vm0, %v18289_v3 }
 0x1e8   :  { %17590 = vmatprep.subr.bf16.mxu0 %v18287_v1 }
 0x1ea   :  { %16598 = vmatmul.mubr.f32.vlgmr.msra.gmra.mrb[14].mxu1 %v7182_v29 }
 0x1eb   :  { %17574 = vmatpush3.bf16.msk.msra.mxu1 %vm18356_vm5, %v18294_v18  ;;  %16604 = vmatprep.mubr.msk.f32.mxu1 %vm18288_vm0, %v18289_v3 }
 0x1ec   :  { %17575 = vmatprep.subr.bf16.mxu1 %v18287_v1 }
 0x1ee   :  { %16640 = vmatmul.mubr.f32.vlgmr.msra.gmra.mrb[16].mxu0 %v7661_v34 }
 0x1ef   :  { %17592 = vmatpush3.bf16.msk.msra.mxu0 %vm18356_vm5, %v18294_v18  ;;  %16646 = vmatprep.mubr.msk.f32.mxu0 %vm18288_vm0, %v18289_v3 }
 0x1f0   :  { %17593 = vmatprep.subr.bf16.mxu0 %v18287_v1 }
 0x1f2   :  { %16605 = vmatmul.mubr.f32.vlgmr.msra.gmra.mrb[14].mxu1 %v7183_v37 }
 0x1f3   :  { %17577 = vmatpush3.bf16.msra.mxu1 %v18392_v32  ;;  %16611 = vmatprep.mubr.msk.f32.mxu1 %vm18288_vm0, %v18289_v3 }
 0x1f4   :  { %17578 = vmatprep.subr.bf16.mxu1 %v18287_v1 }
 0x1f6   :  { %16647 = vmatmul.mubr.f32.vlgmr.msra.gmra.mrb[16].mxu0 %v7662_v40 }
 0x1f7   :  { %17595 = vmatpush3.bf16.msra.mxu0 %v18392_v32  ;;  %16653 = vmatprep.mubr.msk.f32.mxu0 %vm18288_vm0, %v18289_v3 }
 0x1f8   :  { %17596 = vmatprep.subr.bf16.mxu0 %v18287_v1 }
 0x1f9   :  { %v2855_v57 = vpop.f32.mrb[4].mxu1 }
 0x1fa   :  { %v16200_v60 = vpop.f32.mrb[5].mxu1  ;;  %16612 = vmatmul.mubr.f32.vlgmr.msra.gmra.mrb[14].mxu1 %v18961_v27  ;;  %2871 = vrot.lane.b32.xlu1 %v2855_v57, %s18297_s9 }
 0x1fb   :  { %17580 = vmatpush3.bf16.msk.msra.mxu1 %vm18356_vm5, %v18294_v18  ;;  %2868 = vrot.lane.b32.xlu0 %v2855_v57, %s18299_s11 }
 0x1fc   :  { %16618 = vmatprep.mubr.msk.f32.mxu1 %vm18288_vm0, %v18289_v3  ;;  %17599 = vmatprep.subr.bf16.mxu1 %v18287_v1 }
 0x1fd   :  { %v3335_v63 = vpop.f32.mrb[6].mxu0 }
 0x1fe   :  { %16654 = vmatmul.mubr.f32.vlgmr.msra.gmra.mrb[16].mxu0 %v18964_v28  ;;  %3806 = vrot.lane.b32.xlu1 %v3335_v63, %s18300_s12  ;;  %v16242_v2 = vpop.f32.mrb[7].mxu0 }
 0x1ff   :  { %3803 = vrot.lane.b32.xlu0 %v3335_v63, %s18297_s9  ;;  %17598 = vmatpush3.bf16.msk.msra.mxu0 %vm18356_vm5, %v18294_v18 }
 0x200   :  { %16660 = vmatprep.mubr.msk.f32.mxu0 %vm18288_vm0, %v18289_v3  ;;  %17617 = vmatprep.subr.bf16.mxu0 %v18287_v1 }
 0x202   :  { %16619 = vmatmul.mubr.f32.vlgmr.msra.gmra.mrb[14].mxu1 %v18961_v27  ;;  %v9477_v27 = vsel %vm56_vm1, %v19038_v49, 0 }
 0x203   :  { %17601 = vmatpush3.bf16.msk.msra.mxu1 %vm18356_vm5, %v18294_v18  ;;  %16667 = vmatprep.mubr.msk.f32.mxu1 %vm18288_vm0, %v18289_v3  ;;  %v19188_v29 = vand.u32 4294901760, %v9477_v27 }
 0x204   :  { %17602 = vmatprep.subr.bf16.mxu1 %v18287_v1 }
 0x205   :  { %v19200_v37 = vsub.f32 %v9477_v27, %v19188_v29  ;;  %v10883_v27 = vsel %vm56_vm1, %v19061_v58, 0 }
 0x206   :  { %16661 = vmatmul.mubr.f32.vlgmr.msra.gmra.mrb[16].mxu0 %v18964_v28  ;;  %16668 = vmatmul.mubr.f32.vlgmr.msra.gmra.mrb[16].mxu1 %v8127_v8 }
 0x207   :  { %17604 = vmatpush3.bf16.msra.mxu1 %v18376_v30  ;;  %17619 = vmatpush3.bf16.msk.msra.mxu0 %vm18356_vm5, %v18294_v18  ;;  %v9548_v41 = vand.u32 4294901760, %v19200_v37 }
 0x208   :  { %16709 = vmatprep.mubr.msk.f32.mxu0 %vm18288_vm0, %v18289_v3  ;;  %16674 = vmatprep.mubr.msk.f32.mxu1 %vm18288_vm0, %v18289_v3 }
 0x209   :  { %17605 = vmatprep.subr.bf16.mxu1 %v18287_v1  ;;  %17620 = vmatprep.subr.bf16.mxu0 %v18287_v1  ;;  %v9549_v45 = vsub.f32 %v19200_v37, %v9548_v41 }
 0x20a   :  { %16710 = vmatmul.mubr.f32.vlgmr.msra.gmra.mrb[18].mxu0 %v8607_v10 }
 0x20b   :  { %17622 = vmatpush3.bf16.msra.mxu0 %v18376_v30  ;;  %16716 = vmatprep.mubr.msk.f32.mxu0 %vm18288_vm0, %v18289_v3  ;;  %v9550_v47 = vand.u32 4294901760, %v9549_v45 }
 0x20c   :  { %17623 = vmatprep.subr.bf16.mxu0 %v18287_v1 }
 0x20e   :  { %16675 = vmatmul.mubr.f32.vlgmr.msra.gmra.mrb[16].mxu1 %v19045_v52 }
 0x20f   :  { %17607 = vmatpush3.bf16.msra.mxu1 %v18380_v31  ;;  %16681 = vmatprep.mubr.msk.f32.mxu1 %vm18288_vm0, %v18289_v3 }
 0x210   :  { %17608 = vmatprep.subr.bf16.mxu1 %v18287_v1 }
 0x212   :  { %16717 = vmatmul.mubr.f32.vlgmr.msra.gmra.mrb[18].mxu0 %v19050_v54 }
 0x213   :  { %17625 = vmatpush3.bf16.msra.mxu0 %v18380_v31  ;;  %16723 = vmatprep.mubr.msk.f32.mxu0 %vm18288_vm0, %v18289_v3 }
 0x214   :  { %v992_v22 = vpop.permute.xlu1 %991  ;;  %17626 = vmatprep.subr.bf16.mxu0 %v18287_v1 }
 0x215   :  { %v994_v24 = vsel %vm19136_vm6, %v992_v22, %v18888_v11  ;;  %v8997_v11 = vsel %vm56_vm1, %v19030_v48, 0 }
 0x216   :  { %v19154_v25 = vsel %vm984_vm7, %v994_v24, %v989_v23  ;;  %16682 = vmatmul.mubr.f32.vlgmr.msra.gmra.mrb[16].mxu1 %v19058_v56  ;;  %v19185_v28 = vand.u32 4294901760, %v8997_v11  ;;  %v10420_v56 = vsel %vm56_vm1, %v19052_v55, 0 }
 0x217   :  { %17610 = vmatpush3.bf16.msk.msra.mxu1 %vm18356_vm5, %v18294_v18  ;;  %16688 = vmatprep.mubr.msk.f32.mxu1 %vm18288_vm0, %v18289_v3 }
 0x218   :  { %v19162_v26 = vpop.permute.xlu0 %1923  ;;  %17611 = vmatprep.subr.bf16.mxu1 %v18287_v1  ;;  %v19196_v36 = vsub.f32 %v8997_v11, %v19185_v28 }
 0x219   :  { %v1926_v35 = vsel %vm19136_vm6, %v18900_v16, %v19162_v26 }
 0x21a   :  { %16724 = vmatmul.mubr.f32.vlgmr.msra.gmra.mrb[18].mxu0 %v19064_v59  ;;  %v9068_v39 = vand.u32 4294901760, %v19196_v36  ;;  %v19301_v59 = vand.u32 4294901760, %v10420_v56 }
 0x21b   :  { %17628 = vmatpush3.bf16.msk.msra.mxu0 %vm18356_vm5, %v18294_v18  ;;  %16730 = vmatprep.mubr.msk.f32.mxu0 %vm18288_vm0, %v18289_v3 }
 0x21c   :  { %17629 = vmatprep.subr.bf16.mxu0 %v18287_v1  ;;  %v9069_v44 = vsub.f32 %v19196_v36, %v9068_v39  ;;  %v19311_v60 = vsub.f32 %v10420_v56, %v19301_v59  ;;  %v12305_v56 = vsel %vm56_vm1, %v19088_v5, 0 }
 0x21e   :  { %16689 = vmatmul.mubr.f32.vlgmr.msra.gmra.mrb[16].mxu1 %v8125_v61  ;;  %v9070_v46 = vand.u32 4294901760, %v9069_v44  ;;  %v10491_v2 = vand.u32 4294901760, %v19311_v60 }
 0x21f   :  { %17613 = vmatpush3.bf16.msra.mxu1 %v18392_v32  ;;  %16695 = vmatprep.mubr.msk.f32.mxu1 %vm18288_vm0, %v18289_v3 }
 0x220   :  { %17614 = vmatprep.subr.bf16.mxu1 %v18287_v1  ;;  %v10492_v8 = vsub.f32 %v19311_v60, %v10491_v2 }
 0x222   :  { %16731 = vmatmul.mubr.f32.vlgmr.msra.gmra.mrb[18].mxu0 %v8605_v0  ;;  %v10493_v17 = vand.u32 4294901760, %v10492_v8 }
 0x223   :  { %17631 = vmatpush3.bf16.msra.mxu0 %v18392_v32  ;;  %16737 = vmatprep.mubr.msk.f32.mxu0 %vm18288_vm0, %v18289_v3 }
 0x224   :  { %17632 = vmatprep.subr.bf16.mxu0 %v18287_v1 }
 0x225   :  { %v3798_v34 = vpop.f32.mrb[6].mxu1 }
 0x226   :  { %v16284_v38 = vpop.f32.mrb[7].mxu1  ;;  %16696 = vmatmul.mubr.f32.vlgmr.msra.gmra.mrb[16].mxu1 %v19045_v52  ;;  %3814 = vrot.lane.b32.xlu1 %v3798_v34, %s18300_s12 }
 0x227   :  { %17616 = vmatpush3.bf16.msk.msra.mxu1 %vm18356_vm5, %v18294_v18  ;;  %3811 = vrot.lane.b32.xlu0 %v3798_v34, %s18297_s9 }
 0x228   :  { %16702 = vmatprep.mubr.msk.f32.mxu1 %vm18288_vm0, %v18289_v3  ;;  %17635 = vmatprep.subr.bf16.mxu1 %v18287_v1 }
 0x229   :  { %v4277_v40 = vpop.f32.mrb[8].mxu0 }
 0x22a   :  { %16738 = vmatmul.mubr.f32.vlgmr.msra.gmra.mrb[18].mxu0 %v19050_v54  ;;  %4748 = vrot.lane.b32.xlu1 %v4277_v40, %s18296_s8  ;;  %v16326_v42 = vpop.f32.mrb[9].mxu0 }
 0x22b   :  { %4745 = vrot.lane.b32.xlu0 %v4277_v40, %s18300_s12  ;;  %17634 = vmatpush3.bf16.msk.msra.mxu0 %vm18356_vm5, %v18294_v18 }
 0x22c   :  { %16744 = vmatprep.mubr.msk.f32.mxu0 %vm18288_vm0, %v18289_v3  ;;  %17653 = vmatprep.subr.bf16.mxu0 %v18287_v1 }
 0x22e   :  { %16703 = vmatmul.mubr.f32.vlgmr.msra.gmra.mrb[16].mxu1 %v19045_v52 }
 0x22f   :  { %17637 = vmatpush3.bf16.msk.msra.mxu1 %vm18356_vm5, %v18294_v18  ;;  %16751 = vmatprep.mubr.msk.f32.mxu1 %vm18288_vm0, %v18289_v3 }
 0x230   :  { %17638 = vmatprep.subr.bf16.mxu1 %v18287_v1 }
 0x232   :  { %16745 = vmatmul.mubr.f32.vlgmr.msra.gmra.mrb[18].mxu0 %v19050_v54  ;;  %16752 = vmatmul.mubr.f32.vlgmr.msra.gmra.mrb[18].mxu1 %v9070_v46  ;;  %v9940_v54 = vsel %vm56_vm1, %v19047_v53, 0 }
 0x233   :  { %17640 = vmatpush3.bf16.msra.mxu1 %v18376_v30  ;;  %17655 = vmatpush3.bf16.msk.msra.mxu0 %vm18356_vm5, %v18294_v18  ;;  %v19298_v57 = vand.u32 4294901760, %v9940_v54 }
 0x234   :  { %16793 = vmatprep.mubr.msk.f32.mxu0 %vm18288_vm0, %v18289_v3  ;;  %16758 = vmatprep.mubr.msk.f32.mxu1 %vm18288_vm0, %v18289_v3 }
 0x235   :  { %17641 = vmatprep.subr.bf16.mxu1 %v18287_v1  ;;  %17656 = vmatprep.subr.bf16.mxu0 %v18287_v1  ;;  %v19307_v53 = vsub.f32 %v9940_v54, %v19298_v57  ;;  %v11825_v54 = vsel %vm56_vm1, %v19076_v62, 0 }
 0x236   :  { %16794 = vmatmul.mubr.f32.vlgmr.msra.gmra.mrb[20].mxu0 %v9550_v47 }
 0x237   :  { %17658 = vmatpush3.bf16.msra.mxu0 %v18376_v30  ;;  %16800 = vmatprep.mubr.msk.f32.mxu0 %vm18288_vm0, %v18289_v3  ;;  %v10011_v63 = vand.u32 4294901760, %v19307_v53 }
 0x238   :  { %17659 = vmatprep.subr.bf16.mxu0 %v18287_v1 }
 0x239   :  { %v10012_v6 = vsub.f32 %v19307_v53, %v10011_v63 }
 0x23a   :  { %16759 = vmatmul.mubr.f32.vlgmr.msra.gmra.mrb[18].mxu1 %v19185_v28 }
 0x23b   :  { %17643 = vmatpush3.bf16.msra.mxu1 %v18380_v31  ;;  %16765 = vmatprep.mubr.msk.f32.mxu1 %vm18288_vm0, %v18289_v3  ;;  %v10013_v10 = vand.u32 4294901760, %v10012_v6 }
 0x23c   :  { %17644 = vmatprep.subr.bf16.mxu1 %v18287_v1 }
 0x23e   :  { %16801 = vmatmul.mubr.f32.vlgmr.msra.gmra.mrb[20].mxu0 %v19188_v29 }
 0x23f   :  { %17661 = vmatpush3.bf16.msra.mxu0 %v18380_v31  ;;  %16807 = vmatprep.mubr.msk.f32.mxu0 %vm18288_vm0, %v18289_v3 }
 0x240   :  { %v1929_v48 = vpop.permute.xlu1 %1928  ;;  %17662 = vmatprep.subr.bf16.mxu0 %v18287_v1 }
 0x241   :  { %v1931_v49 = vsel %vm19136_vm6, %v18971_v33, %v1929_v48 }
 0x242   :  { %v1932_v50 = vsel %vm984_vm7, %v1931_v49, %v1926_v35  ;;  %16766 = vmatmul.mubr.f32.vlgmr.msra.gmra.mrb[18].mxu1 %v19196_v36 }
 0x243   :  { %v19268_v51 = vsel %vm15132_vm8, %v19154_v25, %v1932_v50  ;;  %17646 = vmatpush3.bf16.msk.msra.mxu1 %vm18356_vm5, %v18294_v18  ;;  %16772 = vmatprep.mubr.msk.f32.mxu1 %vm18288_vm0, %v18289_v3 }
 0x244   :  { %v19275_v33 = vpop.permute.xlu1 %2863  ;;  %17647 = vmatprep.subr.bf16.mxu1 %v18287_v1 }
 0x245   :  { %v19278_v16 = vpop.permute.xlu0 %2860 }
 0x246   :  { %v2866_v52 = vsel %vm19136_vm6, %v19278_v16, %v19275_v33  ;;  %16808 = vmatmul.mubr.f32.vlgmr.msra.gmra.mrb[20].mxu0 %v19200_v37 }
 0x247   :  { %17664 = vmatpush3.bf16.msk.msra.mxu0 %vm18356_vm5, %v18294_v18  ;;  %16814 = vmatprep.mubr.msk.f32.mxu0 %vm18288_vm0, %v18289_v3 }
 0x248   :  { %17665 = vmatprep.subr.bf16.mxu0 %v18287_v1 }
 0x24a   :  { %16773 = vmatmul.mubr.f32.vlgmr.msra.gmra.mrb[18].mxu1 %v9068_v39 }
 0x24b   :  { %17649 = vmatpush3.bf16.msra.mxu1 %v18392_v32  ;;  %16779 = vmatprep.mubr.msk.f32.mxu1 %vm18288_vm0, %v18289_v3 }
 0x24c   :  { %17650 = vmatprep.subr.bf16.mxu1 %v18287_v1 }
 0x24e   :  { %16815 = vmatmul.mubr.f32.vlgmr.msra.gmra.mrb[20].mxu0 %v9548_v41 }
 0x24f   :  { %17667 = vmatpush3.bf16.msra.mxu0 %v18392_v32  ;;  %16821 = vmatprep.mubr.msk.f32.mxu0 %vm18288_vm0, %v18289_v3 }
 0x250   :  { %17668 = vmatprep.subr.bf16.mxu0 %v18287_v1 }
 0x251   :  { %v4740_v55 = vpop.f32.mrb[8].mxu1 }
 0x252   :  { %v16368_v61 = vpop.f32.mrb[9].mxu1  ;;  %16780 = vmatmul.mubr.f32.vlgmr.msra.gmra.mrb[18].mxu1 %v19185_v28  ;;  %4756 = vrot.lane.b32.xlu1 %v4740_v55, %s18296_s8 }
 0x253   :  { %17652 = vmatpush3.bf16.msk.msra.mxu1 %vm18356_vm5, %v18294_v18  ;;  %4753 = vrot.lane.b32.xlu0 %v4740_v55, %s18300_s12 }
 0x254   :  { %16786 = vmatprep.mubr.msk.f32.mxu1 %vm18288_vm0, %v18289_v3  ;;  %17671 = vmatprep.subr.bf16.mxu1 %v18287_v1 }
 0x255   :  { %v5220_v0 = vpop.f32.mrb[10].mxu0 }
 0x256   :  { %16822 = vmatmul.mubr.f32.vlgmr.msra.gmra.mrb[20].mxu0 %v19188_v29  ;;  %5691 = vrot.lane.b32.xlu1 %v5220_v0, %s18301_s13  ;;  %v16410_v4 = vpop.f32.mrb[11].mxu0 }
 0x257   :  { %5688 = vrot.lane.b32.xlu0 %v5220_v0, %s18296_s8  ;;  %17670 = vmatpush3.bf16.msk.msra.mxu0 %vm18356_vm5, %v18294_v18 }
 0x258   :  { %16828 = vmatprep.mubr.msk.f32.mxu0 %vm18288_vm0, %v18289_v3  ;;  %17689 = vmatprep.subr.bf16.mxu0 %v18287_v1 }
 0x25a   :  { %16787 = vmatmul.mubr.f32.vlgmr.msra.gmra.mrb[18].mxu1 %v19185_v28  ;;  %v11362_v28 = vsel %vm56_vm1, %v18451_v43, 0 }
 0x25b   :  { %17673 = vmatpush3.bf16.msk.msra.mxu1 %vm18356_vm5, %v18294_v18  ;;  %16835 = vmatprep.mubr.msk.f32.mxu1 %vm18288_vm0, %v18289_v3  ;;  %v19412_v36 = vand.u32 4294901760, %v11362_v28 }
 0x25c   :  { %17674 = vmatprep.subr.bf16.mxu1 %v18287_v1 }
 0x25d   :  { %v19424_v43 = vsub.f32 %v11362_v28, %v19412_v36 }
 0x25e   :  { %16829 = vmatmul.mubr.f32.vlgmr.msra.gmra.mrb[20].mxu0 %v19188_v29  ;;  %16836 = vmatmul.mubr.f32.vlgmr.msra.gmra.mrb[20].mxu1 %v10013_v10  ;;  %v19409_v29 = vand.u32 4294901760, %v10883_v27 }
 0x25f   :  { %17676 = vmatpush3.bf16.msra.mxu1 %v18376_v30  ;;  %17691 = vmatpush3.bf16.msk.msra.mxu0 %vm18356_vm5, %v18294_v18  ;;  %v11433_v41 = vand.u32 4294901760, %v19424_v43 }
 0x260   :  { %16877 = vmatprep.mubr.msk.f32.mxu0 %vm18288_vm0, %v18289_v3  ;;  %16842 = vmatprep.mubr.msk.f32.mxu1 %vm18288_vm0, %v18289_v3  ;;  %v19418_v58 = vsub.f32 %v10883_v27, %v19409_v29 }
 0x261   :  { %17677 = vmatprep.subr.bf16.mxu1 %v18287_v1  ;;  %17692 = vmatprep.subr.bf16.mxu0 %v18287_v1  ;;  %v11434_v44 = vsub.f32 %v19424_v43, %v11433_v41 }
 0x262   :  { %16878 = vmatmul.mubr.f32.vlgmr.msra.gmra.mrb[22].mxu0 %v10493_v17  ;;  %v10954_v38 = vand.u32 4294901760, %v19418_v58 }
 0x263   :  { %17694 = vmatpush3.bf16.msra.mxu0 %v18376_v30  ;;  %16884 = vmatprep.mubr.msk.f32.mxu0 %vm18288_vm0, %v18289_v3  ;;  %v11435_v46 = vand.u32 4294901760, %v11434_v44 }
 0x264   :  { %17695 = vmatprep.subr.bf16.mxu0 %v18287_v1  ;;  %v10955_v42 = vsub.f32 %v19418_v58, %v10954_v38 }
 0x266   :  { %16843 = vmatmul.mubr.f32.vlgmr.msra.gmra.mrb[20].mxu1 %v19298_v57  ;;  %v10956_v45 = vand.u32 4294901760, %v10955_v42 }
 0x267   :  { %17679 = vmatpush3.bf16.msra.mxu1 %v18380_v31  ;;  %16849 = vmatprep.mubr.msk.f32.mxu1 %vm18288_vm0, %v18289_v3 }
 0x268   :  { %17680 = vmatprep.subr.bf16.mxu1 %v18287_v1 }
 0x26a   :  { %16885 = vmatmul.mubr.f32.vlgmr.msra.gmra.mrb[22].mxu0 %v19301_v59 }
 0x26b   :  { %17697 = vmatpush3.bf16.msra.mxu0 %v18380_v31  ;;  %16891 = vmatprep.mubr.msk.f32.mxu0 %vm18288_vm0, %v18289_v3 }
 0x26c   :  { %v2872_v21 = vpop.permute.xlu1 %2871  ;;  %17698 = vmatprep.subr.bf16.mxu0 %v18287_v1 }
 0x26d   :  { %v2869_v22 = vpop.permute.xlu0 %2868 }
 0x26e   :  { %v2874_v23 = vsel %vm19136_vm6, %v2869_v22, %v2872_v21  ;;  %16850 = vmatmul.mubr.f32.vlgmr.msra.gmra.mrb[20].mxu1 %v19307_v53 }
 0x26f   :  { %v2875_v24 = vsel %vm984_vm7, %v2874_v23, %v2866_v52  ;;  %17682 = vmatpush3.bf16.msk.msra.mxu1 %vm18356_vm5, %v18294_v18  ;;  %16856 = vmatprep.mubr.msk.f32.mxu1 %vm18288_vm0, %v18289_v3 }
 0x270   :  { %v19384_v25 = vsel %vm56_vm1, %v19268_v51, %v2875_v24  ;;  %v19386_v26 = vpop.permute.xlu1 %3806  ;;  %17683 = vmatprep.subr.bf16.mxu1 %v18287_v1 }
 0x271   :  { %v19389_v35 = vpop.permute.xlu0 %3803 }
 0x272   :  { %v3809_v11 = vsel %vm19136_vm6, %v19389_v35, %v19386_v26  ;;  %16892 = vmatmul.mubr.f32.vlgmr.msra.gmra.mrb[22].mxu0 %v19311_v60  ;;  %v12768_v35 = vsel %vm56_vm1, %v19097_v7, 0 }
 0x273   :  { %17700 = vmatpush3.bf16.msk.msra.mxu0 %vm18356_vm5, %v18294_v18  ;;  %16898 = vmatprep.mubr.msk.f32.mxu0 %vm18288_vm0, %v18289_v3  ;;  %v19629_v27 = vand.u32 4294901760, %v12768_v35 }
 0x274   :  { %17701 = vmatprep.subr.bf16.mxu0 %v18287_v1 }
 0x275   :  { %v19638_v7 = vsub.f32 %v12768_v35, %v19629_v27 }
 0x276   :  { %16857 = vmatmul.mubr.f32.vlgmr.msra.gmra.mrb[20].mxu1 %v10011_v63 }
 0x277   :  { %17685 = vmatpush3.bf16.msra.mxu1 %v18392_v32  ;;  %16863 = vmatprep.mubr.msk.f32.mxu1 %vm18288_vm0, %v18289_v3 }
 0x278   :  { %17686 = vmatprep.subr.bf16.mxu1 %v18287_v1 }
 0x27a   :  { %16899 = vmatmul.mubr.f32.vlgmr.msra.gmra.mrb[22].mxu0 %v10491_v2 }
 0x27b   :  { %17703 = vmatpush3.bf16.msra.mxu0 %v18392_v32  ;;  %16905 = vmatprep.mubr.msk.f32.mxu0 %vm18288_vm0, %v18289_v3 }
 0x27c   :  { %17704 = vmatprep.subr.bf16.mxu0 %v18287_v1 }
 0x27d   :  { %v5683_v34 = vpop.f32.mrb[10].mxu1 }
 0x27e   :  { %v16452_v37 = vpop.f32.mrb[11].mxu1  ;;  %16864 = vmatmul.mubr.f32.vlgmr.msra.gmra.mrb[20].mxu1 %v19298_v57  ;;  %5699 = vrot.lane.b32.xlu1 %v5683_v34, %s18301_s13 }
 0x27f   :  { %17688 = vmatpush3.bf16.msk.msra.mxu1 %vm18356_vm5, %v18294_v18  ;;  %5696 = vrot.lane.b32.xlu0 %v5683_v34, %s18296_s8 }
 0x280   :  { %16870 = vmatprep.mubr.msk.f32.mxu1 %vm18288_vm0, %v18289_v3  ;;  %17707 = vmatprep.subr.bf16.mxu1 %v18287_v1 }
 0x281   :  { %v6163_v39 = vpop.f32.mrb[12].mxu0 }
 0x282   :  { %16906 = vmatmul.mubr.f32.vlgmr.msra.gmra.mrb[22].mxu0 %v19301_v59  ;;  %6634 = vrot.lane.b32.xlu1 %v6163_v39, %s18295_s7  ;;  %v16494_v40 = vpop.f32.mrb[13].mxu0 }
 0x283   :  { %6631 = vrot.lane.b32.xlu0 %v6163_v39, %s18301_s13  ;;  %17706 = vmatpush3.bf16.msk.msra.mxu0 %vm18356_vm5, %v18294_v18 }
 0x284   :  { %16912 = vmatprep.mubr.msk.f32.mxu0 %vm18288_vm0, %v18289_v3  ;;  %17725 = vmatprep.subr.bf16.mxu0 %v18287_v1 }
 0x286   :  { %16871 = vmatmul.mubr.f32.vlgmr.msra.gmra.mrb[20].mxu1 %v19298_v57  ;;  %v19519_v57 = vand.u32 4294901760, %v11825_v54 }
 0x287   :  { %17709 = vmatpush3.bf16.msk.msra.mxu1 %vm18356_vm5, %v18294_v18  ;;  %16919 = vmatprep.mubr.msk.f32.mxu1 %vm18288_vm0, %v18289_v3 }
 0x288   :  { %17710 = vmatprep.subr.bf16.mxu1 %v18287_v1  ;;  %v19528_v62 = vsub.f32 %v11825_v54, %v19519_v57 }
 0x28a   :  { %16913 = vmatmul.mubr.f32.vlgmr.msra.gmra.mrb[22].mxu0 %v19301_v59  ;;  %16920 = vmatmul.mubr.f32.vlgmr.msra.gmra.mrb[22].mxu1 %v10956_v45  ;;  %v19522_v59 = vand.u32 4294901760, %v12305_v56  ;;  %v11896_v60 = vand.u32 4294901760, %v19528_v62 }
 0x28b   :  { %17712 = vmatpush3.bf16.msra.mxu1 %v18376_v30  ;;  %17727 = vmatpush3.bf16.msk.msra.mxu0 %vm18356_vm5, %v18294_v18 }
 0x28c   :  { %16961 = vmatprep.mubr.msk.f32.mxu0 %vm18288_vm0, %v18289_v3  ;;  %16926 = vmatprep.mubr.msk.f32.mxu1 %vm18288_vm0, %v18289_v3  ;;  %v19532_v53 = vsub.f32 %v12305_v56, %v19522_v59  ;;  %v11897_v2 = vsub.f32 %v19528_v62, %v11896_v60 }
 0x28d   :  { %17713 = vmatprep.subr.bf16.mxu1 %v18287_v1  ;;  %17728 = vmatprep.subr.bf16.mxu0 %v18287_v1 }
 0x28e   :  { %16962 = vmatmul.mubr.f32.vlgmr.msra.gmra.mrb[24].mxu0 %v11435_v46  ;;  %v12376_v63 = vand.u32 4294901760, %v19532_v53  ;;  %v11898_v6 = vand.u32 4294901760, %v11897_v2 }
 0x28f   :  { %17730 = vmatpush3.bf16.msra.mxu0 %v18376_v30  ;;  %16968 = vmatprep.mubr.msk.f32.mxu0 %vm18288_vm0, %v18289_v3 }
 0x290   :  { %17731 = vmatprep.subr.bf16.mxu0 %v18287_v1  ;;  %v12377_v4 = vsub.f32 %v19532_v53, %v12376_v63 }
 0x292   :  { %16927 = vmatmul.mubr.f32.vlgmr.msra.gmra.mrb[22].mxu1 %v19409_v29  ;;  %v12378_v8 = vand.u32 4294901760, %v12377_v4 }
 0x293   :  { %17715 = vmatpush3.bf16.msra.mxu1 %v18380_v31  ;;  %16933 = vmatprep.mubr.msk.f32.mxu1 %vm18288_vm0, %v18289_v3 }
 0x294   :  { %17716 = vmatprep.subr.bf16.mxu1 %v18287_v1 }
 0x296   :  { %16969 = vmatmul.mubr.f32.vlgmr.msra.gmra.mrb[24].mxu0 %v19412_v36 }
 0x297   :  { %17733 = vmatpush3.bf16.msra.mxu0 %v18380_v31  ;;  %16975 = vmatprep.mubr.msk.f32.mxu0 %vm18288_vm0, %v18289_v3 }
 0x298   :  { %v3815_v47 = vpop.permute.xlu1 %3814  ;;  %17734 = vmatprep.subr.bf16.mxu0 %v18287_v1 }
 0x299   :  { %v3812_v48 = vpop.permute.xlu0 %3811 }
 0x29a   :  { %v3817_v49 = vsel %vm19136_vm6, %v3812_v48, %v3815_v47  ;;  %16934 = vmatmul.mubr.f32.vlgmr.msra.gmra.mrb[22].mxu1 %v19418_v58  ;;  %v12839_v58 = vand.u32 4294901760, %v19638_v7 }
 0x29b   :  { %v3818_v50 = vsel %vm984_vm7, %v3817_v49, %v3809_v11  ;;  %17718 = vmatpush3.bf16.msk.msra.mxu1 %vm18356_vm5, %v18294_v18  ;;  %16940 = vmatprep.mubr.msk.f32.mxu1 %vm18288_vm0, %v18289_v3  ;;  %v13248_v11 = vsel %vm56_vm1, %v19105_v9, 0 }
 0x29c   :  { %v19494_v51 = vsel %vm15135_vm9, %v19384_v25, %v3818_v50  ;;  %v19496_v33 = vpop.permute.xlu1 %4748  ;;  %17719 = vmatprep.subr.bf16.mxu1 %v18287_v1  ;;  %v19632_v28 = vand.u32 4294901760, %v13248_v11 }
 0x29d   :  { %v19499_v16 = vpop.permute.xlu0 %4745 }
 0x29e   :  { %v4751_v52 = vsel %vm19136_vm6, %v19499_v16, %v19496_v33  ;;  %16976 = vmatmul.mubr.f32.vlgmr.msra.gmra.mrb[24].mxu0 %v19424_v43  ;;  %v14191_v33 = vsel %vm56_vm1, %v19125_v14, 0 }
 0x29f   :  { %17736 = vmatpush3.bf16.msk.msra.mxu0 %vm18356_vm5, %v18294_v18  ;;  %16982 = vmatprep.mubr.msk.f32.mxu0 %vm18288_vm0, %v18289_v3 }
 0x2a0   :  { %17737 = vmatprep.subr.bf16.mxu0 %v18287_v1 }
 0x2a2   :  { %16941 = vmatmul.mubr.f32.vlgmr.msra.gmra.mrb[22].mxu1 %v10954_v38  ;;  %v12840_v38 = vsub.f32 %v19638_v7, %v12839_v58 }
 0x2a3   :  { %17721 = vmatpush3.bf16.msra.mxu1 %v18392_v32  ;;  %16947 = vmatprep.mubr.msk.f32.mxu1 %vm18288_vm0, %v18289_v3 }
 0x2a4   :  { %17722 = vmatprep.subr.bf16.mxu1 %v18287_v1  ;;  %v12841_v40 = vand.u32 4294901760, %v12840_v38 }
 0x2a6   :  { %16983 = vmatmul.mubr.f32.vlgmr.msra.gmra.mrb[24].mxu0 %v11433_v41 }
 0x2a7   :  { %17739 = vmatpush3.bf16.msra.mxu0 %v18392_v32  ;;  %16989 = vmatprep.mubr.msk.f32.mxu0 %vm18288_vm0, %v18289_v3 }
 0x2a8   :  { %17740 = vmatprep.subr.bf16.mxu0 %v18287_v1 }
 0x2a9   :  { %v6626_v5 = vpop.f32.mrb[12].mxu1 }
 0x2aa   :  { %v16536_v55 = vpop.f32.mrb[13].mxu1  ;;  %16948 = vmatmul.mubr.f32.vlgmr.msra.gmra.mrb[22].mxu1 %v19409_v29  ;;  %6642 = vrot.lane.b32.xlu1 %v6626_v5, %s18295_s7 }
 0x2ab   :  { %17724 = vmatpush3.bf16.msk.msra.mxu1 %vm18356_vm5, %v18294_v18  ;;  %6639 = vrot.lane.b32.xlu0 %v6626_v5, %s18301_s13 }
 0x2ac   :  { %16954 = vmatprep.mubr.msk.f32.mxu1 %vm18288_vm0, %v18289_v3  ;;  %17743 = vmatprep.subr.bf16.mxu1 %v18287_v1 }
 0x2ad   :  { %v7106_v61 = vpop.f32.mrb[14].mxu0 }
 0x2ae   :  { %16990 = vmatmul.mubr.f32.vlgmr.msra.gmra.mrb[24].mxu0 %v19412_v36  ;;  %7577 = vrot.lane.b32.xlu1 %v7106_v61, %s18302_s14  ;;  %v16578_v0 = vpop.f32.mrb[15].mxu0 }
 0x2af   :  { %7574 = vrot.lane.b32.xlu0 %v7106_v61, %s18295_s7  ;;  %17742 = vmatpush3.bf16.msk.msra.mxu0 %vm18356_vm5, %v18294_v18 }
 0x2b0   :  { %16996 = vmatprep.mubr.msk.f32.mxu0 %vm18288_vm0, %v18289_v3  ;;  %17761 = vmatprep.subr.bf16.mxu0 %v18287_v1 }
 0x2b2   :  { %16955 = vmatmul.mubr.f32.vlgmr.msra.gmra.mrb[22].mxu1 %v19409_v29  ;;  %v19642_v29 = vsub.f32 %v13248_v11, %v19632_v28 }
 0x2b3   :  { %17745 = vmatpush3.bf16.msk.msra.mxu1 %vm18356_vm5, %v18294_v18  ;;  %17003 = vmatprep.mubr.msk.f32.mxu1 %vm18288_vm0, %v18289_v3 }
 0x2b4   :  { %17746 = vmatprep.subr.bf16.mxu1 %v18287_v1  ;;  %v13319_v37 = vand.u32 4294901760, %v19642_v29 }
 0x2b6   :  { %16997 = vmatmul.mubr.f32.vlgmr.msra.gmra.mrb[24].mxu0 %v19412_v36  ;;  %17004 = vmatmul.mubr.f32.vlgmr.msra.gmra.mrb[24].mxu1 %v11898_v6  ;;  %v13320_v39 = vsub.f32 %v19642_v29, %v13319_v37 }
 0x2b7   :  { %17748 = vmatpush3.bf16.msra.mxu1 %v18376_v30  ;;  %17763 = vmatpush3.bf16.msk.msra.mxu0 %vm18356_vm5, %v18294_v18 }
 0x2b8   :  { %17045 = vmatprep.mubr.msk.f32.mxu0 %vm18288_vm0, %v18289_v3  ;;  %17010 = vmatprep.mubr.msk.f32.mxu1 %vm18288_vm0, %v18289_v3  ;;  %v13321_v41 = vand.u32 4294901760, %v13320_v39 }
 0x2b9   :  { %17749 = vmatprep.subr.bf16.mxu1 %v18287_v1  ;;  %17764 = vmatprep.subr.bf16.mxu0 %v18287_v1 }
 0x2ba   :  { %17046 = vmatmul.mubr.f32.vlgmr.msra.gmra.mrb[26].mxu0 %v12378_v8  ;;  %v14654_v8 = vsel %vm56_vm1, %v19130_v19, 0 }
 0x2bb   :  { %17766 = vmatpush3.bf16.msra.mxu0 %v18376_v30  ;;  %17052 = vmatprep.mubr.msk.f32.mxu0 %vm18288_vm0, %v18289_v3 }
 0x2bc   :  { %17767 = vmatprep.subr.bf16.mxu0 %v18287_v1 }
 0x2be   :  { %17011 = vmatmul.mubr.f32.vlgmr.msra.gmra.mrb[24].mxu1 %v19519_v57 }
 0x2bf   :  { %17751 = vmatpush3.bf16.msra.mxu1 %v18380_v31  ;;  %17017 = vmatprep.mubr.msk.f32.mxu1 %vm18288_vm0, %v18289_v3 }
 0x2c0   :  { %17752 = vmatprep.subr.bf16.mxu1 %v18287_v1 }
 0x2c2   :  { %17053 = vmatmul.mubr.f32.vlgmr.msra.gmra.mrb[26].mxu0 %v19522_v59 }
 0x2c3   :  { %17769 = vmatpush3.bf16.msra.mxu0 %v18380_v31  ;;  %17059 = vmatprep.mubr.msk.f32.mxu0 %vm18288_vm0, %v18289_v3 }
 0x2c4   :  { %v4757_v10 = vpop.permute.xlu1 %4756  ;;  %17770 = vmatprep.subr.bf16.mxu0 %v18287_v1 }
 0x2c5   :  { %v4754_v17 = vpop.permute.xlu0 %4753 }
 0x2c6   :  { %v4759_v21 = vsel %vm19136_vm6, %v4754_v17, %v4757_v10  ;;  %17018 = vmatmul.mubr.f32.vlgmr.msra.gmra.mrb[24].mxu1 %v19528_v62  ;;  %v14723_v10 = vand.u32 4294901760, %v14654_v8 }
 0x2c7   :  { %v4760_v22 = vsel %vm984_vm7, %v4759_v21, %v4751_v52  ;;  %17754 = vmatpush3.bf16.msk.msra.mxu1 %vm18356_vm5, %v18294_v18  ;;  %17024 = vmatprep.mubr.msk.f32.mxu1 %vm18288_vm0, %v18289_v3  ;;  %v19742_v52 = vand.u32 4294901760, %v14191_v33 }
 0x2c8   :  { %v19604_v23 = vsel %vm15137_vm10, %v19494_v51, %v4760_v22  ;;  %v19606_v24 = vpop.permute.xlu1 %5691  ;;  %17755 = vmatprep.subr.bf16.mxu1 %v18287_v1  ;;  %v13711_v51 = vsel %vm56_vm1, %v19114_v12, 0  ;;  %v14724_v17 = vsub.f32 %v14654_v8, %v14723_v10  ;;  %vm15151_vm1 = vcmask 719872  }
 0x2c9   :  { %v19609_v25 = vpop.permute.xlu0 %5688  ;;  %v19739_v16 = vand.u32 4294901760, %v13711_v51  ;;  %v19752_v54 = vsub.f32 %v14191_v33, %v19742_v52 }
 0x2ca   :  { %v5694_v26 = vsel %vm19136_vm6, %v19609_v25, %v19606_v24  ;;  %17060 = vmatmul.mubr.f32.vlgmr.msra.gmra.mrb[26].mxu0 %v19532_v53  ;;  %v14725_v22 = vand.u32 4294901760, %v14724_v17 }
 0x2cb   :  { %17772 = vmatpush3.bf16.msk.msra.mxu0 %vm18356_vm5, %v18294_v18  ;;  %17066 = vmatprep.mubr.msk.f32.mxu0 %vm18288_vm0, %v18289_v3  ;;  %v19748_v12 = vsub.f32 %v13711_v51, %v19739_v16  ;;  %v14262_v62 = vand.u32 4294901760, %v19752_v54 }
 0x2cc   :  { %17773 = vmatprep.subr.bf16.mxu0 %v18287_v1  ;;  %v14726_v25 = vsub.f32 %v14724_v17, %v14725_v22 }
 0x2cd   :  { %v14263_v55 = vsub.f32 %v19752_v54, %v14262_v62 }
 0x2ce   :  { %17025 = vmatmul.mubr.f32.vlgmr.msra.gmra.mrb[24].mxu1 %v11896_v60 }
 0x2cf   :  { %17757 = vmatpush3.bf16.msra.mxu1 %v18392_v32  ;;  %17031 = vmatprep.mubr.msk.f32.mxu1 %vm18288_vm0, %v18289_v3  ;;  %v14264_v61 = vand.u32 4294901760, %v14263_v55 }
 0x2d0   :  { %17758 = vmatprep.subr.bf16.mxu1 %v18287_v1 }
 0x2d2   :  { %17067 = vmatmul.mubr.f32.vlgmr.msra.gmra.mrb[26].mxu0 %v12376_v63 }
 0x2d3   :  { %17775 = vmatpush3.bf16.msra.mxu0 %v18392_v32  ;;  %17073 = vmatprep.mubr.msk.f32.mxu0 %vm18288_vm0, %v18289_v3 }
 0x2d4   :  { %17776 = vmatprep.subr.bf16.mxu0 %v18287_v1 }
 0x2d5   :  { %v7569_v9 = vpop.f32.mrb[14].mxu1 }
 0x2d6   :  { %v16620_v36 = vpop.f32.mrb[15].mxu1  ;;  %17032 = vmatmul.mubr.f32.vlgmr.msra.gmra.mrb[24].mxu1 %v19519_v57  ;;  %7585 = vrot.lane.b32.xlu1 %v7569_v9, %s18302_s14 }
 0x2d7   :  { %17760 = vmatpush3.bf16.msk.msra.mxu1 %vm18356_vm5, %v18294_v18  ;;  %7582 = vrot.lane.b32.xlu0 %v7569_v9, %s18295_s7 }
 0x2d8   :  { %17038 = vmatprep.mubr.msk.f32.mxu1 %vm18288_vm0, %v18289_v3  ;;  %17779 = vmatprep.subr.bf16.mxu1 %v18287_v1 }
 0x2d9   :  { %v8048_v34 = vpop.f32.mrb[16].mxu0 }
 0x2da   :  { %17074 = vmatmul.mubr.f32.vlgmr.msra.gmra.mrb[26].mxu0 %v19522_v59  ;;  %8519 = vrot.lane.b32.xlu1 %v8048_v34, %s18293_s6  ;;  %v16662_v43 = vpop.f32.mrb[17].mxu0 }
 0x2db   :  { %8516 = vrot.lane.b32.xlu0 %v8048_v34, %s18302_s14  ;;  %17778 = vmatpush3.bf16.msk.msra.mxu0 %vm18356_vm5, %v18294_v18 }
 0x2dc   :  { %17080 = vmatprep.mubr.msk.f32.mxu0 %vm18288_vm0, %v18289_v3  ;;  %17797 = vmatprep.subr.bf16.mxu0 %v18287_v1 }
 0x2de   :  { %17039 = vmatmul.mubr.f32.vlgmr.msra.gmra.mrb[24].mxu1 %v19519_v57  ;;  %v13782_v57 = vand.u32 4294901760, %v19748_v12 }
 0x2df   :  { %17781 = vmatpush3.bf16.msk.msra.mxu1 %vm18356_vm5, %v18294_v18  ;;  %17087 = vmatprep.mubr.msk.f32.mxu1 %vm18288_vm0, %v18289_v3 }
 0x2e0   :  { %17782 = vmatprep.subr.bf16.mxu1 %v18287_v1  ;;  %v13783_v53 = vsub.f32 %v19748_v12, %v13782_v57 }
 0x2e2   :  { %17081 = vmatmul.mubr.f32.vlgmr.msra.gmra.mrb[26].mxu0 %v19522_v59  ;;  %17088 = vmatmul.mubr.f32.vlgmr.msra.gmra.mrb[26].mxu1 %v12841_v40  ;;  %v13784_v60 = vand.u32 4294901760, %v13783_v53 }
 0x2e3   :  { %17784 = vmatpush3.bf16.msra.mxu1 %v18376_v30  ;;  %17799 = vmatpush3.bf16.msk.msra.mxu0 %vm18356_vm5, %v18294_v18 }
 0x2e4   :  { %17129 = vmatprep.mubr.msk.f32.mxu0 %vm18288_vm0, %v18289_v3  ;;  %17094 = vmatprep.mubr.msk.f32.mxu1 %vm18288_vm0, %v18289_v3 }
 0x2e5   :  { %17785 = vmatprep.subr.bf16.mxu1 %v18287_v1  ;;  %17800 = vmatprep.subr.bf16.mxu0 %v18287_v1 }
 0x2e6   :  { %17130 = vmatmul.mubr.f32.vlgmr.msra.gmra.mrb[28].mxu0 %v13321_v41 }
 0x2e7   :  { %17802 = vmatpush3.bf16.msra.mxu0 %v18376_v30  ;;  %17136 = vmatprep.mubr.msk.f32.mxu0 %vm18288_vm0, %v18289_v3 }
 0x2e8   :  { %17803 = vmatprep.subr.bf16.mxu0 %v18287_v1 }
 0x2ea   :  { %17095 = vmatmul.mubr.f32.vlgmr.msra.gmra.mrb[26].mxu1 %v19629_v27 }
 0x2eb   :  { %17787 = vmatpush3.bf16.msra.mxu1 %v18380_v31  ;;  %17101 = vmatprep.mubr.msk.f32.mxu1 %vm18288_vm0, %v18289_v3 }
 0x2ec   :  { %17788 = vmatprep.subr.bf16.mxu1 %v18287_v1 }
 0x2ee   :  { %17137 = vmatmul.mubr.f32.vlgmr.msra.gmra.mrb[28].mxu0 %v19632_v28 }
 0x2ef   :  { %17805 = vmatpush3.bf16.msra.mxu0 %v18380_v31  ;;  %17143 = vmatprep.mubr.msk.f32.mxu0 %vm18288_vm0, %v18289_v3 }
 0x2f0   :  { %v5700_v42 = vpop.permute.xlu1 %5699  ;;  %17806 = vmatprep.subr.bf16.mxu0 %v18287_v1 }
 0x2f1   :  { %v5697_v44 = vpop.permute.xlu0 %5696 }
 0x2f2   :  { %v5702_v45 = vsel %vm19136_vm6, %v5697_v44, %v5700_v42  ;;  %17102 = vmatmul.mubr.f32.vlgmr.msra.gmra.mrb[26].mxu1 %v19638_v7 }
 0x2f3   :  { %v5703_v46 = vsel %vm984_vm7, %v5702_v45, %v5694_v26  ;;  %17790 = vmatpush3.bf16.msk.msra.mxu1 %vm18356_vm5, %v18294_v18  ;;  %17108 = vmatprep.mubr.msk.f32.mxu1 %vm18288_vm0, %v18289_v3  ;;  %v14727_v26 = vand.u32 4294901760, %v14726_v25 }
 0x2f4   :  { %v19714_v47 = vsel %vm15139_vm11, %v19604_v23, %v5703_v46  ;;  %v19716_v48 = vpop.permute.xlu1 %6634  ;;  %17791 = vmatprep.subr.bf16.mxu1 %v18287_v1 }
 0x2f5   :  { %v19719_v49 = vpop.permute.xlu0 %6631 }
 0x2f6   :  { %v6637_v50 = vsel %vm19136_vm6, %v19719_v49, %v19716_v48  ;;  %17144 = vmatmul.mubr.f32.vlgmr.msra.gmra.mrb[28].mxu0 %v19642_v29 }
 0x2f7   :  { %17808 = vmatpush3.bf16.msk.msra.mxu0 %vm18356_vm5, %v18294_v18  ;;  %17150 = vmatprep.mubr.msk.f32.mxu0 %vm18288_vm0, %v18289_v3 }
 0x2f8   :  { %17809 = vmatprep.subr.bf16.mxu0 %v18287_v1 }
 0x2fa   :  { %17109 = vmatmul.mubr.f32.vlgmr.msra.gmra.mrb[26].mxu1 %v12839_v58 }
 0x2fb   :  { %17793 = vmatpush3.bf16.msra.mxu1 %v18392_v32  ;;  %17115 = vmatprep.mubr.msk.f32.mxu1 %vm18288_vm0, %v18289_v3 }
 0x2fc   :  { %17794 = vmatprep.subr.bf16.mxu1 %v18287_v1 }
 0x2fe   :  { %17151 = vmatmul.mubr.f32.vlgmr.msra.gmra.mrb[28].mxu0 %v13319_v37 }
 0x2ff   :  { %17811 = vmatpush3.bf16.msra.mxu0 %v18392_v32  ;;  %17157 = vmatprep.mubr.msk.f32.mxu0 %vm18288_vm0, %v18289_v3 }
 0x300   :  { %17812 = vmatprep.subr.bf16.mxu0 %v18287_v1 }
 0x301   :  { %v8511_v14 = vpop.f32.mrb[16].mxu1 }
 0x302   :  { %v16704_v56 = vpop.f32.mrb[17].mxu1  ;;  %17116 = vmatmul.mubr.f32.vlgmr.msra.gmra.mrb[26].mxu1 %v19629_v27  ;;  %8527 = vrot.lane.b32.xlu1 %v8511_v14, %s18293_s6 }
 0x303   :  { %17796 = vmatpush3.bf16.msk.msra.mxu1 %vm18356_vm5, %v18294_v18  ;;  %8524 = vrot.lane.b32.xlu0 %v8511_v14, %s18302_s14 }
 0x304   :  { %17122 = vmatprep.mubr.msk.f32.mxu1 %vm18288_vm0, %v18289_v3  ;;  %17815 = vmatprep.subr.bf16.mxu1 %v18287_v1 }
 0x305   :  { %v8991_v59 = vpop.f32.mrb[18].mxu0 }
 0x306   :  { %17158 = vmatmul.mubr.f32.vlgmr.msra.gmra.mrb[28].mxu0 %v19632_v28  ;;  %9462 = vrot.lane.b32.xlu1 %v8991_v59, %s18303_s15  ;;  %v16746_v5 = vpop.f32.mrb[19].mxu0 }
 0x307   :  { %9459 = vrot.lane.b32.xlu0 %v8991_v59, %s18293_s6  ;;  %17814 = vmatpush3.bf16.msk.msra.mxu0 %vm18356_vm5, %v18294_v18 }
 0x308   :  { %17164 = vmatprep.mubr.msk.f32.mxu0 %vm18288_vm0, %v18289_v3  ;;  %17833 = vmatprep.subr.bf16.mxu0 %v18287_v1 }
 0x30a   :  { %17123 = vmatmul.mubr.f32.vlgmr.msra.gmra.mrb[26].mxu1 %v19629_v27 }
 0x30b   :  { %17817 = vmatpush3.bf16.msk.msra.mxu1 %vm18356_vm5, %v18294_v18  ;;  %17171 = vmatprep.mubr.msk.f32.mxu1 %vm18288_vm0, %v18289_v3 }
 0x30c   :  { %17818 = vmatprep.subr.bf16.mxu1 %v18287_v1 }
 0x30e   :  { %17165 = vmatmul.mubr.f32.vlgmr.msra.gmra.mrb[28].mxu0 %v19632_v28  ;;  %17172 = vmatmul.mubr.f32.vlgmr.msra.gmra.mrb[28].mxu1 %v13784_v60 }
 0x30f   :  { %17820 = vmatpush3.bf16.msra.mxu1 %v18376_v30  ;;  %17835 = vmatpush3.bf16.msk.msra.mxu0 %vm18356_vm5, %v18294_v18 }
 0x310   :  { %17213 = vmatprep.mubr.msk.f32.mxu0 %vm18288_vm0, %v18289_v3  ;;  %17178 = vmatprep.mubr.msk.f32.mxu1 %vm18288_vm0, %v18289_v3 }
 0x311   :  { %17821 = vmatprep.subr.bf16.mxu1 %v18287_v1  ;;  %17836 = vmatprep.subr.bf16.mxu0 %v18287_v1 }
 0x312   :  { %17214 = vmatmul.mubr.f32.vlgmr.msra.gmra.mrb[30].mxu0 %v14264_v61 }
 0x313   :  { %17838 = vmatpush3.bf16.msra.mxu0 %v18376_v30  ;;  %17220 = vmatprep.mubr.msk.f32.mxu0 %vm18288_vm0, %v18289_v3 }
 0x314   :  { %17839 = vmatprep.subr.bf16.mxu0 %v18287_v1 }
 0x316   :  { %17179 = vmatmul.mubr.f32.vlgmr.msra.gmra.mrb[28].mxu1 %v19739_v16 }
 0x317   :  { %17823 = vmatpush3.bf16.msra.mxu1 %v18380_v31  ;;  %17185 = vmatprep.mubr.msk.f32.mxu1 %vm18288_vm0, %v18289_v3 }
 0x318   :  { %17824 = vmatprep.subr.bf16.mxu1 %v18287_v1 }
 0x31a   :  { %17221 = vmatmul.mubr.f32.vlgmr.msra.gmra.mrb[30].mxu0 %v19742_v52 }
 0x31b   :  { %17841 = vmatpush3.bf16.msra.mxu0 %v18380_v31  ;;  %17227 = vmatprep.mubr.msk.f32.mxu0 %vm18288_vm0, %v18289_v3 }
 0x31c   :  { %v6643_v63 = vpop.permute.xlu1 %6642  ;;  %17842 = vmatprep.subr.bf16.mxu0 %v18287_v1 }
 0x31d   :  { %v6640_v0 = vpop.permute.xlu0 %6639 }
 0x31e   :  { %v6645_v2 = vsel %vm19136_vm6, %v6640_v0, %v6643_v63  ;;  %17186 = vmatmul.mubr.f32.vlgmr.msra.gmra.mrb[28].mxu1 %v19748_v12 }
 0x31f   :  { %v6646_v4 = vsel %vm984_vm7, %v6645_v2, %v6637_v50  ;;  %17826 = vmatpush3.bf16.msk.msra.mxu1 %vm18356_vm5, %v18294_v18  ;;  %17192 = vmatprep.mubr.msk.f32.mxu1 %vm18288_vm0, %v18289_v3 }
 0x320   :  { %v19824_v6 = vsel %vm15141_vm12, %v19714_v47, %v6646_v4  ;;  %17827 = vmatprep.subr.bf16.mxu1 %v18287_v1  ;;  %v7578_v41 = vpop.permute.xlu1 %7577 }
 0x321   :  { %v7575_v42 = vpop.permute.xlu0 %7574 }
 0x322   :  { %17228 = vmatmul.mubr.f32.vlgmr.msra.gmra.mrb[30].mxu0 %v19752_v54 }
 0x323   :  { %17844 = vmatpush3.bf16.msk.msra.mxu0 %vm18356_vm5, %v18294_v18  ;;  %17234 = vmatprep.mubr.msk.f32.mxu0 %vm18288_vm0, %v18289_v3 }
 0x324   :  { %17845 = vmatprep.subr.bf16.mxu0 %v18287_v1 }
 0x326   :  { %17193 = vmatmul.mubr.f32.vlgmr.msra.gmra.mrb[28].mxu1 %v13782_v57 }
 0x327   :  { %17829 = vmatpush3.bf16.msra.mxu1 %v18392_v32  ;;  %17199 = vmatprep.mubr.msk.f32.mxu1 %vm18288_vm0, %v18289_v3 }
 0x328   :  { %17830 = vmatprep.subr.bf16.mxu1 %v18287_v1 }
 0x32a   :  { %17235 = vmatmul.mubr.f32.vlgmr.msra.gmra.mrb[30].mxu0 %v14262_v62 }
 0x32b   :  { %17847 = vmatpush3.bf16.msra.mxu0 %v18392_v32  ;;  %17241 = vmatprep.mubr.msk.f32.mxu0 %vm18288_vm0, %v18289_v3 }
 0x32c   :  { %17848 = vmatprep.subr.bf16.mxu0 %v18287_v1 }
 0x32d   :  { %v9454_v21 = vpop.f32.mrb[18].mxu1 }
 0x32e   :  { %v16788_v19 = vpop.f32.mrb[19].mxu1  ;;  %17200 = vmatmul.mubr.f32.vlgmr.msra.gmra.mrb[28].mxu1 %v19739_v16  ;;  %9470 = vrot.lane.b32.xlu1 %v9454_v21, %s18303_s15 }
 0x32f   :  { %17832 = vmatpush3.bf16.msk.msra.mxu1 %vm18356_vm5, %v18294_v18  ;;  %9467 = vrot.lane.b32.xlu0 %v9454_v21, %s18293_s6 }
 0x330   :  { %17206 = vmatprep.mubr.msk.f32.mxu1 %vm18288_vm0, %v18289_v3  ;;  %17851 = vmatprep.subr.bf16.mxu1 %v18287_v1 }
 0x331   :  { %v9934_v23 = vpop.f32.mrb[20].mxu0 }
 0x332   :  { %17242 = vmatmul.mubr.f32.vlgmr.msra.gmra.mrb[30].mxu0 %v19742_v52  ;;  %10405 = vrot.lane.b32.xlu1 %v9934_v23, %s18291_s4  ;;  %v16830_v24 = vpop.f32.mrb[21].mxu0 }
 0x333   :  { %10402 = vrot.lane.b32.xlu0 %v9934_v23, %s18303_s15  ;;  %17850 = vmatpush3.bf16.msk.msra.mxu0 %vm18356_vm5, %v18294_v18 }
 0x334   :  { %17248 = vmatprep.mubr.msk.f32.mxu0 %vm18288_vm0, %v18289_v3 }
 0x336   :  { %17207 = vmatmul.mubr.f32.vlgmr.msra.gmra.mrb[28].mxu1 %v19739_v16 }
 0x337   :  { %17853 = vmatpush3.bf16.msk.msra.mxu1 %vm18356_vm5, %v18294_v18  ;;  %17255 = vmatprep.mubr.msk.f32.mxu1 %vm18288_vm0, %v18289_v3 }
 0x338   :  { %17854 = vmatprep.subr.bf16.mxu1 %v18287_v1 }
 0x33a   :  { %17249 = vmatmul.mubr.f32.vlgmr.msra.gmra.mrb[30].mxu0 %v19742_v52  ;;  %17256 = vmatmul.mubr.f32.vlgmr.msra.gmra.mrb[30].mxu1 %v14727_v26 }
 0x33b   :  { %17856 = vmatpush3.bf16.msra.mxu1 %v18376_v30  ;;  %17262 = vmatprep.mubr.msk.f32.mxu1 %vm18288_vm0, %v18289_v3 }
 0x33c   :  { %17857 = vmatprep.subr.bf16.mxu1 %v18287_v1 }
 0x342   :  { %17263 = vmatmul.mubr.f32.vlgmr.msra.gmra.mrb[30].mxu1 %v14723_v10 }
 0x343   :  { %17859 = vmatpush3.bf16.msra.mxu1 %v18380_v31  ;;  %17269 = vmatprep.mubr.msk.f32.mxu1 %vm18288_vm0, %v18289_v3 }
 0x344   :  { %17860 = vmatprep.subr.bf16.mxu1 %v18287_v1 }
 0x348   :  { %v7586_v44 = vpop.permute.xlu1 %7585 }
 0x349   :  { %v7583_v45 = vpop.permute.xlu0 %7582 }
 0x34a   :  { %17270 = vmatmul.mubr.f32.vlgmr.msra.gmra.mrb[30].mxu1 %v14724_v17  ;;  %v7580_v17 = vsel %vm19136_vm6, %v7575_v42, %v7578_v41 }
 0x34b   :  { %17862 = vmatpush3.bf16.msk.msra.mxu1 %vm18356_vm5, %v18294_v18  ;;  %17276 = vmatprep.mubr.msk.f32.mxu1 %vm18288_vm0, %v18289_v3 }
 0x34c   :  { %17863 = vmatprep.subr.bf16.mxu1 %v18287_v1  ;;  %v8520_v46 = vpop.permute.xlu1 %8519 }
 0x34d   :  { %v8517_v47 = vpop.permute.xlu0 %8516 }
 0x34e   :  { %v8522_v24 = vsel %vm19136_vm6, %v8517_v47, %v8520_v46 }
 0x352   :  { %17277 = vmatmul.mubr.f32.vlgmr.msra.gmra.mrb[30].mxu1 %v14725_v22 }
 0x353   :  { %17865 = vmatpush3.bf16.msra.mxu1 %v18392_v32  ;;  %17283 = vmatprep.mubr.msk.f32.mxu1 %vm18288_vm0, %v18289_v3 }
 0x354   :  { %17866 = vmatprep.subr.bf16.mxu1 %v18287_v1 }
 0x359   :  { %v10397_v30 = vpop.f32.mrb[20].mxu1 }
 0x35a   :  { %v16872_v31 = vpop.f32.mrb[21].mxu1  ;;  %17284 = vmatmul.mubr.f32.vlgmr.msra.gmra.mrb[30].mxu1 %v14723_v10  ;;  %10413 = vrot.lane.b32.xlu1 %v10397_v30, %s18291_s4 }
 0x35b   :  { %17868 = vmatpush3.bf16.msk.msra.mxu1 %vm18356_vm5, %v18294_v18  ;;  %10410 = vrot.lane.b32.xlu0 %v10397_v30, %s18303_s15  ;;  %vm15159_vm5 = vcmask 982016  }
 0x35c   :  { %17290 = vmatprep.mubr.msk.f32.mxu1 %vm18288_vm0, %v18289_v3  ;;  %vm15149_vm0 = vcmask 654336  }
 0x35d   :  { %v10877_v32 = vpop.f32.mrb[22].mxu0 }
 0x35e   :  { %11348 = vrot.lane.b32.xlu1 %v10877_v32, %s18304_s16  ;;  %v16914_v35 = vpop.f32.mrb[23].mxu0 }
 0x35f   :  { %11345 = vrot.lane.b32.xlu0 %v10877_v32, %s18291_s4 }
 0x362   :  { %17291 = vmatmul.mubr.f32.vlgmr.msra.gmra.mrb[30].mxu1 %v14723_v10  ;;  %v7588_v10 = vsel %vm19136_vm6, %v7583_v45, %v7586_v44 }
 0x363   :  { %v7589_v19 = vsel %vm984_vm7, %v7588_v10, %v7580_v17 }
 0x364   :  { %v15144_v31 = vsel %vm15143_vm13, %v19824_v6, %v7589_v19 }
 0x374   :  { %v8528_v48 = vpop.permute.xlu1 %8527 }
 0x375   :  { %v8525_v49 = vpop.permute.xlu0 %8524 }
 0x376   :  { %v8530_v21 = vsel %vm19136_vm6, %v8525_v49, %v8528_v48 }
 0x377   :  { %v8531_v26 = vsel %vm984_vm7, %v8530_v21, %v8522_v24 }
 0x378   :  { %v9463_v50 = vpop.permute.xlu1 %9462 }
 0x379   :  { %v9460_v51 = vpop.permute.xlu0 %9459 }
 0x37a   :  { %v9465_v32 = vsel %vm19136_vm6, %v9460_v51, %v9463_v50 }
 0x385   :  { %v11340_v1 = vpop.f32.mrb[22].mxu1 }
 0x386   :  { %v16956_v11 = vpop.f32.mrb[23].mxu1  ;;  %11356 = vrot.lane.b32.xlu1 %v11340_v1, %s18304_s16  ;;  %11353 = vrot.lane.b32.xlu0 %v11340_v1, %s18291_s4 }
 0x389   :  { %v11819_v27 = vpop.f32.mrb[24].mxu0 }
 0x38a   :  { %12290 = vrot.lane.b32.xlu1 %v11819_v27, %s18292_s5  ;;  %12287 = vrot.lane.b32.xlu0 %v11819_v27, %s18304_s16  ;;  %v16998_v15 = vpop.f32.mrb[25].mxu0 }
 0x38b   :  { %v15146_v15 = vsel %vm15145_vm14, %v15144_v31, %v8531_v26 }
 0x3a0   :  { %v9471_v33 = vpop.permute.xlu1 %9470 }
 0x3a1   :  { %v9468_v16 = vpop.permute.xlu0 %9467 }
 0x3a2   :  { %v9473_v25 = vsel %vm19136_vm6, %v9468_v16, %v9471_v33 }
 0x3a3   :  { %v9474_v1 = vsel %vm984_vm7, %v9473_v25, %v9465_v32 }
 0x3a4   :  { %v10406_v52 = vpop.permute.xlu1 %10405 }
 0x3a5   :  { %v10403_v12 = vpop.permute.xlu0 %10402 }
 0x3a6   :  { %v10408_v11 = vsel %vm19136_vm6, %v10403_v12, %v10406_v52 }
 0x3b1   :  { %v12282_v18 = vpop.f32.mrb[24].mxu1 }
 0x3b2   :  { %v17040_v28 = vpop.f32.mrb[25].mxu1  ;;  %12298 = vrot.lane.b32.xlu1 %v12282_v18, %s18292_s5  ;;  %12295 = vrot.lane.b32.xlu0 %v12282_v18, %s18304_s16 }
 0x3b5   :  { %v12762_v3 = vpop.f32.mrb[26].mxu0 }
 0x3b6   :  { %13233 = vrot.lane.b32.xlu1 %v12762_v3, %s18305_s17  ;;  %13230 = vrot.lane.b32.xlu0 %v12762_v3, %s18292_s5  ;;  %v17082_v7 = vpop.f32.mrb[27].mxu0 }
 0x3cc   :  { %v10414_v14 = vpop.permute.xlu1 %10413 }
 0x3cd   :  { %v10411_v54 = vpop.permute.xlu0 %10410 }
 0x3ce   :  { %v10416_v30 = vsel %vm19136_vm6, %v10411_v54, %v10414_v14 }
 0x3cf   :  { %v10417_v6 = vsel %vm984_vm7, %v10416_v30, %v10408_v11 }
 0x3d0   :  { %v11349_v56 = vpop.permute.xlu1 %11348 }
 0x3d1   :  { %v11346_v57 = vpop.permute.xlu0 %11345 }
 0x3d2   :  { %v11351_v18 = vsel %vm19136_vm6, %v11346_v57, %v11349_v56 }
 0x3dd   :  { %v13225_v9 = vpop.f32.mrb[26].mxu1 }
 0x3de   :  { %v17124_v29 = vpop.f32.mrb[27].mxu1  ;;  %13241 = vrot.lane.b32.xlu1 %v13225_v9, %s18305_s17  ;;  %13238 = vrot.lane.b32.xlu0 %v13225_v9, %s18292_s5 }
 0x3e1   :  { %v13705_v36 = vpop.f32.mrb[28].mxu0 }
 0x3e2   :  { %14176 = vrot.lane.b32.xlu1 %v13705_v36, %s18290_s1  ;;  %14173 = vrot.lane.b32.xlu0 %v13705_v36, %s18305_s17  ;;  %v17166_v58 = vpop.f32.mrb[29].mxu0 }
 0x3e3   :  { %v15148_v58 = vsel %vm15147_vm15, %v15146_v15, %v9474_v1 }
 0x3f8   :  { %v11357_v59 = vpop.permute.xlu1 %11356  ;;  %v11354_v62 = vpop.permute.xlu0 %11353 }
 0x3f9   :  { %v11359_v35 = vsel %vm19136_vm6, %v11354_v62, %v11357_v59 }
 0x3fa   :  { %v11360_v3 = vsel %vm984_vm7, %v11359_v35, %v11351_v18 }
 0x3fc   :  { %v12291_v5 = vpop.permute.xlu1 %12290  ;;  %v12288_v53 = vpop.permute.xlu0 %12287 }
 0x3fd   :  { %v12293_v7 = vsel %vm19136_vm6, %v12288_v53, %v12291_v5 }
 0x409   :  { %v14168_v34 = vpop.f32.mrb[28].mxu1 }
 0x40a   :  { %v17208_v37 = vpop.f32.mrb[29].mxu1  ;;  %14184 = vrot.lane.b32.xlu1 %v14168_v34, %s18290_s1  ;;  %14181 = vrot.lane.b32.xlu0 %v14168_v34, %s18305_s17 }
 0x40d   :  { %v14648_v43 = vpop.f32.mrb[30].mxu0 }
 0x40e   :  { %15119 = vrot.lane.b32.xlu1 %v14648_v43, %s18298_s10  ;;  %15116 = vrot.lane.b32.xlu0 %v14648_v43, %s18290_s1  ;;  %v17250_v38 = vpop.f32.mrb[31].mxu0  ;;  %v15150_v43 = vsel %vm15149_vm0, %v15148_v58, %v10417_v6 }
 0x424   :  { %v12299_v55 = vpop.permute.xlu1 %12298  ;;  %v12296_v60 = vpop.permute.xlu0 %12295 }
 0x425   :  { %v12301_v27 = vsel %vm19136_vm6, %v12296_v60, %v12299_v55 }
 0x426   :  { %v12302_v34 = vsel %vm984_vm7, %v12301_v27, %v12293_v7 }
 0x428   :  { %v13234_v61 = vpop.permute.xlu1 %13233  ;;  %v13231_v63 = vpop.permute.xlu0 %13230 }
 0x429   :  { %v13236_v37 = vsel %vm19136_vm6, %v13231_v63, %v13234_v61 }
 0x435   :  { %v15111_v39 = vpop.f32.mrb[30].mxu1 }
 0x436   :  { %v17292_v40 = vpop.f32.mrb[31].mxu1  ;;  %15127 = vrot.lane.b32.xlu1 %v15111_v39, %s18298_s10  ;;  %15124 = vrot.lane.b32.xlu0 %v15111_v39, %s18290_s1 }
 0x437   :  { %v15152_v40 = vsel %vm15151_vm1, %v15150_v43, %v11360_v3 }
 0x438   :  { %v15154_v42 = vsel %vm15153_vm2, %v15152_v40, %v12302_v34 }
 0x450   :  { %v13242_v0 = vpop.permute.xlu1 %13241  ;;  %v13239_v2 = vpop.permute.xlu0 %13238 }
 0x451   :  { %v13244_v28 = vsel %vm19136_vm6, %v13239_v2, %v13242_v0 }
 0x452   :  { %v13245_v38 = vsel %vm984_vm7, %v13244_v28, %v13236_v37 }
 0x453   :  { %v15156_v46 = vsel %vm15155_vm3, %v15154_v42, %v13245_v38 }
 0x454   :  { %v14177_v4 = vpop.permute.xlu1 %14176  ;;  %v14174_v8 = vpop.permute.xlu0 %14173 }
 0x455   :  { %v14179_v39 = vsel %vm19136_vm6, %v14174_v8, %v14177_v4 }
 0x47c   :  { %v14185_v22 = vpop.permute.xlu1 %14184  ;;  %v14182_v23 = vpop.permute.xlu0 %14181 }
 0x47d   :  { %v14187_v9 = vsel %vm19136_vm6, %v14182_v23, %v14185_v22 }
 0x47e   :  { %v14188_v41 = vsel %vm984_vm7, %v14187_v9, %v14179_v39 }
 0x47f   :  { %v15158_v50 = vsel %vm15157_vm4, %v15156_v46, %v14188_v41 }
 0x480   :  { %v15120_v29 = vpop.permute.xlu1 %15119  ;;  %v15117_v36 = vpop.permute.xlu0 %15116 }
 0x481   :  { %v15122_v47 = vsel %vm19136_vm6, %v15117_v36, %v15120_v29 }
 0x4a8   :  { %v15128_v44 = vpop.permute.xlu1 %15127  ;;  %v15125_v45 = vpop.permute.xlu0 %15124 }
 0x4a9   :  { %v15130_v48 = vsel %vm19136_vm6, %v15125_v45, %v15128_v44 }
 0x4aa   :  { %v15131_v49 = vsel %vm984_vm7, %v15130_v48, %v15122_v47 }
 0x4ab   :  { %v15160_v51 = vsel %vm15159_vm5, %v15158_v50, %v15131_v49 }
 0x4ac   :  { %15161 = vst [vmem:[#allocation7] sm:$0xf] %v15160_v51 }
 0x4ad   :  { %18268 = shalt.err (!%p18265_p6)
}
 0x4ae   :  { %s18269_s23 = scalar_lea.hbm %s19977_s2, 64 }
 0x4af   :  { %p18270_p7 = scmp.ne.s32.totalorder %s19977_s2, %s18269_s23  ;;  %p18273_p8 = scmp.lt.u32.totalorder %s18269_s23, %s19977_s2 }
 0x4b1   :  { %p18275_p9 = pnand %p18273_p8, %p18270_p7 }
 0x4b3   :  { %18278 = shalt.err (!%p18275_p9)
}
 0x4b4   :  { %15171 = dma.vmem_to_hbm [thread:$0]  %s15169_s19, 64, %s19977_s2, [#allocation4]  }
 0x4b5   :  { %18283 = dma.done.wait [#allocation4], 64  }
 0x4b6   :  { %18284 = vsyncadd [#allocation4], 4294967232 }
 0x4b7   :  { %15175 = vsyncpa [#allocation3], 1 }
 0x4b8   :  { %15176 = vsyncpa [#allocation6], 1 }
 0x4b9   :  { %15177 = vsyncpa [#allocation4], 1 }

</bundles_post_ra>
